<compile_context>
chip_gen: v7x
topology: tpu7x:2x2x1
jax: 0.10.0
libtpu: 0.0.40
codegen_flags: <defaults>
</compile_context>

<pallas_src>
import functools
import math

import jax
import jax.numpy as jnp
from jax.experimental import pallas as pl
from jax.experimental.pallas import tpu as pltpu

LN_EPS = 1e-5
_LANE = 128
_SUBLANE_F32 = 8
_SUBLANE_PACKED = 16
_MIN_SPLIT_ROWS = 128      # above 2x this, split the batch into >=2 grid blocks

# Argument order for the weight/bias operands of the kernels.
PARAM_ORDER = (
    "wt1", "bt1", "wt2", "bt2",            # time_embed
    "wlr", "blr",                          # low_rank_proj
    "w1a", "w1b", "b1", "g1", "be1",       # main_net Linear0 (split) + LN1
    "w2", "b2", "g2", "be2",               # main_net Linear4 + LN5
    "w3", "b3",                            # main_net Linear8
    "winv", "binv",                        # inv_proj
)
# Large MXU weights that may be stored in bf16.
MATMUL_WEIGHTS = ("wt2", "wlr", "w1a", "w1b", "w2", "w3", "winv")
# Params streamed in P-chunks in the tiled (large param_dim) path.
_P_STREAMED = ("wlr", "winv", "binv")


# ----------------------------- math helpers ---------------------------------

def _silu(x):
    return x * jax.nn.sigmoid(x)


def _gelu_erf(x):
    # exact erf form == torch.nn.GELU() (approximate='none')
    return 0.5 * x * (1.0 + jax.lax.erf(x * jnp.float32(0.7071067811865476)))


def _gelu_tanh(x):
    # tanh approximation == torch.nn.GELU(approximate='tanh'); runs on the EUP.
    c = jnp.float32(0.7978845608028654)       # sqrt(2/pi)
    return 0.5 * x * (1.0 + jnp.tanh(c * (x + jnp.float32(0.044715) * x * x * x)))


_GELU = {"erf": _gelu_erf, "tanh": _gelu_tanh}


def _layernorm(x, g, b):
    mu = jnp.mean(x, axis=-1, keepdims=True)
    var = jnp.mean((x - mu) ** 2, axis=-1, keepdims=True)
    return (x - mu) * jax.lax.rsqrt(var + LN_EPS) * g + b


def _time_embed(t, wt1, bt1, wt2, bt2, cdt):
    # Linear(1,32) is an outer product -> broadcast multiply on the VPU.
    h = _silu(t * wt1 + bt1)
    return jnp.dot(h.astype(cdt), wt2, preferred_element_type=jnp.float32) + bt2


def _main_net(z_proj, t_emb, w1a, w1b, b1, g1, be1, w2, b2, g2, be2, w3, b3,
              cdt, gelu):
    # cat([z_proj, t_emb]) @ W1  ==  z_proj @ W1[:R] + t_emb @ W1[R:]
    h = (jnp.dot(z_proj.astype(cdt), w1a, preferred_element_type=jnp.float32)
         + jnp.dot(t_emb.astype(cdt), w1b, preferred_element_type=jnp.float32)
         + b1)
    h = gelu(_layernorm(h, g1, be1))          # Dropout: identity at inference
    h = jnp.dot(h.astype(cdt), w2, preferred_element_type=jnp.float32) + b2
    h = gelu(_layernorm(h, g2, be2))          # Dropout: identity at inference
    return jnp.dot(h.astype(cdt), w3, preferred_element_type=jnp.float32) + b3


# ------------------------------- kernels ------------------------------------

def _fused_kernel(z_ref, t_ref,
                  wt1_ref, bt1_ref, wt2_ref, bt2_ref,
                  wlr_ref, blr_ref,
                  w1a_ref, w1b_ref, b1_ref, g1_ref, be1_ref,
                  w2_ref, b2_ref, g2_ref, be2_ref,
                  w3_ref, b3_ref,
                  winv_ref, binv_ref,
                  out_ref, *, compute_dtype, gelu):
    cdt = compute_dtype
    t_emb = _time_embed(t_ref[...], wt1_ref[...], bt1_ref[...],
                        wt2_ref[...], bt2_ref[...], cdt)
    z_proj = (jnp.dot(z_ref[...].astype(cdt), wlr_ref[...],
                      preferred_element_type=jnp.float32) + blr_ref[...])
    h = _main_net(z_proj, t_emb,
                  w1a_ref[...], w1b_ref[...], b1_ref[...], g1_ref[...], be1_ref[...],
                  w2_ref[...], b2_ref[...], g2_ref[...], be2_ref[...],
                  w3_ref[...], b3_ref[...], cdt, gelu)
    out_ref[...] = (jnp.dot(h.astype(cdt), winv_ref[...],
                            preferred_element_type=jnp.float32)
                    + binv_ref[...]).astype(out_ref.dtype)


def _tiled_kernel(z_ref, t_ref,
                  wt1_ref, bt1_ref, wt2_ref, bt2_ref,
                  wlr_ref, blr_ref,
                  w1a_ref, w1b_ref, b1_ref, g1_ref, be1_ref,
                  w2_ref, b2_ref, g2_ref, be2_ref,
                  w3_ref, b3_ref,
                  winv_ref, binv_ref,
                  out_ref,
                  zproj_acc, temb_acc, h_acc,
                  *, compute_dtype, gelu):
    """Grid (batch, phase, p_chunk): phase 0 reduces z@wlr over P-chunks,
    phase 1 runs the main net once and writes out chunks h@winv[:,chunk]."""
    cdt = compute_dtype
    ph = pl.program_id(1)
    j = pl.program_id(2)

    @pl.when(jnp.logical_and(ph == 0, j == 0))
    def _init():
        temb_acc[...] = _time_embed(t_ref[...], wt1_ref[...], bt1_ref[...],
                                    wt2_ref[...], bt2_ref[...], cdt)
        zproj_acc[...] = jnp.zeros_like(zproj_acc)

    @pl.when(ph == 0)
    def _reduce():
        zproj_acc[...] += jnp.dot(z_ref[...].astype(cdt), wlr_ref[...],
                                  preferred_element_type=jnp.float32)

    @pl.when(jnp.logical_and(ph == 1, j == 0))
    def _main():
        z_proj = zproj_acc[...] + blr_ref[...]
        h_acc[...] = _main_net(
            z_proj, temb_acc[...],
            w1a_ref[...], w1b_ref[...], b1_ref[...], g1_ref[...], be1_ref[...],
            w2_ref[...], b2_ref[...], g2_ref[...], be2_ref[...],
            w3_ref[...], b3_ref[...], cdt, gelu)

    @pl.when(ph == 1)
    def _write():
        out_ref[...] = (jnp.dot(h_acc[...].astype(cdt), winv_ref[...],
                                preferred_element_type=jnp.float32)
                        + binv_ref[...]).astype(out_ref.dtype)


# ----------------------------- params / utils -------------------------------

def init_params(key, param_dim, hidden_dim, rank):
    """Deterministic xavier_normal_(gain=0.02) weights (stored (in,out)),
    zero biases (f32)."""
    gain = 0.02

    def xavier(key, fan_in, fan_out):
        std = gain * math.sqrt(2.0 / (fan_in + fan_out))
        return std * jax.random.normal(key, (fan_in, fan_out), dtype=jnp.float32)

    ks = jax.random.split(key, 7)
    p = {}
    p["wt1"] = xavier(ks[0], 1, 32)
    p["bt1"] = jnp.zeros((1, 32), jnp.float32)
    p["wt2"] = xavier(ks[1], 32, 64)
    p["bt2"] = jnp.zeros((1, 64), jnp.float32)
    p["wlr"] = xavier(ks[2], param_dim, rank)
    p["blr"] = jnp.zeros((1, rank), jnp.float32)
    w1 = xavier(ks[3], rank + 64, hidden_dim)
    p["w1a"] = w1[:rank]                    # (R, H)
    p["w1b"] = w1[rank:]                    # (64, H)
    p["b1"] = jnp.zeros((1, hidden_dim), jnp.float32)
    p["g1"] = jnp.ones((1, hidden_dim), jnp.float32)
    p["be1"] = jnp.zeros((1, hidden_dim), jnp.float32)
    p["w2"] = xavier(ks[4], hidden_dim, hidden_dim)
    p["b2"] = jnp.zeros((1, hidden_dim), jnp.float32)
    p["g2"] = jnp.ones((1, hidden_dim), jnp.float32)
    p["be2"] = jnp.zeros((1, hidden_dim), jnp.float32)
    p["w3"] = xavier(ks[5], hidden_dim, rank)
    p["b3"] = jnp.zeros((1, rank), jnp.float32)
    p["winv"] = xavier(ks[6], rank, param_dim)
    p["binv"] = jnp.zeros((1, param_dim), jnp.float32)
    return p


def cast_matmul_weights(params, dtype):
    """Cast the large MXU weights to `dtype` (e.g. bf16); biases/LN stay f32."""
    return {k: (v.astype(dtype) if k in MATMUL_WEIGHTS else v)
            for k, v in params.items()}


def _round_up(x, m):
    return ((x + m - 1) // m) * m


def _round_down(x, m):
    return (x // m) * m


def _nbytes(a):
    return int(a.size) * jnp.dtype(a.dtype).itemsize


def _vmem_budget_bytes():
    """Generation-aware scoped-VMEM budget (~0.8x capacity); safe fallback is
    the smallest per-core VMEM across generations (v7x, 64 MiB)."""
    try:
        cap = int(pltpu.get_tpu_info().vmem_capacity_bytes)
    except Exception:
        cap = 64 << 20
    return int(cap * 4 // 5)


def _rel_err(a, b):
    a = jnp.asarray(a, jnp.float32)
    b = jnp.asarray(b, jnp.float32)
    return float(jnp.linalg.norm(a - b) / (jnp.linalg.norm(b) + 1e-12))


# ------------------------------- forward ------------------------------------

def flow_matching_forward(z, t, params, *, tb_max=512, p_chunk=None,
                          out_dtype=jnp.float32, gelu_mode="erf",
                          single_buffer_weights=True):
    """z: (B, P) f32/bf16, t: (B, 1) or (B,) -> (B, P) in out_dtype.

    p_chunk: None -> fully fused (weights VMEM-resident); otherwise (or when
    the resident-weight working set would not fit VMEM) wlr/winv/binv are
    streamed in `p_chunk`-wide P-chunks (tiled path).
    """
    if z.ndim == 1:
        z = z[None, :]
    if t.ndim == 1:
        t = t.reshape(z.shape[0], 1)
    t = t.astype(jnp.float32)

    B, P = z.shape
    R = params["wlr"].shape[1]
    H = params["w2"].shape[0]
    compute_dtype = params["wlr"].dtype          # f32 or bf16 MXU operand dtype
    gelu = _GELU[gelu_mode]
    out_dtype = jnp.dtype(out_dtype)
    z_it = jnp.dtype(z.dtype).itemsize
    o_it = out_dtype.itemsize

    budget = _vmem_budget_bytes()
    weight_bytes_all = sum(_nbytes(params[k]) for k in PARAM_ORDER)
    resident_bytes = sum(_nbytes(params[k]) for k in PARAM_ORDER
                         if k not in _P_STREAMED)
    w_it = jnp.dtype(params["wlr"].dtype).itemsize

    def fused_fits(tb, p_pad):
        io = 2 * tb * (p_pad * z_it + 4 + p_pad * o_it)    # dbl-buffered z/t/out
        act = 6 * tb * max(p_pad, H, R + 64) * 4           # f32 intermediates
        return weight_bytes_all + io + act <= budget

    def tiled_fits(tb, pc):
        streamed = 2 * pc * (2 * R * w_it + 4)             # dbl-buffered chunks
        io = 2 * tb * (pc * z_it + 4 + pc * o_it)
        act = 6 * tb * max(H, R + 64, pc) * 4
        return resident_bytes + streamed + io + act <= budget

    sub = _SUBLANE_F32 if (z_it == 4 and o_it == 4) else _SUBLANE_PACKED

    use_tiled = ((p_chunk is not None and p_chunk < P)
                 or not fused_fits(sub, _round_up(P, _LANE)))
    if use_tiled:
        pc = _round_up(min(p_chunk or 512, P), _LANE)
        P_pad = _round_up(P, pc)
    else:
        pc = None
        P_pad = _round_up(P, _LANE)

    # Keep the streamed last dim a lane-dense multiple of 128 (unmasked vst).
    if P_pad != P:
        params = dict(params)
        params["wlr"] = jnp.pad(params["wlr"], ((0, P_pad - P), (0, 0)))
        params["winv"] = jnp.pad(params["winv"], ((0, 0), (0, P_pad - P)))
        params["binv"] = jnp.pad(params["binv"], ((0, 0), (0, P_pad - P)))
        z = jnp.pad(z, ((0, 0), (0, P_pad - P)))

    # Batch tile: no 128-row padding for tiny batches; >=2 blocks for v7x
    # megacore when the batch is big enough; shrink until it fits VMEM.
    fits = (lambda tb: tiled_fits(tb, pc)) if use_tiled else \
           (lambda tb: fused_fits(tb, P_pad))
    b_sub = _round_up(B, sub)
    if b_sub <= tb_max:
        tb = _round_up(-(-b_sub // 2), sub) if b_sub >= 2 * _MIN_SPLIT_ROWS else b_sub
    else:
        tb = max(sub, _round_down(tb_max, sub))
    while tb > sub and not fits(tb):
        tb = max(sub, _round_down(tb // 2, sub))

    B_pad = _round_up(B, tb)
    if B_pad != B:
        z = jnp.pad(z, ((0, B_pad - B), (0, 0)))
        t = jnp.pad(t, ((0, B_pad - B), (0, 0)))
    nb = B_pad // tb

    weights = [params[k] for k in PARAM_ORDER]
    out_shape = jax.ShapeDtypeStruct((B_pad, P_pad), out_dtype)
    cp = pltpu.CompilerParams(
        dimension_semantics=(("parallel", "arbitrary", "arbitrary") if use_tiled
                             else ("parallel",)),
        vmem_limit_bytes=int(budget))

    def call(single_buffer):
        def const_spec(shape, imap):
            if single_buffer:
                try:
                    # Constant-index weights: single-buffer so they are
                    # resident once (not double-buffered) in VMEM.
                    return pl.BlockSpec(shape, imap, pipeline_mode=pl.Buffered(1))
                except TypeError:
                    pass
            return pl.BlockSpec(shape, imap)

        if not use_tiled:
            bmap = lambda i: (i, 0)
            cmap = lambda i: (0, 0)
            in_specs = ([pl.BlockSpec((tb, P_pad), bmap),
                         pl.BlockSpec((tb, 1), bmap)]
                        + [const_spec(params[k].shape, cmap) for k in PARAM_ORDER])
            out_specs = pl.BlockSpec((tb, P_pad), bmap)
            kernel = functools.partial(_fused_kernel,
                                       compute_dtype=compute_dtype, gelu=gelu)
            return pl.pallas_call(
                kernel, out_shape=out_shape, grid=(nb,),
                in_specs=in_specs, out_specs=out_specs,
                compiler_params=cp,
            )(z, t, *weights)

        nj = P_pad // pc
        cmap = lambda i, ph, j: (0, 0)

        def spec_for(k):
            if k == "wlr":      # streamed during phase 0 only; pinned in phase 1
                return pl.BlockSpec(
                    (pc, R), lambda i, ph, j: ((1 - ph) * j + ph * (nj - 1), 0))
            if k == "winv":     # streamed during phase 1 only
                return pl.BlockSpec((R, pc), lambda i, ph, j: (0, ph * j))
            if k == "binv":
                return pl.BlockSpec((1, pc), lambda i, ph, j: (0, ph * j))
            return const_spec(params[k].shape, cmap)

        in_specs = ([pl.BlockSpec((tb, pc),
                                  lambda i, ph, j: (i, (1 - ph) * j + ph * (nj - 1))),
                     pl.BlockSpec((tb, 1), lambda i, ph, j: (i, 0))]
                    + [spec_for(k) for k in PARAM_ORDER])
        out_specs = pl.BlockSpec((tb, pc), lambda i, ph, j: (i, ph * j))
        kernel = functools.partial(_tiled_kernel,
                                   compute_dtype=compute_dtype, gelu=gelu)
        return pl.pallas_call(
            kernel, out_shape=out_shape, grid=(nb, 2, nj),
            in_specs=in_specs, out_specs=out_specs,
            scratch_shapes=[pltpu.VMEM((tb, R), jnp.float32),    # z_proj acc
                            pltpu.VMEM((tb, 64), jnp.float32),   # t_emb
                            pltpu.VMEM((tb, R), jnp.float32)],   # main-net out
            compiler_params=cp,
        )(z, t, *weights)

    try:
        out = call(single_buffer_weights)
    except Exception:
        if not single_buffer_weights:
            raise
        out = call(False)       # fallback if Buffered(1) is unsupported here

    return out[:B, :P]


def flow_matching_reference(z, t, params, gelu_mode="erf"):
    """Pure-JAX f32 reference mirroring the PyTorch forward (eval mode)."""
    p = {k: v.astype(jnp.float32) for k, v in params.items()}
    gelu = _GELU[gelu_mode]
    z = z.astype(jnp.float32)
    t = t.astype(jnp.float32)
    h_t = _silu(t @ p["wt1"] + p["bt1"])
    t_emb = h_t @ p["wt2"] + p["bt2"]
    z_proj = z @ p["wlr"] + p["blr"]
    h = z_proj @ p["w1a"] + t_emb @ p["w1b"] + p["b1"]
    h = gelu(_layernorm(h, p["g1"], p["be1"]))
    h = h @ p["w2"] + p["b2"]
    h = gelu(_layernorm(h, p["g2"], p["be2"]))
    h = h @ p["w3"] + p["b3"]
    return h @ p["winv"] + p["binv"]


if __name__ == "__main__":
    H, R = 256, 128
    key = jax.random.PRNGKey(0)
    k_z, k_t, k_p, k_p3 = jax.random.split(key, 4)

    # --- Case 1: tiny batch (B=8 -> one 8-row block, no 128-row padding),
    #     f32 weights, exact erf GELU (torch.nn.GELU semantics). Fused path.
    P1, B1 = 256, 8
    params = init_params(k_p, P1, H, R)
    z1 = jax.random.normal(k_z, (B1, P1), dtype=jnp.float32)
    t1 = jax.random.uniform(k_t, (B1, 1), dtype=jnp.float32)
    out1 = jax.block_until_ready(flow_matching_forward(z1, t1, params,
                                                       gelu_mode="erf"))
    ref1 = flow_matching_reference(z1, t1, params, gelu_mode="erf")
    assert out1.shape == (B1, P1)
    assert jnp.allclose(out1, ref1, atol=1e-4, rtol=1e-4), "case1: f32 mismatch"
    assert _rel_err(out1, ref1) < 2e-2, "case1: f32 relative error too large"

    # --- Case 2: bigger batch (B=384 -> two parallel 192-row blocks for v7x
    #     megacore), bf16 MXU weights, tanh GELU (EUP). Fused path.
    B2 = 384
    z2 = jax.random.normal(jax.random.PRNGKey(1), (B2, P1), dtype=jnp.float32)
    t2 = jax.random.uniform(jax.random.PRNGKey(2), (B2, 1), dtype=jnp.float32)
    params_bf16 = cast_matmul_weights(params, jnp.bfloat16)
    out2 = jax.block_until_ready(flow_matching_forward(z2, t2, params_bf16,
                                                       gelu_mode="tanh"))
    ref2 = flow_matching_reference(z2, t2, params, gelu_mode="tanh")
    assert out2.shape == (B2, P1)
    assert _rel_err(out2, ref2) < 5e-2, "case2: bf16/tanh mismatch"

    # --- Case 3: P-tiled path (wlr / winv / binv streamed in 256-wide P
    #     chunks, 3-D grid), bf16 z in / bf16 out (mem-bound regime), tanh GELU.
    P3, B3 = 512, 64
    params3 = cast_matmul_weights(init_params(k_p3, P3, H, R), jnp.bfloat16)
    z3 = jax.random.normal(jax.random.PRNGKey(3), (B3, P3), dtype=jnp.bfloat16)
    t3 = jax.random.uniform(jax.random.PRNGKey(4), (B3, 1), dtype=jnp.float32)
    out3 = jax.block_until_ready(
        flow_matching_forward(z3, t3, params3, p_chunk=256,
                              out_dtype=jnp.bfloat16, gelu_mode="tanh"))
    ref3 = flow_matching_reference(z3, t3, params3, gelu_mode="tanh")
    assert out3.shape == (B3, P3)
    assert _rel_err(out3, ref3) < 8e-2, "case3: tiled/bf16 mismatch"

    print("KERNEL_OK")
</pallas_src>

<mosaic_0001>
module attributes {stable_mosaic.version = 11 : i64} {
  func.func @_fused_kernel(%arg0: i32, %arg1: memref<8x256xf32, #tpu.memory_space<vmem>>, %arg2: memref<8x1xf32, #tpu.memory_space<vmem>>, %arg3: memref<1x32xf32, #tpu.memory_space<vmem>>, %arg4: memref<1x32xf32, #tpu.memory_space<vmem>>, %arg5: memref<32x64xf32, #tpu.memory_space<vmem>>, %arg6: memref<1x64xf32, #tpu.memory_space<vmem>>, %arg7: memref<256x128xf32, #tpu.memory_space<vmem>>, %arg8: memref<1x128xf32, #tpu.memory_space<vmem>>, %arg9: memref<128x256xf32, #tpu.memory_space<vmem>>, %arg10: memref<64x256xf32, #tpu.memory_space<vmem>>, %arg11: memref<1x256xf32, #tpu.memory_space<vmem>>, %arg12: memref<1x256xf32, #tpu.memory_space<vmem>>, %arg13: memref<1x256xf32, #tpu.memory_space<vmem>>, %arg14: memref<256x256xf32, #tpu.memory_space<vmem>>, %arg15: memref<1x256xf32, #tpu.memory_space<vmem>>, %arg16: memref<1x256xf32, #tpu.memory_space<vmem>>, %arg17: memref<1x256xf32, #tpu.memory_space<vmem>>, %arg18: memref<256x128xf32, #tpu.memory_space<vmem>>, %arg19: memref<1x128xf32, #tpu.memory_space<vmem>>, %arg20: memref<128x256xf32, #tpu.memory_space<vmem>>, %arg21: memref<1x256xf32, #tpu.memory_space<vmem>>, %arg22: memref<8x256xf32, #tpu.memory_space<vmem>>) attributes {dimension_semantics = [#tpu.dimension_semantics<parallel>], iteration_bounds = array<i64: 1>, scalar_prefetch = 0 : i64, scratch_operands = 0 : i64, tpu.core_type = #tpu.core_type<tc>, window_params = [{transform_indices = @transform_0, window_bounds = array<i64: 8, 256>}, {transform_indices = @transform_1, window_bounds = array<i64: 8, 1>}, {pipeline_mode = #tpu.pipeline_mode<synchronous>, transform_indices = @transform_2, window_bounds = array<i64: 1, 32>}, {pipeline_mode = #tpu.pipeline_mode<synchronous>, transform_indices = @transform_3, window_bounds = array<i64: 1, 32>}, {pipeline_mode = #tpu.pipeline_mode<synchronous>, transform_indices = @transform_4, window_bounds = array<i64: 32, 64>}, {pipeline_mode = #tpu.pipeline_mode<synchronous>, transform_indices = @transform_5, window_bounds = array<i64: 1, 64>}, {pipeline_mode = #tpu.pipeline_mode<synchronous>, transform_indices = @transform_6, window_bounds = array<i64: 256, 128>}, {pipeline_mode = #tpu.pipeline_mode<synchronous>, transform_indices = @transform_7, window_bounds = array<i64: 1, 128>}, {pipeline_mode = #tpu.pipeline_mode<synchronous>, transform_indices = @transform_8, window_bounds = array<i64: 128, 256>}, {pipeline_mode = #tpu.pipeline_mode<synchronous>, transform_indices = @transform_9, window_bounds = array<i64: 64, 256>}, {pipeline_mode = #tpu.pipeline_mode<synchronous>, transform_indices = @transform_10, window_bounds = array<i64: 1, 256>}, {pipeline_mode = #tpu.pipeline_mode<synchronous>, transform_indices = @transform_11, window_bounds = array<i64: 1, 256>}, {pipeline_mode = #tpu.pipeline_mode<synchronous>, transform_indices = @transform_12, window_bounds = array<i64: 1, 256>}, {pipeline_mode = #tpu.pipeline_mode<synchronous>, transform_indices = @transform_13, window_bounds = array<i64: 256, 256>}, {pipeline_mode = #tpu.pipeline_mode<synchronous>, transform_indices = @transform_14, window_bounds = array<i64: 1, 256>}, {pipeline_mode = #tpu.pipeline_mode<synchronous>, transform_indices = @transform_15, window_bounds = array<i64: 1, 256>}, {pipeline_mode = #tpu.pipeline_mode<synchronous>, transform_indices = @transform_16, window_bounds = array<i64: 1, 256>}, {pipeline_mode = #tpu.pipeline_mode<synchronous>, transform_indices = @transform_17, window_bounds = array<i64: 256, 128>}, {pipeline_mode = #tpu.pipeline_mode<synchronous>, transform_indices = @transform_18, window_bounds = array<i64: 1, 128>}, {pipeline_mode = #tpu.pipeline_mode<synchronous>, transform_indices = @transform_19, window_bounds = array<i64: 128, 256>}, {pipeline_mode = #tpu.pipeline_mode<synchronous>, transform_indices = @transform_20, window_bounds = array<i64: 1, 256>}, {transform_indices = @transform_21, window_bounds = array<i64: 8, 256>}]} {
    %c0 = arith.constant 0 : index
    %c0_0 = arith.constant 0 : index
    %0 = vector.load %arg2[%c0, %c0_0] : memref<8x1xf32, #tpu.memory_space<vmem>>, vector<8x1xf32>
    %c0_1 = arith.constant 0 : index
    %c0_2 = arith.constant 0 : index
    %1 = vector.load %arg3[%c0_1, %c0_2] : memref<1x32xf32, #tpu.memory_space<vmem>>, vector<1x32xf32>
    %c0_3 = arith.constant 0 : index
    %c0_4 = arith.constant 0 : index
    %2 = vector.load %arg4[%c0_3, %c0_4] : memref<1x32xf32, #tpu.memory_space<vmem>>, vector<1x32xf32>
    %c0_5 = arith.constant 0 : index
    %c0_6 = arith.constant 0 : index
    %3 = vector.load %arg5[%c0_5, %c0_6] : memref<32x64xf32, #tpu.memory_space<vmem>>, vector<32x64xf32>
    %c0_7 = arith.constant 0 : index
    %c0_8 = arith.constant 0 : index
    %4 = vector.load %arg6[%c0_7, %c0_8] : memref<1x64xf32, #tpu.memory_space<vmem>>, vector<1x64xf32>
    %5 = vector.broadcast %0 : vector<8x1xf32> to vector<8x32xf32>
    %6 = vector.broadcast %1 : vector<1x32xf32> to vector<8x32xf32>
    %7 = arith.mulf %5, %6 : vector<8x32xf32>
    %8 = vector.broadcast %2 : vector<1x32xf32> to vector<8x32xf32>
    %9 = arith.addf %7, %8 : vector<8x32xf32>
    %10 = arith.negf %9 : vector<8x32xf32>
    %11 = math.exp %10 : vector<8x32xf32>
    %cst = arith.constant 1.000000e+00 : f32
    %12 = vector.broadcast %cst : f32 to vector<8x32xf32>
    %13 = arith.addf %12, %11 : vector<8x32xf32>
    %14 = arith.divf %12, %13 : vector<8x32xf32>
    %15 = arith.mulf %9, %14 : vector<8x32xf32>
    %cst_9 = arith.constant dense<0.000000e+00> : vector<8x64xf32>
    %16 = tpu.matmul %15, %3, %cst_9 {dimension_numbers = #tpu.dot_dimension_numbers<[1], [0], [0], [1], [0, 0, 1, 1], [], []>} : vector<8x32xf32>, vector<32x64xf32>, vector<8x64xf32> -> vector<8x64xf32>
    %17 = vector.broadcast %4 : vector<1x64xf32> to vector<8x64xf32>
    %18 = arith.addf %16, %17 : vector<8x64xf32>
    %c0_10 = arith.constant 0 : index
    %c0_11 = arith.constant 0 : index
    %19 = vector.load %arg1[%c0_10, %c0_11] : memref<8x256xf32, #tpu.memory_space<vmem>>, vector<8x256xf32>
    %c0_12 = arith.constant 0 : index
    %c0_13 = arith.constant 0 : index
    %20 = vector.load %arg7[%c0_12, %c0_13] : memref<256x128xf32, #tpu.memory_space<vmem>>, vector<256x128xf32>
    %cst_14 = arith.constant dense<0.000000e+00> : vector<8x128xf32>
    %21 = tpu.matmul %19, %20, %cst_14 {dimension_numbers = #tpu.dot_dimension_numbers<[1], [0], [0], [1], [0, 0, 1, 1], [], []>} : vector<8x256xf32>, vector<256x128xf32>, vector<8x128xf32> -> vector<8x128xf32>
    %c0_15 = arith.constant 0 : index
    %c0_16 = arith.constant 0 : index
    %22 = vector.load %arg8[%c0_15, %c0_16] : memref<1x128xf32, #tpu.memory_space<vmem>>, vector<1x128xf32>
    %23 = vector.broadcast %22 : vector<1x128xf32> to vector<8x128xf32>
    %24 = arith.addf %21, %23 : vector<8x128xf32>
    %c0_17 = arith.constant 0 : index
    %c0_18 = arith.constant 0 : index
    %25 = vector.load %arg9[%c0_17, %c0_18] : memref<128x256xf32, #tpu.memory_space<vmem>>, vector<128x256xf32>
    %c0_19 = arith.constant 0 : index
    %c0_20 = arith.constant 0 : index
    %26 = vector.load %arg10[%c0_19, %c0_20] : memref<64x256xf32, #tpu.memory_space<vmem>>, vector<64x256xf32>
    %c0_21 = arith.constant 0 : index
    %c0_22 = arith.constant 0 : index
    %27 = vector.load %arg11[%c0_21, %c0_22] : memref<1x256xf32, #tpu.memory_space<vmem>>, vector<1x256xf32>
    %c0_23 = arith.constant 0 : index
    %c0_24 = arith.constant 0 : index
    %28 = vector.load %arg12[%c0_23, %c0_24] : memref<1x256xf32, #tpu.memory_space<vmem>>, vector<1x256xf32>
    %c0_25 = arith.constant 0 : index
    %c0_26 = arith.constant 0 : index
    %29 = vector.load %arg13[%c0_25, %c0_26] : memref<1x256xf32, #tpu.memory_space<vmem>>, vector<1x256xf32>
    %c0_27 = arith.constant 0 : index
    %c0_28 = arith.constant 0 : index
    %30 = vector.load %arg14[%c0_27, %c0_28] : memref<256x256xf32, #tpu.memory_space<vmem>>, vector<256x256xf32>
    %c0_29 = arith.constant 0 : index
    %c0_30 = arith.constant 0 : index
    %31 = vector.load %arg15[%c0_29, %c0_30] : memref<1x256xf32, #tpu.memory_space<vmem>>, vector<1x256xf32>
    %c0_31 = arith.constant 0 : index
    %c0_32 = arith.constant 0 : index
    %32 = vector.load %arg16[%c0_31, %c0_32] : memref<1x256xf32, #tpu.memory_space<vmem>>, vector<1x256xf32>
    %c0_33 = arith.constant 0 : index
    %c0_34 = arith.constant 0 : index
    %33 = vector.load %arg17[%c0_33, %c0_34] : memref<1x256xf32, #tpu.memory_space<vmem>>, vector<1x256xf32>
    %c0_35 = arith.constant 0 : index
    %c0_36 = arith.constant 0 : index
    %34 = vector.load %arg18[%c0_35, %c0_36] : memref<256x128xf32, #tpu.memory_space<vmem>>, vector<256x128xf32>
    %c0_37 = arith.constant 0 : index
    %c0_38 = arith.constant 0 : index
    %35 = vector.load %arg19[%c0_37, %c0_38] : memref<1x128xf32, #tpu.memory_space<vmem>>, vector<1x128xf32>
    %cst_39 = arith.constant dense<0.000000e+00> : vector<8x256xf32>
    %36 = tpu.matmul %24, %25, %cst_39 {dimension_numbers = #tpu.dot_dimension_numbers<[1], [0], [0], [1], [0, 0, 1, 1], [], []>} : vector<8x128xf32>, vector<128x256xf32>, vector<8x256xf32> -> vector<8x256xf32>
    %cst_40 = arith.constant dense<0.000000e+00> : vector<8x256xf32>
    %37 = tpu.matmul %18, %26, %cst_40 {dimension_numbers = #tpu.dot_dimension_numbers<[1], [0], [0], [1], [0, 0, 1, 1], [], []>} : vector<8x64xf32>, vector<64x256xf32>, vector<8x256xf32> -> vector<8x256xf32>
    %38 = arith.addf %36, %37 : vector<8x256xf32>
    %39 = vector.broadcast %27 : vector<1x256xf32> to vector<8x256xf32>
    %40 = arith.addf %38, %39 : vector<8x256xf32>
    %cst_41 = arith.constant dense<0.000000e+00> : vector<8xf32>
    %41 = vector.multi_reduction <add>, %40, %cst_41 [1] : vector<8x256xf32> to vector<8xf32>
    %42 = vector.shape_cast %41 : vector<8xf32> to vector<8x1xf32>
    %cst_42 = arith.constant 2.560000e+02 : f32
    %43 = vector.broadcast %cst_42 : f32 to vector<8x1xf32>
    %44 = arith.divf %42, %43 : vector<8x1xf32>
    %45 = vector.broadcast %44 : vector<8x1xf32> to vector<8x256xf32>
    %46 = arith.subf %40, %45 : vector<8x256xf32>
    %47 = arith.mulf %46, %46 : vector<8x256xf32>
    %cst_43 = arith.constant dense<0.000000e+00> : vector<8xf32>
    %48 = vector.multi_reduction <add>, %47, %cst_43 [1] : vector<8x256xf32> to vector<8xf32>
    %49 = vector.shape_cast %48 : vector<8xf32> to vector<8x1xf32>
    %cst_44 = arith.constant 2.560000e+02 : f32
    %50 = vector.broadcast %cst_44 : f32 to vector<8x1xf32>
    %51 = arith.divf %49, %50 : vector<8x1xf32>
    %52 = vector.broadcast %44 : vector<8x1xf32> to vector<8x256xf32>
    %53 = arith.subf %40, %52 : vector<8x256xf32>
    %cst_45 = arith.constant 9.99999974E-6 : f32
    %54 = vector.broadcast %cst_45 : f32 to vector<8x1xf32>
    %55 = arith.addf %51, %54 : vector<8x1xf32>
    %56 = math.rsqrt %55 : vector<8x1xf32>
    %57 = vector.broadcast %56 : vector<8x1xf32> to vector<8x256xf32>
    %58 = arith.mulf %53, %57 : vector<8x256xf32>
    %59 = vector.broadcast %28 : vector<1x256xf32> to vector<8x256xf32>
    %60 = arith.mulf %58, %59 : vector<8x256xf32>
    %61 = vector.broadcast %29 : vector<1x256xf32> to vector<8x256xf32>
    %62 = arith.addf %60, %61 : vector<8x256xf32>
    %cst_46 = arith.constant 5.000000e-01 : f32
    %63 = vector.broadcast %cst_46 : f32 to vector<8x256xf32>
    %64 = arith.mulf %63, %62 : vector<8x256xf32>
    %cst_47 = arith.constant 0.707106769 : f32
    %65 = vector.broadcast %cst_47 : f32 to vector<8x256xf32>
    %66 = arith.mulf %62, %65 : vector<8x256xf32>
    %67 = math.erf %66 : vector<8x256xf32>
    %cst_48 = arith.constant 1.000000e+00 : f32
    %68 = vector.broadcast %cst_48 : f32 to vector<8x256xf32>
    %69 = arith.addf %68, %67 : vector<8x256xf32>
    %70 = arith.mulf %64, %69 : vector<8x256xf32>
    %cst_49 = arith.constant dense<0.000000e+00> : vector<8x256xf32>
    %71 = tpu.matmul %70, %30, %cst_49 {dimension_numbers = #tpu.dot_dimension_numbers<[1], [0], [0], [1], [0, 0, 1, 1], [], []>} : vector<8x256xf32>, vector<256x256xf32>, vector<8x256xf32> -> vector<8x256xf32>
    %72 = vector.broadcast %31 : vector<1x256xf32> to vector<8x256xf32>
    %73 = arith.addf %71, %72 : vector<8x256xf32>
    %cst_50 = arith.constant dense<0.000000e+00> : vector<8xf32>
    %74 = vector.multi_reduction <add>, %73, %cst_50 [1] : vector<8x256xf32> to vector<8xf32>
    %75 = vector.shape_cast %74 : vector<8xf32> to vector<8x1xf32>
    %cst_51 = arith.constant 2.560000e+02 : f32
    %76 = vector.broadcast %cst_51 : f32 to vector<8x1xf32>
    %77 = arith.divf %75, %76 : vector<8x1xf32>
    %78 = vector.broadcast %77 : vector<8x1xf32> to vector<8x256xf32>
    %79 = arith.subf %73, %78 : vector<8x256xf32>
    %80 = arith.mulf %79, %79 : vector<8x256xf32>
    %cst_52 = arith.constant dense<0.000000e+00> : vector<8xf32>
    %81 = vector.multi_reduction <add>, %80, %cst_52 [1] : vector<8x256xf32> to vector<8xf32>
    %82 = vector.shape_cast %81 : vector<8xf32> to vector<8x1xf32>
    %cst_53 = arith.constant 2.560000e+02 : f32
    %83 = vector.broadcast %cst_53 : f32 to vector<8x1xf32>
    %84 = arith.divf %82, %83 : vector<8x1xf32>
    %85 = vector.broadcast %77 : vector<8x1xf32> to vector<8x256xf32>
    %86 = arith.subf %73, %85 : vector<8x256xf32>
    %cst_54 = arith.constant 9.99999974E-6 : f32
    %87 = vector.broadcast %cst_54 : f32 to vector<8x1xf32>
    %88 = arith.addf %84, %87 : vector<8x1xf32>
    %89 = math.rsqrt %88 : vector<8x1xf32>
    %90 = vector.broadcast %89 : vector<8x1xf32> to vector<8x256xf32>
    %91 = arith.mulf %86, %90 : vector<8x256xf32>
    %92 = vector.broadcast %32 : vector<1x256xf32> to vector<8x256xf32>
    %93 = arith.mulf %91, %92 : vector<8x256xf32>
    %94 = vector.broadcast %33 : vector<1x256xf32> to vector<8x256xf32>
    %95 = arith.addf %93, %94 : vector<8x256xf32>
    %cst_55 = arith.constant 5.000000e-01 : f32
    %96 = vector.broadcast %cst_55 : f32 to vector<8x256xf32>
    %97 = arith.mulf %96, %95 : vector<8x256xf32>
    %cst_56 = arith.constant 0.707106769 : f32
    %98 = vector.broadcast %cst_56 : f32 to vector<8x256xf32>
    %99 = arith.mulf %95, %98 : vector<8x256xf32>
    %100 = math.erf %99 : vector<8x256xf32>
    %cst_57 = arith.constant 1.000000e+00 : f32
    %101 = vector.broadcast %cst_57 : f32 to vector<8x256xf32>
    %102 = arith.addf %101, %100 : vector<8x256xf32>
    %103 = arith.mulf %97, %102 : vector<8x256xf32>
    %cst_58 = arith.constant dense<0.000000e+00> : vector<8x128xf32>
    %104 = tpu.matmul %103, %34, %cst_58 {dimension_numbers = #tpu.dot_dimension_numbers<[1], [0], [0], [1], [0, 0, 1, 1], [], []>} : vector<8x256xf32>, vector<256x128xf32>, vector<8x128xf32> -> vector<8x128xf32>
    %105 = vector.broadcast %35 : vector<1x128xf32> to vector<8x128xf32>
    %106 = arith.addf %104, %105 : vector<8x128xf32>
    %c0_59 = arith.constant 0 : index
    %c0_60 = arith.constant 0 : index
    %107 = vector.load %arg20[%c0_59, %c0_60] : memref<128x256xf32, #tpu.memory_space<vmem>>, vector<128x256xf32>
    %cst_61 = arith.constant dense<0.000000e+00> : vector<8x256xf32>
    %108 = tpu.matmul %106, %107, %cst_61 {dimension_numbers = #tpu.dot_dimension_numbers<[1], [0], [0], [1], [0, 0, 1, 1], [], []>} : vector<8x128xf32>, vector<128x256xf32>, vector<8x256xf32> -> vector<8x256xf32>
    %c0_62 = arith.constant 0 : index
    %c0_63 = arith.constant 0 : index
    %109 = vector.load %arg21[%c0_62, %c0_63] : memref<1x256xf32, #tpu.memory_space<vmem>>, vector<1x256xf32>
    %110 = vector.broadcast %109 : vector<1x256xf32> to vector<8x256xf32>
    %111 = arith.addf %108, %110 : vector<8x256xf32>
    %c0_64 = arith.constant 0 : index
    %c0_65 = arith.constant 0 : index
    %112 = vector.load %arg22[%c0_64, %c0_65] : memref<8x256xf32, #tpu.memory_space<vmem>>, vector<8x256xf32>
    tpu.vector_store %arg22[%c0_64, %c0_65], %111 {strides = array<i32>} : memref<8x256xf32, #tpu.memory_space<vmem>>, vector<8x256xf32>,
    return
  }
  func.func @transform_0(%arg0: i32) -> (i32, i32) {
    %c0_i32 = arith.constant 0 : i32
    %c0_i32_0 = arith.constant 0 : i32
    return %arg0, %c0_i32 : i32, i32
  }
  func.func @transform_1(%arg0: i32) -> (i32, i32) {
    %c0_i32 = arith.constant 0 : i32
    %c0_i32_0 = arith.constant 0 : i32
    return %arg0, %c0_i32 : i32, i32
  }
  func.func @transform_2(%arg0: i32) -> (i32, i32) {
    %c0_i32 = arith.constant 0 : i32
    %c0_i32_0 = arith.constant 0 : i32
    %c0_i32_1 = arith.constant 0 : i32
    return %c0_i32, %c0_i32_0 : i32, i32
  }
  func.func @transform_3(%arg0: i32) -> (i32, i32) {
    %c0_i32 = arith.constant 0 : i32
    %c0_i32_0 = arith.constant 0 : i32
    %c0_i32_1 = arith.constant 0 : i32
    return %c0_i32, %c0_i32_0 : i32, i32
  }
  func.func @transform_4(%arg0: i32) -> (i32, i32) {
    %c0_i32 = arith.constant 0 : i32
    %c0_i32_0 = arith.constant 0 : i32
    %c0_i32_1 = arith.constant 0 : i32
    return %c0_i32, %c0_i32_0 : i32, i32
  }
  func.func @transform_5(%arg0: i32) -> (i32, i32) {
    %c0_i32 = arith.constant 0 : i32
    %c0_i32_0 = arith.constant 0 : i32
    %c0_i32_1 = arith.constant 0 : i32
    return %c0_i32, %c0_i32_0 : i32, i32
  }
  func.func @transform_6(%arg0: i32) -> (i32, i32) {
    %c0_i32 = arith.constant 0 : i32
    %c0_i32_0 = arith.constant 0 : i32
    %c0_i32_1 = arith.constant 0 : i32
    return %c0_i32, %c0_i32_0 : i32, i32
  }
  func.func @transform_7(%arg0: i32) -> (i32, i32) {
    %c0_i32 = arith.constant 0 : i32
    %c0_i32_0 = arith.constant 0 : i32
    %c0_i32_1 = arith.constant 0 : i32
    return %c0_i32, %c0_i32_0 : i32, i32
  }
  func.func @transform_8(%arg0: i32) -> (i32, i32) {
    %c0_i32 = arith.constant 0 : i32
    %c0_i32_0 = arith.constant 0 : i32
    %c0_i32_1 = arith.constant 0 : i32
    return %c0_i32, %c0_i32_0 : i32, i32
  }
  func.func @transform_9(%arg0: i32) -> (i32, i32) {
    %c0_i32 = arith.constant 0 : i32
    %c0_i32_0 = arith.constant 0 : i32
    %c0_i32_1 = arith.constant 0 : i32
    return %c0_i32, %c0_i32_0 : i32, i32
  }
  func.func @transform_10(%arg0: i32) -> (i32, i32) {
    %c0_i32 = arith.constant 0 : i32
    %c0_i32_0 = arith.constant 0 : i32
    %c0_i32_1 = arith.constant 0 : i32
    return %c0_i32, %c0_i32_0 : i32, i32
  }
  func.func @transform_11(%arg0: i32) -> (i32, i32) {
    %c0_i32 = arith.constant 0 : i32
    %c0_i32_0 = arith.constant 0 : i32
    %c0_i32_1 = arith.constant 0 : i32
    return %c0_i32, %c0_i32_0 : i32, i32
  }
  func.func @transform_12(%arg0: i32) -> (i32, i32) {
    %c0_i32 = arith.constant 0 : i32
    %c0_i32_0 = arith.constant 0 : i32
    %c0_i32_1 = arith.constant 0 : i32
    return %c0_i32, %c0_i32_0 : i32, i32
  }
  func.func @transform_13(%arg0: i32) -> (i32, i32) {
    %c0_i32 = arith.constant 0 : i32
    %c0_i32_0 = arith.constant 0 : i32
    %c0_i32_1 = arith.constant 0 : i32
    return %c0_i32, %c0_i32_0 : i32, i32
  }
  func.func @transform_14(%arg0: i32) -> (i32, i32) {
    %c0_i32 = arith.constant 0 : i32
    %c0_i32_0 = arith.constant 0 : i32
    %c0_i32_1 = arith.constant 0 : i32
    return %c0_i32, %c0_i32_0 : i32, i32
  }
  func.func @transform_15(%arg0: i32) -> (i32, i32) {
    %c0_i32 = arith.constant 0 : i32
    %c0_i32_0 = arith.constant 0 : i32
    %c0_i32_1 = arith.constant 0 : i32
    return %c0_i32, %c0_i32_0 : i32, i32
  }
  func.func @transform_16(%arg0: i32) -> (i32, i32) {
    %c0_i32 = arith.constant 0 : i32
    %c0_i32_0 = arith.constant 0 : i32
    %c0_i32_1 = arith.constant 0 : i32
    return %c0_i32, %c0_i32_0 : i32, i32
  }
  func.func @transform_17(%arg0: i32) -> (i32, i32) {
    %c0_i32 = arith.constant 0 : i32
    %c0_i32_0 = arith.constant 0 : i32
    %c0_i32_1 = arith.constant 0 : i32
    return %c0_i32, %c0_i32_0 : i32, i32
  }
  func.func @transform_18(%arg0: i32) -> (i32, i32) {
    %c0_i32 = arith.constant 0 : i32
    %c0_i32_0 = arith.constant 0 : i32
    %c0_i32_1 = arith.constant 0 : i32
    return %c0_i32, %c0_i32_0 : i32, i32
  }
  func.func @transform_19(%arg0: i32) -> (i32, i32) {
    %c0_i32 = arith.constant 0 : i32
    %c0_i32_0 = arith.constant 0 : i32
    %c0_i32_1 = arith.constant 0 : i32
    return %c0_i32, %c0_i32_0 : i32, i32
  }
  func.func @transform_20(%arg0: i32) -> (i32, i32) {
    %c0_i32 = arith.constant 0 : i32
    %c0_i32_0 = arith.constant 0 : i32
    %c0_i32_1 = arith.constant 0 : i32
    return %c0_i32, %c0_i32_0 : i32, i32
  }
  func.func @transform_21(%arg0: i32) -> (i32, i32) {
    %c0_i32 = arith.constant 0 : i32
    %c0_i32_0 = arith.constant 0 : i32
    return %arg0, %c0_i32 : i32, i32
  }
}

module attributes {stable_mosaic.version = 11 : i64} {
  func.func @_fused_kernel(%arg0: i32, %arg1: memref<8x256xf32, #tpu.memory_space<vmem>>, %arg2: memref<8x1xf32, #tpu.memory_space<vmem>>, %arg3: memref<1x32xf32, #tpu.memory_space<vmem>>, %arg4: memref<1x32xf32, #tpu.memory_space<vmem>>, %arg5: memref<32x64xf32, #tpu.memory_space<vmem>>, %arg6: memref<1x64xf32, #tpu.memory_space<vmem>>, %arg7: memref<256x128xf32, #tpu.memory_space<vmem>>, %arg8: memref<1x128xf32, #tpu.memory_space<vmem>>, %arg9: memref<128x256xf32, #tpu.memory_space<vmem>>, %arg10: memref<64x256xf32, #tpu.memory_space<vmem>>, %arg11: memref<1x256xf32, #tpu.memory_space<vmem>>, %arg12: memref<1x256xf32, #tpu.memory_space<vmem>>, %arg13: memref<1x256xf32, #tpu.memory_space<vmem>>, %arg14: memref<256x256xf32, #tpu.memory_space<vmem>>, %arg15: memref<1x256xf32, #tpu.memory_space<vmem>>, %arg16: memref<1x256xf32, #tpu.memory_space<vmem>>, %arg17: memref<1x256xf32, #tpu.memory_space<vmem>>, %arg18: memref<256x128xf32, #tpu.memory_space<vmem>>, %arg19: memref<1x128xf32, #tpu.memory_space<vmem>>, %arg20: memref<128x256xf32, #tpu.memory_space<vmem>>, %arg21: memref<1x256xf32, #tpu.memory_space<vmem>>, %arg22: memref<8x256xf32, #tpu.memory_space<vmem>>) attributes {dimension_semantics = [#tpu.dimension_semantics<parallel>], iteration_bounds = array<i64: 1>, scalar_prefetch = 0 : i64, scratch_operands = 0 : i64, tpu.core_type = #tpu.core_type<tc>, window_params = [{transform_indices = @transform_0, window_bounds = array<i64: 8, 256>}, {transform_indices = @transform_1, window_bounds = array<i64: 8, 1>}, {pipeline_mode = #tpu.pipeline_mode<synchronous>, transform_indices = @transform_2, window_bounds = array<i64: 1, 32>}, {pipeline_mode = #tpu.pipeline_mode<synchronous>, transform_indices = @transform_3, window_bounds = array<i64: 1, 32>}, {pipeline_mode = #tpu.pipeline_mode<synchronous>, transform_indices = @transform_4, window_bounds = array<i64: 32, 64>}, {pipeline_mode = #tpu.pipeline_mode<synchronous>, transform_indices = @transform_5, window_bounds = array<i64: 1, 64>}, {pipeline_mode = #tpu.pipeline_mode<synchronous>, transform_indices = @transform_6, window_bounds = array<i64: 256, 128>}, {pipeline_mode = #tpu.pipeline_mode<synchronous>, transform_indices = @transform_7, window_bounds = array<i64: 1, 128>}, {pipeline_mode = #tpu.pipeline_mode<synchronous>, transform_indices = @transform_8, window_bounds = array<i64: 128, 256>}, {pipeline_mode = #tpu.pipeline_mode<synchronous>, transform_indices = @transform_9, window_bounds = array<i64: 64, 256>}, {pipeline_mode = #tpu.pipeline_mode<synchronous>, transform_indices = @transform_10, window_bounds = array<i64: 1, 256>}, {pipeline_mode = #tpu.pipeline_mode<synchronous>, transform_indices = @transform_11, window_bounds = array<i64: 1, 256>}, {pipeline_mode = #tpu.pipeline_mode<synchronous>, transform_indices = @transform_12, window_bounds = array<i64: 1, 256>}, {pipeline_mode = #tpu.pipeline_mode<synchronous>, transform_indices = @transform_13, window_bounds = array<i64: 256, 256>}, {pipeline_mode = #tpu.pipeline_mode<synchronous>, transform_indices = @transform_14, window_bounds = array<i64: 1, 256>}, {pipeline_mode = #tpu.pipeline_mode<synchronous>, transform_indices = @transform_15, window_bounds = array<i64: 1, 256>}, {pipeline_mode = #tpu.pipeline_mode<synchronous>, transform_indices = @transform_16, window_bounds = array<i64: 1, 256>}, {pipeline_mode = #tpu.pipeline_mode<synchronous>, transform_indices = @transform_17, window_bounds = array<i64: 256, 128>}, {pipeline_mode = #tpu.pipeline_mode<synchronous>, transform_indices = @transform_18, window_bounds = array<i64: 1, 128>}, {pipeline_mode = #tpu.pipeline_mode<synchronous>, transform_indices = @transform_19, window_bounds = array<i64: 128, 256>}, {pipeline_mode = #tpu.pipeline_mode<synchronous>, transform_indices = @transform_20, window_bounds = array<i64: 1, 256>}, {transform_indices = @transform_21, window_bounds = array<i64: 8, 256>}]} {
    %c0 = arith.constant 0 : index
    %c0_0 = arith.constant 0 : index
    %0 = vector.load %arg2[%c0, %c0_0] : memref<8x1xf32, #tpu.memory_space<vmem>>, vector<8x1xf32>
    %c0_1 = arith.constant 0 : index
    %c0_2 = arith.constant 0 : index
    %1 = vector.load %arg3[%c0_1, %c0_2] : memref<1x32xf32, #tpu.memory_space<vmem>>, vector<1x32xf32>
    %c0_3 = arith.constant 0 : index
    %c0_4 = arith.constant 0 : index
    %2 = vector.load %arg4[%c0_3, %c0_4] : memref<1x32xf32, #tpu.memory_space<vmem>>, vector<1x32xf32>
    %c0_5 = arith.constant 0 : index
    %c0_6 = arith.constant 0 : index
    %3 = vector.load %arg5[%c0_5, %c0_6] : memref<32x64xf32, #tpu.memory_space<vmem>>, vector<32x64xf32>
    %c0_7 = arith.constant 0 : index
    %c0_8 = arith.constant 0 : index
    %4 = vector.load %arg6[%c0_7, %c0_8] : memref<1x64xf32, #tpu.memory_space<vmem>>, vector<1x64xf32>
    %5 = vector.broadcast %0 : vector<8x1xf32> to vector<8x32xf32>
    %6 = vector.broadcast %1 : vector<1x32xf32> to vector<8x32xf32>
    %7 = arith.mulf %5, %6 : vector<8x32xf32>
    %8 = vector.broadcast %2 : vector<1x32xf32> to vector<8x32xf32>
    %9 = arith.addf %7, %8 : vector<8x32xf32>
    %10 = arith.negf %9 : vector<8x32xf32>
    %11 = math.exp %10 : vector<8x32xf32>
    %cst = arith.constant 1.000000e+00 : f32
    %12 = vector.broadcast %cst : f32 to vector<8x32xf32>
    %13 = arith.addf %12, %11 : vector<8x32xf32>
    %14 = arith.divf %12, %13 : vector<8x32xf32>
    %15 = arith.mulf %9, %14 : vector<8x32xf32>
    %cst_9 = arith.constant dense<0.000000e+00> : vector<8x64xf32>
    %16 = tpu.matmul %15, %3, %cst_9 {dimension_numbers = #tpu.dot_dimension_numbers<[1], [0], [0], [1], [0, 0, 1, 1], [], []>} : vector<8x32xf32>, vector<32x64xf32>, vector<8x64xf32> -> vector<8x64xf32>
    %17 = vector.broadcast %4 : vector<1x64xf32> to vector<8x64xf32>
    %18 = arith.addf %16, %17 : vector<8x64xf32>
    %c0_10 = arith.constant 0 : index
    %c0_11 = arith.constant 0 : index
    %19 = vector.load %arg1[%c0_10, %c0_11] : memref<8x256xf32, #tpu.memory_space<vmem>>, vector<8x256xf32>
    %c0_12 = arith.constant 0 : index
    %c0_13 = arith.constant 0 : index
    %20 = vector.load %arg7[%c0_12, %c0_13] : memref<256x128xf32, #tpu.memory_space<vmem>>, vector<256x128xf32>
    %cst_14 = arith.constant dense<0.000000e+00> : vector<8x128xf32>
    %21 = tpu.matmul %19, %20, %cst_14 {dimension_numbers = #tpu.dot_dimension_numbers<[1], [0], [0], [1], [0, 0, 1, 1], [], []>} : vector<8x256xf32>, vector<256x128xf32>, vector<8x128xf32> -> vector<8x128xf32>
    %c0_15 = arith.constant 0 : index
    %c0_16 = arith.constant 0 : index
    %22 = vector.load %arg8[%c0_15, %c0_16] : memref<1x128xf32, #tpu.memory_space<vmem>>, vector<1x128xf32>
    %23 = vector.broadcast %22 : vector<1x128xf32> to vector<8x128xf32>
    %24 = arith.addf %21, %23 : vector<8x128xf32>
    %c0_17 = arith.constant 0 : index
    %c0_18 = arith.constant 0 : index
    %25 = vector.load %arg9[%c0_17, %c0_18] : memref<128x256xf32, #tpu.memory_space<vmem>>, vector<128x256xf32>
    %c0_19 = arith.constant 0 : index
    %c0_20 = arith.constant 0 : index
    %26 = vector.load %arg10[%c0_19, %c0_20] : memref<64x256xf32, #tpu.memory_space<vmem>>, vector<64x256xf32>
    %c0_21 = arith.constant 0 : index
    %c0_22 = arith.constant 0 : index
    %27 = vector.load %arg11[%c0_21, %c0_22] : memref<1x256xf32, #tpu.memory_space<vmem>>, vector<1x256xf32>
    %c0_23 = arith.constant 0 : index
    %c0_24 = arith.constant 0 : index
    %28 = vector.load %arg12[%c0_23, %c0_24] : memref<1x256xf32, #tpu.memory_space<vmem>>, vector<1x256xf32>
    %c0_25 = arith.constant 0 : index
    %c0_26 = arith.constant 0 : index
    %29 = vector.load %arg13[%c0_25, %c0_26] : memref<1x256xf32, #tpu.memory_space<vmem>>, vector<1x256xf32>
    %c0_27 = arith.constant 0 : index
    %c0_28 = arith.constant 0 : index
    %30 = vector.load %arg14[%c0_27, %c0_28] : memref<256x256xf32, #tpu.memory_space<vmem>>, vector<256x256xf32>
    %c0_29 = arith.constant 0 : index
    %c0_30 = arith.constant 0 : index
    %31 = vector.load %arg15[%c0_29, %c0_30] : memref<1x256xf32, #tpu.memory_space<vmem>>, vector<1x256xf32>
    %c0_31 = arith.constant 0 : index
    %c0_32 = arith.constant 0 : index
    %32 = vector.load %arg16[%c0_31, %c0_32] : memref<1x256xf32, #tpu.memory_space<vmem>>, vector<1x256xf32>
    %c0_33 = arith.constant 0 : index
    %c0_34 = arith.constant 0 : index
    %33 = vector.load %arg17[%c0_33, %c0_34] : memref<1x256xf32, #tpu.memory_space<vmem>>, vector<1x256xf32>
    %c0_35 = arith.constant 0 : index
    %c0_36 = arith.constant 0 : index
    %34 = vector.load %arg18[%c0_35, %c0_36] : memref<256x128xf32, #tpu.memory_space<vmem>>, vector<256x128xf32>
    %c0_37 = arith.constant 0 : index
    %c0_38 = arith.constant 0 : index
    %35 = vector.load %arg19[%c0_37, %c0_38] : memref<1x128xf32, #tpu.memory_space<vmem>>, vector<1x128xf32>
    %cst_39 = arith.constant dense<0.000000e+00> : vector<8x256xf32>
    %36 = tpu.matmul %24, %25, %cst_39 {dimension_numbers = #tpu.dot_dimension_numbers<[1], [0], [0], [1], [0, 0, 1, 1], [], []>} : vector<8x128xf32>, vector<128x256xf32>, vector<8x256xf32> -> vector<8x256xf32>
    %cst_40 = arith.constant dense<0.000000e+00> : vector<8x256xf32>
    %37 = tpu.matmul %18, %26, %cst_40 {dimension_numbers = #tpu.dot_dimension_numbers<[1], [0], [0], [1], [0, 0, 1, 1], [], []>} : vector<8x64xf32>, vector<64x256xf32>, vector<8x256xf32> -> vector<8x256xf32>
    %38 = arith.addf %36, %37 : vector<8x256xf32>
    %39 = vector.broadcast %27 : vector<1x256xf32> to vector<8x256xf32>
    %40 = arith.addf %38, %39 : vector<8x256xf32>
    %cst_41 = arith.constant dense<0.000000e+00> : vector<8xf32>
    %41 = vector.multi_reduction <add>, %40, %cst_41 [1] : vector<8x256xf32> to vector<8xf32>
    %42 = vector.shape_cast %41 : vector<8xf32> to vector<8x1xf32>
    %cst_42 = arith.constant 2.560000e+02 : f32
    %43 = vector.broadcast %cst_42 : f32 to vector<8x1xf32>
    %44 = arith.divf %42, %43 : vector<8x1xf32>
    %45 = vector.broadcast %44 : vector<8x1xf32> to vector<8x256xf32>
    %46 = arith.subf %40, %45 : vector<8x256xf32>
    %47 = arith.mulf %46, %46 : vector<8x256xf32>
    %cst_43 = arith.constant dense<0.000000e+00> : vector<8xf32>
    %48 = vector.multi_reduction <add>, %47, %cst_43 [1] : vector<8x256xf32> to vector<8xf32>
    %49 = vector.shape_cast %48 : vector<8xf32> to vector<8x1xf32>
    %cst_44 = arith.constant 2.560000e+02 : f32
    %50 = vector.broadcast %cst_44 : f32 to vector<8x1xf32>
    %51 = arith.divf %49, %50 : vector<8x1xf32>
    %52 = vector.broadcast %44 : vector<8x1xf32> to vector<8x256xf32>
    %53 = arith.subf %40, %52 : vector<8x256xf32>
    %cst_45 = arith.constant 9.99999974E-6 : f32
    %54 = vector.broadcast %cst_45 : f32 to vector<8x1xf32>
    %55 = arith.addf %51, %54 : vector<8x1xf32>
    %56 = math.rsqrt %55 : vector<8x1xf32>
    %57 = vector.broadcast %56 : vector<8x1xf32> to vector<8x256xf32>
    %58 = arith.mulf %53, %57 : vector<8x256xf32>
    %59 = vector.broadcast %28 : vector<1x256xf32> to vector<8x256xf32>
    %60 = arith.mulf %58, %59 : vector<8x256xf32>
    %61 = vector.broadcast %29 : vector<1x256xf32> to vector<8x256xf32>
    %62 = arith.addf %60, %61 : vector<8x256xf32>
    %cst_46 = arith.constant 5.000000e-01 : f32
    %63 = vector.broadcast %cst_46 : f32 to vector<8x256xf32>
    %64 = arith.mulf %63, %62 : vector<8x256xf32>
    %cst_47 = arith.constant 0.707106769 : f32
    %65 = vector.broadcast %cst_47 : f32 to vector<8x256xf32>
    %66 = arith.mulf %62, %65 : vector<8x256xf32>
    %67 = math.erf %66 : vector<8x256xf32>
    %cst_48 = arith.constant 1.000000e+00 : f32
    %68 = vector.broadcast %cst_48 : f32 to vector<8x256xf32>
    %69 = arith.addf %68, %67 : vector<8x256xf32>
    %70 = arith.mulf %64, %69 : vector<8x256xf32>
    %cst_49 = arith.constant dense<0.000000e+00> : vector<8x256xf32>
    %71 = tpu.matmul %70, %30, %cst_49 {dimension_numbers = #tpu.dot_dimension_numbers<[1], [0], [0], [1], [0, 0, 1, 1], [], []>} : vector<8x256xf32>, vector<256x256xf32>, vector<8x256xf32> -> vector<8x256xf32>
    %72 = vector.broadcast %31 : vector<1x256xf32> to vector<8x256xf32>
    %73 = arith.addf %71, %72 : vector<8x256xf32>
    %cst_50 = arith.constant dense<0.000000e+00> : vector<8xf32>
    %74 = vector.multi_reduction <add>, %73, %cst_50 [1] : vector<8x256xf32> to vector<8xf32>
    %75 = vector.shape_cast %74 : vector<8xf32> to vector<8x1xf32>
    %cst_51 = arith.constant 2.560000e+02 : f32
    %76 = vector.broadcast %cst_51 : f32 to vector<8x1xf32>
    %77 = arith.divf %75, %76 : vector<8x1xf32>
    %78 = vector.broadcast %77 : vector<8x1xf32> to vector<8x256xf32>
    %79 = arith.subf %73, %78 : vector<8x256xf32>
    %80 = arith.mulf %79, %79 : vector<8x256xf32>
    %cst_52 = arith.constant dense<0.000000e+00> : vector<8xf32>
    %81 = vector.multi_reduction <add>, %80, %cst_52 [1] : vector<8x256xf32> to vector<8xf32>
    %82 = vector.shape_cast %81 : vector<8xf32> to vector<8x1xf32>
    %cst_53 = arith.constant 2.560000e+02 : f32
    %83 = vector.broadcast %cst_53 : f32 to vector<8x1xf32>
    %84 = arith.divf %82, %83 : vector<8x1xf32>
    %85 = vector.broadcast %77 : vector<8x1xf32> to vector<8x256xf32>
    %86 = arith.subf %73, %85 : vector<8x256xf32>
    %cst_54 = arith.constant 9.99999974E-6 : f32
    %87 = vector.broadcast %cst_54 : f32 to vector<8x1xf32>
    %88 = arith.addf %84, %87 : vector<8x1xf32>
    %89 = math.rsqrt %88 : vector<8x1xf32>
    %90 = vector.broadcast %89 : vector<8x1xf32> to vector<8x256xf32>
    %91 = arith.mulf %86, %90 : vector<8x256xf32>
    %92 = vector.broadcast %32 : vector<1x256xf32> to vector<8x256xf32>
    %93 = arith.mulf %91, %92 : vector<8x256xf32>
    %94 = vector.broadcast %33 : vector<1x256xf32> to vector<8x256xf32>
    %95 = arith.addf %93, %94 : vector<8x256xf32>
    %cst_55 = arith.constant 5.000000e-01 : f32
    %96 = vector.broadcast %cst_55 : f32 to vector<8x256xf32>
    %97 = arith.mulf %96, %95 : vector<8x256xf32>
    %cst_56 = arith.constant 0.707106769 : f32
    %98 = vector.broadcast %cst_56 : f32 to vector<8x256xf32>
    %99 = arith.mulf %95, %98 : vector<8x256xf32>
    %100 = math.erf %99 : vector<8x256xf32>
    %cst_57 = arith.constant 1.000000e+00 : f32
    %101 = vector.broadcast %cst_57 : f32 to vector<8x256xf32>
    %102 = arith.addf %101, %100 : vector<8x256xf32>
    %103 = arith.mulf %97, %102 : vector<8x256xf32>
    %cst_58 = arith.constant dense<0.000000e+00> : vector<8x128xf32>
    %104 = tpu.matmul %103, %34, %cst_58 {dimension_numbers = #tpu.dot_dimension_numbers<[1], [0], [0], [1], [0, 0, 1, 1], [], []>} : vector<8x256xf32>, vector<256x128xf32>, vector<8x128xf32> -> vector<8x128xf32>
    %105 = vector.broadcast %35 : vector<1x128xf32> to vector<8x128xf32>
    %106 = arith.addf %104, %105 : vector<8x128xf32>
    %c0_59 = arith.constant 0 : index
    %c0_60 = arith.constant 0 : index
    %107 = vector.load %arg20[%c0_59, %c0_60] : memref<128x256xf32, #tpu.memory_space<vmem>>, vector<128x256xf32>
    %cst_61 = arith.constant dense<0.000000e+00> : vector<8x256xf32>
    %108 = tpu.matmul %106, %107, %cst_61 {dimension_numbers = #tpu.dot_dimension_numbers<[1], [0], [0], [1], [0, 0, 1, 1], [], []>} : vector<8x128xf32>, vector<128x256xf32>, vector<8x256xf32> -> vector<8x256xf32>
    %c0_62 = arith.constant 0 : index
    %c0_63 = arith.constant 0 : index
    %109 = vector.load %arg21[%c0_62, %c0_63] : memref<1x256xf32, #tpu.memory_space<vmem>>, vector<1x256xf32>
    %110 = vector.broadcast %109 : vector<1x256xf32> to vector<8x256xf32>
    %111 = arith.addf %108, %110 : vector<8x256xf32>
    %c0_64 = arith.constant 0 : index
    %c0_65 = arith.constant 0 : index
    %112 = vector.load %arg22[%c0_64, %c0_65] : memref<8x256xf32, #tpu.memory_space<vmem>>, vector<8x256xf32>
    tpu.vector_store %arg22[%c0_64, %c0_65], %111 {strides = array<i32>} : memref<8x256xf32, #tpu.memory_space<vmem>>, vector<8x256xf32>,
    return
  }
  func.func @transform_0(%arg0: i32) -> (i32, i32) {
    %c0_i32 = arith.constant 0 : i32
    %c0_i32_0 = arith.constant 0 : i32
    return %arg0, %c0_i32 : i32, i32
  }
  func.func @transform_1(%arg0: i32) -> (i32, i32) {
    %c0_i32 = arith.constant 0 : i32
    %c0_i32_0 = arith.constant 0 : i32
    return %arg0, %c0_i32 : i32, i32
  }
  func.func @transform_2(%arg0: i32) -> (i32, i32) {
    %c0_i32 = arith.constant 0 : i32
    %c0_i32_0 = arith.constant 0 : i32
    %c0_i32_1 = arith.constant 0 : i32
    return %c0_i32, %c0_i32_0 : i32, i32
  }
  func.func @transform_3(%arg0: i32) -> (i32, i32) {
    %c0_i32 = arith.constant 0 : i32
    %c0_i32_0 = arith.constant 0 : i32
    %c0_i32_1 = arith.constant 0 : i32
    return %c0_i32, %c0_i32_0 : i32, i32
  }
  func.func @transform_4(%arg0: i32) -> (i32, i32) {
    %c0_i32 = arith.constant 0 : i32
    %c0_i32_0 = arith.constant 0 : i32
    %c0_i32_1 = arith.constant 0 : i32
    return %c0_i32, %c0_i32_0 : i32, i32
  }
  func.func @transform_5(%arg0: i32) -> (i32, i32) {
    %c0_i32 = arith.constant 0 : i32
    %c0_i32_0 = arith.constant 0 : i32
    %c0_i32_1 = arith.constant 0 : i32
    return %c0_i32, %c0_i32_0 : i32, i32
  }
  func.func @transform_6(%arg0: i32) -> (i32, i32) {
    %c0_i32 = arith.constant 0 : i32
    %c0_i32_0 = arith.constant 0 : i32
    %c0_i32_1 = arith.constant 0 : i32
    return %c0_i32, %c0_i32_0 : i32, i32
  }
  func.func @transform_7(%arg0: i32) -> (i32, i32) {
    %c0_i32 = arith.constant 0 : i32
    %c0_i32_0 = arith.constant 0 : i32
    %c0_i32_1 = arith.constant 0 : i32
    return %c0_i32, %c0_i32_0 : i32, i32
  }
  func.func @transform_8(%arg0: i32) -> (i32, i32) {
    %c0_i32 = arith.constant 0 : i32
    %c0_i32_0 = arith.constant 0 : i32
    %c0_i32_1 = arith.constant 0 : i32
    return %c0_i32, %c0_i32_0 : i32, i32
  }
  func.func @transform_9(%arg0: i32) -> (i32, i32) {
    %c0_i32 = arith.constant 0 : i32
    %c0_i32_0 = arith.constant 0 : i32
    %c0_i32_1 = arith.constant 0 : i32
    return %c0_i32, %c0_i32_0 : i32, i32
  }
  func.func @transform_10(%arg0: i32) -> (i32, i32) {
    %c0_i32 = arith.constant 0 : i32
    %c0_i32_0 = arith.constant 0 : i32
    %c0_i32_1 = arith.constant 0 : i32
    return %c0_i32, %c0_i32_0 : i32, i32
  }
  func.func @transform_11(%arg0: i32) -> (i32, i32) {
    %c0_i32 = arith.constant 0 : i32
    %c0_i32_0 = arith.constant 0 : i32
    %c0_i32_1 = arith.constant 0 : i32
    return %c0_i32, %c0_i32_0 : i32, i32
  }
  func.func @transform_12(%arg0: i32) -> (i32, i32) {
    %c0_i32 = arith.constant 0 : i32
    %c0_i32_0 = arith.constant 0 : i32
    %c0_i32_1 = arith.constant 0 : i32
    return %c0_i32, %c0_i32_0 : i32, i32
  }
  func.func @transform_13(%arg0: i32) -> (i32, i32) {
    %c0_i32 = arith.constant 0 : i32
    %c0_i32_0 = arith.constant 0 : i32
    %c0_i32_1 = arith.constant 0 : i32
    return %c0_i32, %c0_i32_0 : i32, i32
  }
  func.func @transform_14(%arg0: i32) -> (i32, i32) {
    %c0_i32 = arith.constant 0 : i32
    %c0_i32_0 = arith.constant 0 : i32
    %c0_i32_1 = arith.constant 0 : i32
    return %c0_i32, %c0_i32_0 : i32, i32
  }
  func.func @transform_15(%arg0: i32) -> (i32, i32) {
    %c0_i32 = arith.constant 0 : i32
    %c0_i32_0 = arith.constant 0 : i32
    %c0_i32_1 = arith.constant 0 : i32
    return %c0_i32, %c0_i32_0 : i32, i32
  }
  func.func @transform_16(%arg0: i32) -> (i32, i32) {
    %c0_i32 = arith.constant 0 : i32
    %c0_i32_0 = arith.constant 0 : i32
    %c0_i32_1 = arith.constant 0 : i32
    return %c0_i32, %c0_i32_0 : i32, i32
  }
  func.func @transform_17(%arg0: i32) -> (i32, i32) {
    %c0_i32 = arith.constant 0 : i32
    %c0_i32_0 = arith.constant 0 : i32
    %c0_i32_1 = arith.constant 0 : i32
    return %c0_i32, %c0_i32_0 : i32, i32
  }
  func.func @transform_18(%arg0: i32) -> (i32, i32) {
    %c0_i32 = arith.constant 0 : i32
    %c0_i32_0 = arith.constant 0 : i32
    %c0_i32_1 = arith.constant 0 : i32
    return %c0_i32, %c0_i32_0 : i32, i32
  }
  func.func @transform_19(%arg0: i32) -> (i32, i32) {
    %c0_i32 = arith.constant 0 : i32
    %c0_i32_0 = arith.constant 0 : i32
    %c0_i32_1 = arith.constant 0 : i32
    return %c0_i32, %c0_i32_0 : i32, i32
  }
  func.func @transform_20(%arg0: i32) -> (i32, i32) {
    %c0_i32 = arith.constant 0 : i32
    %c0_i32_0 = arith.constant 0 : i32
    %c0_i32_1 = arith.constant 0 : i32
    return %c0_i32, %c0_i32_0 : i32, i32
  }
  func.func @transform_21(%arg0: i32) -> (i32, i32) {
    %c0_i32 = arith.constant 0 : i32
    %c0_i32_0 = arith.constant 0 : i32
    return %arg0, %c0_i32 : i32, i32
  }
}

</mosaic_0001>

<bundles_post_ra>
// kernel: tpu_custom_call.1
= control target key start
LH: loop header
LB: loop body
LE: loop exit
PB: predicated region body
PF: predicated region fallthrough
CT: control target
= control target key end

     0   :  { %s2015_s0 = inlined_call_operand.hbm [shape: f32[8,256], index: 0, kind: input, shape index: {}]   ;;  %s2016_s1 = inlined_call_operand.vmem [shape: f32[8,1], index: 1, kind: input, shape index: {}]   ;;  %s2017_s2 = inlined_call_operand.vmem [shape: f32[1,32], index: 2, kind: input, shape index: {}]   ;;  %s2018_s3 = inlined_call_operand.vmem [shape: f32[1,32], index: 3, kind: input, shape index: {}]   ;;  %s2019_s4 = inlined_call_operand.hbm [shape: f32[32,64], index: 4, kind: input, shape index: {}]   ;;  %s2020_s5 = inlined_call_operand.vmem [shape: f32[1,64], index: 5, kind: input, shape index: {}]   ;;  %s2021_s6 = inlined_call_operand.hbm [shape: f32[256,128], index: 6, kind: input, shape index: {}]   ;;  %s2022_s7 = inlined_call_operand.vmem [shape: f32[1,128], index: 7, kind: input, shape index: {}]   ;;  %s2023_s8 = inlined_call_operand.hbm [shape: f32[128,256], index: 8, kind: input, shape index: {}]   ;;  %s2024_s9 = inlined_call_operand.hbm [shape: f32[64,256], index: 9, kind: input, shape index: {}]   ;;  %s2025_s10 = inlined_call_operand.vmem [shape: f32[1,256], index: 10, kind: input, shape index: {}]   ;;  %s2026_s11 = inlined_call_operand.vmem [shape: f32[1,256], index: 11, kind: input, shape index: {}]   ;;  %s2027_s12 = inlined_call_operand.vmem [shape: f32[1,256], index: 12, kind: input, shape index: {}]   ;;  %s2028_s13 = inlined_call_operand.hbm [shape: f32[256,256], index: 13, kind: input, shape index: {}]   ;;  %s2029_s14 = inlined_call_operand.vmem [shape: f32[1,256], index: 14, kind: input, shape index: {}]   ;;  %s2030_s15 = inlined_call_operand.vmem [shape: f32[1,256], index: 15, kind: input, shape index: {}]   ;;  %s2031_s16 = inlined_call_operand.vmem [shape: f32[1,256], index: 16, kind: input, shape index: {}]   ;;  %s2032_s17 = inlined_call_operand.hbm [shape: f32[256,128], index: 17, kind: input, shape index: {}]   ;;  %s2033_s18 = inlined_call_operand.vmem [shape: f32[1,128], index: 18, kind: input, shape index: {}]   ;;  %s2034_s19 = inlined_call_operand.hbm [shape: f32[128,256], index: 19, kind: input, shape index: {}]   ;;  %s2035_s20 = inlined_call_operand.vmem [shape: f32[1,256], index: 20, kind: input, shape index: {}]   ;;  %s2036_s21 = inlined_call_operand.hbm [shape: f32[8,256], index: 21, kind: output, shape index: {}]  }
   0x1   :  { %2044 = sst [smem:[#allocation23_spill]] %s2015_s0 }
   0x2   :  { %2045 = sst [smem:[#allocation24_spill]] %s2016_s1 }
   0x3   :  { %2046 = sst [smem:[#allocation25_spill]] %s2017_s2 }
   0x4   :  { %2047 = sst [smem:[#allocation26_spill]] %s2018_s3 }
   0x5   :  { %2048 = sst [smem:[#allocation27_spill]] %s2019_s4 }
   0x6   :  { %2049 = sst [smem:[#allocation28_spill]] %s2020_s5 }
   0x7   :  { %2050 = sst [smem:[#allocation29_spill]] %s2036_s21 }
   0x8   :  { %26 = vsyncpa [#allocation3], 0 }
   0x9   :  { %27 = vsyncpa [#allocation6], 0 }
   0xa   :  { %28 = vsyncpa [#allocation9], 0 }
   0xb   :  { %29 = vsyncpa [#allocation12], 0 }
   0xc   :  { %30 = vsyncpa [#allocation15], 0 }
   0xd   :  { %31 = vsyncpa [#allocation4], 0  ;;  %s1664_s2 = smov [#allocation5]   ;;  %s2051_s3 = sld [smem:[#allocation27_spill]] }
   0xe   :  { %s53_s25 = sshll.u32 %s1664_s2, 4  ;;  %s54_s25 = int_to_ptr.vmem [resolvable:$true] %s53_s25 }
  0x13   :  { %s1454_s28 = scalar_lea.hbm %s2051_s3, 512 }
  0x14   :  { %p1455_p0 = scmp.ne.s32.totalorder %s2051_s3, %s1454_s28  ;;  %p1458_p1 = scmp.lt.u32.totalorder %s1454_s28, %s2051_s3 }
  0x16   :  { %p1460_p2 = pnand %p1458_p1, %p1455_p0 }
  0x18   :  { %1463 = shalt.err (!%p1460_p2)
}
  0x19   :  { %s1464_s5 = scalar_lea.vmem %s54_s25, 512  ;;  %p1469_p4 = scmp.lt.s32.totalorder %s54_s25, %s54_s25 }
  0x1a   :  { %p1465_p3 = scmp.ne.s32.totalorder %s54_s25, %s1464_s5  ;;  %p1470_p5 = scmp.lt.s32.totalorder %s1464_s5, %s1464_s5 }
  0x1c   :  { %p1471_p6 = por %p1470_p5, %p1469_p4 }
  0x1e   :  { %p1472_p7 = pnand %p1471_p6, %p1465_p3 }
  0x20   :  { %1475 = shalt.err (!%p1472_p7)
}
  0x21   :  { %s2040_s22 = smov 128   ;;  %s2042_s23 = smov 8  }
  0x22   :  { %59 = dma.hbm_to_vmem [thread:$0]  %s2051_s3, 512, %s54_s25, [#allocation6], %s2040_s22, %s2040_s22, %s2042_s23  }
  0x23   :  { %s1667_s2 = smov [#allocation8]   ;;  %s1476_s29 = scalar_lea.hbm %s2023_s8, 4096 }
  0x24   :  { %s81_s26 = sshll.u32 %s1667_s2, 4  ;;  %p1477_p8 = scmp.ne.s32.totalorder %s2023_s8, %s1476_s29  ;;  %s82_s26 = int_to_ptr.vmem [resolvable:$true] %s81_s26 }
  0x25   :  { %p1480_p9 = scmp.lt.u32.totalorder %s1476_s29, %s2023_s8 }
  0x27   :  { %p1482_p10 = pnand %p1480_p9, %p1477_p8 }
  0x29   :  { %1485 = shalt.err (!%p1482_p10)
}
  0x2a   :  { %s1486_s21 = scalar_lea.vmem %s82_s26, 4096  ;;  %p1491_p12 = scmp.lt.s32.totalorder %s82_s26, %s82_s26 }
  0x2b   :  { %p1487_p11 = scmp.ne.s32.totalorder %s82_s26, %s1486_s21  ;;  %p1492_p13 = scmp.lt.s32.totalorder %s1486_s21, %s1486_s21 }
  0x2d   :  { %p1493_p0 = por %p1492_p13, %p1491_p12 }
  0x2f   :  { %p1494_p1 = pnand %p1493_p0, %p1487_p11 }
  0x31   :  { %1497 = shalt.err (!%p1494_p1)
}
  0x32   :  { %s1668_s25 = smov 256   ;;  %s1669_s3 = smov 16  }
  0x33   :  { %87 = dma.hbm_to_vmem [thread:$0]  %s2023_s8, 4096, %s82_s26, [#allocation9], %s1668_s25, %s1668_s25, %s1669_s3  }
  0x34   :  { %s1670_s2 = smov [#allocation11]   ;;  %s1671_s28 = smov [#allocation2]  }
  0x35   :  { %s111_s27 = sshll.u32 %s1670_s2, 4  ;;  %s38_s29 = sshll.u32 %s1671_s28, 4  ;;  %s112_s27 = int_to_ptr.vmem [resolvable:$true] %s111_s27  ;;  %s39_s29 = int_to_ptr.vmem [resolvable:$true] %s38_s29 }
  0x36   :  { %s1498_s4 = scalar_lea.hbm %s2028_s13, 8192 }
  0x37   :  { %p1499_p2 = scmp.ne.s32.totalorder %s2028_s13, %s1498_s4  ;;  %p1502_p3 = scmp.lt.u32.totalorder %s1498_s4, %s2028_s13 }
  0x39   :  { %p1504_p4 = pnand %p1502_p3, %p1499_p2 }
  0x3b   :  { %1507 = shalt.err (!%p1504_p4)
}
  0x3c   :  { %s1508_s8 = scalar_lea.vmem %s112_s27, 8192  ;;  %p1513_p6 = scmp.lt.s32.totalorder %s112_s27, %s112_s27 }
  0x3d   :  { %p1509_p5 = scmp.ne.s32.totalorder %s112_s27, %s1508_s8  ;;  %p1514_p7 = scmp.lt.s32.totalorder %s1508_s8, %s1508_s8 }
  0x3f   :  { %p1515_p8 = por %p1514_p7, %p1513_p6 }
  0x41   :  { %p1516_p9 = pnand %p1515_p8, %p1509_p5 }
  0x43   :  { %1519 = shalt.err (!%p1516_p9)
}
  0x44   :  { %117 = dma.hbm_to_vmem [thread:$0]  %s2028_s13, 8192, %s112_s27, [#allocation12], %s1668_s25, %s1668_s25, %s1669_s3  }
  0x45   :  { %s2052_s22 = sld [smem:[#allocation23_spill]] }
  0x4b   :  { %s1520_s23 = scalar_lea.hbm %s2052_s22, 256 }
  0x4c   :  { %p1521_p10 = scmp.ne.s32.totalorder %s2052_s22, %s1520_s23  ;;  %p1524_p11 = scmp.lt.u32.totalorder %s1520_s23, %s2052_s22 }
  0x4e   :  { %p1526_p12 = pnand %p1524_p11, %p1521_p10 }
  0x50   :  { %1529 = shalt.err (!%p1526_p12)
}
  0x51   :  { %s1530_s30 = scalar_lea.vmem %s39_s29, 256  ;;  %p1535_p0 = scmp.lt.s32.totalorder %s39_s29, %s39_s29 }
  0x52   :  { %p1531_p13 = scmp.ne.s32.totalorder %s39_s29, %s1530_s30  ;;  %p1536_p1 = scmp.lt.s32.totalorder %s1530_s30, %s1530_s30 }
  0x54   :  { %p1537_p2 = por %p1536_p1, %p1535_p0 }
  0x56   :  { %p1538_p3 = pnand %p1537_p2, %p1531_p13 }
  0x58   :  { %1541 = shalt.err (!%p1538_p3)
}
  0x59   :  { %41 = dma.hbm_to_vmem [thread:$0]  %s2052_s22, 256, %s39_s29, [#allocation3]  }
  0x5a   :  { %s1672_s5 = smov [#allocation7]   ;;  %s1673_s26 = smov [#allocation10]  }
  0x5b   :  { %s67_s8 = sshll.u32 %s1672_s5, 4  ;;  %s93_s1 = sshll.u32 %s1673_s26, 4  ;;  %s68_s8 = int_to_ptr.vmem [resolvable:$true] %s67_s8  ;;  %s1848_s1 = int_to_ptr.vmem [resolvable:$true] %s93_s1 }
  0x5c   :  { %s1542_s23 = scalar_lea.hbm %s2021_s6, 4096 }
  0x5d   :  { %p1543_p4 = scmp.ne.s32.totalorder %s2021_s6, %s1542_s23  ;;  %p1546_p5 = scmp.lt.u32.totalorder %s1542_s23, %s2021_s6 }
  0x5f   :  { %p1548_p6 = pnand %p1546_p5, %p1543_p4 }
  0x61   :  { %1551 = shalt.err (!%p1548_p6)
}
  0x62   :  { %s1552_s29 = scalar_lea.vmem %s68_s8, 4096  ;;  %p1557_p8 = scmp.lt.s32.totalorder %s68_s8, %s68_s8 }
  0x63   :  { %p1553_p7 = scmp.ne.s32.totalorder %s68_s8, %s1552_s29  ;;  %p1558_p9 = scmp.lt.s32.totalorder %s1552_s29, %s1552_s29 }
  0x65   :  { %p1559_p10 = por %p1558_p9, %p1557_p8 }
  0x67   :  { %p1560_p11 = pnand %p1559_p10, %p1553_p7 }
  0x69   :  { %1563 = shalt.err (!%p1560_p11)
}
  0x6a   :  { %s2053_s22 = smov 8   ;;  %s2054_s30 = smov 128  }
  0x6b   :  { %73 = dma.hbm_to_vmem [thread:$0]  %s2021_s6, 4096, %s68_s8, [#allocation6], %s2054_s30, %s2054_s30, %s2053_s22  }
  0x6c   :  { %s1564_s24 = scalar_lea.hbm %s2024_s9, 2048 }
  0x6d   :  { %p1565_p12 = scmp.ne.s32.totalorder %s2024_s9, %s1564_s24  ;;  %p1568_p13 = scmp.lt.u32.totalorder %s1564_s24, %s2024_s9 }
  0x6f   :  { %p1570_p0 = pnand %p1568_p13, %p1565_p12 }
  0x71   :  { %1573 = shalt.err (!%p1570_p0)
}
  0x72   :  { %s1574_s21 = scalar_lea.vmem %s1848_s1, 2048  ;;  %p1579_p2 = scmp.lt.s32.totalorder %s1848_s1, %s1848_s1 }
  0x73   :  { %p1575_p1 = scmp.ne.s32.totalorder %s1848_s1, %s1574_s21  ;;  %p1580_p3 = scmp.lt.s32.totalorder %s1574_s21, %s1574_s21 }
  0x75   :  { %p1581_p4 = por %p1580_p3, %p1579_p2 }
  0x77   :  { %p1582_p5 = pnand %p1581_p4, %p1575_p1 }
  0x79   :  { %1585 = shalt.err (!%p1582_p5)
}
  0x7a   :  { %99 = dma.hbm_to_vmem [thread:$0]  %s2024_s9, 2048, %s1848_s1, [#allocation9], %s1668_s25, %s1668_s25, %s1669_s3  }
  0x7b   :  { %s1674_s4 = smov [#allocation13]   ;;  %s1675_s13 = smov [#allocation14]  }
  0x7c   :  { %s129_s29 = sshll.u32 %s1674_s4, 4  ;;  %s143_s27 = sshll.u32 %s1675_s13, 4  ;;  %s130_s29 = int_to_ptr.vmem [resolvable:$true] %s129_s29  ;;  %s1885_s27 = int_to_ptr.vmem [resolvable:$true] %s143_s27 }
  0x7d   :  { %s1586_s24 = scalar_lea.hbm %s2032_s17, 4096 }
  0x7e   :  { %p1587_p6 = scmp.ne.s32.totalorder %s2032_s17, %s1586_s24  ;;  %p1590_p7 = scmp.lt.u32.totalorder %s1586_s24, %s2032_s17 }
  0x80   :  { %p1592_p8 = pnand %p1590_p7, %p1587_p6 }
  0x82   :  { %1595 = shalt.err (!%p1592_p8)
}
  0x83   :  { %s1596_s9 = scalar_lea.vmem %s130_s29, 4096  ;;  %p1601_p10 = scmp.lt.s32.totalorder %s130_s29, %s130_s29 }
  0x84   :  { %p1597_p9 = scmp.ne.s32.totalorder %s130_s29, %s1596_s9  ;;  %p1602_p11 = scmp.lt.s32.totalorder %s1596_s9, %s1596_s9 }
  0x86   :  { %p1603_p12 = por %p1602_p11, %p1601_p10 }
  0x88   :  { %p1604_p13 = pnand %p1603_p12, %p1597_p9 }
  0x8a   :  { %1607 = shalt.err (!%p1604_p13)
}
  0x8b   :  { %135 = dma.hbm_to_vmem [thread:$0]  %s2032_s17, 4096, %s130_s29, [#allocation12], %s2054_s30, %s2054_s30, %s2053_s22  }
  0x8c   :  { %s1608_s4 = scalar_lea.hbm %s2034_s19, 4096 }
  0x8d   :  { %p1609_p0 = scmp.ne.s32.totalorder %s2034_s19, %s1608_s4  ;;  %p1612_p1 = scmp.lt.u32.totalorder %s1608_s4, %s2034_s19 }
  0x8f   :  { %p1614_p2 = pnand %p1612_p1, %p1609_p0 }
  0x91   :  { %1617 = shalt.err (!%p1614_p2)
}
  0x92   :  { %s1618_s2 = scalar_lea.vmem %s1885_s27, 4096  ;;  %p1623_p4 = scmp.lt.s32.totalorder %s1885_s27, %s1885_s27 }
  0x93   :  { %p1619_p3 = scmp.ne.s32.totalorder %s1885_s27, %s1618_s2  ;;  %p1624_p5 = scmp.lt.s32.totalorder %s1618_s2, %s1618_s2 }
  0x95   :  { %p1625_p6 = por %p1624_p5, %p1623_p4 }
  0x97   :  { %p1626_p7 = pnand %p1625_p6, %p1619_p3 }
  0x99   :  { %1629 = shalt.err (!%p1626_p7)
}
  0x9a   :  { %149 = dma.hbm_to_vmem [thread:$0]  %s2034_s19, 4096, %s1885_s27, [#allocation15], %s1668_s25, %s1668_s25, %s1669_s3  }
  0x9b   :  { %1652 = dma.done.wait [#allocation3], 256  }
  0x9c   :  { %1653 = vsyncadd [#allocation3], 4294967040 }
  0x9d   :  { %1654 = dma.done.wait [#allocation6], 4608  }
  0x9e   :  { %1655 = vsyncadd [#allocation6], 4294962688 }
  0x9f   :  { %1656 = dma.done.wait [#allocation9], 6144  }
  0xa0   :  { %1657 = vsyncadd [#allocation9], 4294961152 }
  0xa1   :  { %1658 = dma.done.wait [#allocation12], 12288  }
  0xa2   :  { %1659 = vsyncadd [#allocation12], 4294955008 }
  0xa3   :  { %1660 = dma.done.wait [#allocation15], 4096  }
  0xa4   :  { %1661 = vsyncadd [#allocation15], 4294963200  ;;  %v1676_v0 = vmov 0   ;;  %s2055_s23 = sld [smem:[#allocation24_spill]]  ;;  %v179_v2 = vld [vmem:[#allocation5] sm:$0xff]  ;;  %v180_v3 = vld [vmem:[#allocation5 + $0x8] sm:$0xff] }
  0xa5   :  { %1437 = vset.pattern.permute.xlu0 %v1676_v0  ;;  %v1205_v4 = vpack.c.bf16 %v180_v3, %v179_v2  ;;  %v1677_v5 = vmov 0.0|0.0   ;;  %v181_v6 = vld [vmem:[#allocation5 + $0x10] sm:$0xff]  ;;  %v182_v7 = vld [vmem:[#allocation5 + $0x18] sm:$0xff]  ;;  %v308_v9 = vld [vmem:[#allocation7 + $0x80] sm:$0xff]  ;;  %vm1678_vm0 = vmmov 0   ;;  %v1679_v12 = vmov 0.0  }
  0xa6   :  { %1204 = vmatprep.subr.bf16.mxu1 %v1677_v5  ;;  %v1208_v8 = vpack.c.bf16 %v182_v7, %v181_v6  ;;  %v309_v10 = vld [vmem:[#allocation7 + $0x88] sm:$0xff]  ;;  %1201 = vmatprep.mubr.msk.f32.mxu1 %vm1678_vm0, %v1679_v12  ;;  %v436_v14 = vld [vmem:[#allocation10 + $0x18] sm:$0xff]  ;;  %v433_v15 = vld [vmem:[#allocation10] sm:$0xff]  ;;  %s2056_s3 = sld [smem:[#allocation25_spill]]  ;;  %s2057_s0 = sld [smem:[#allocation26_spill]]  ;;  %vm216_vm1 = vcmask 261120  }
  0xa7   :  { %1206 = vmatpush3.bf16.msra.mxu1 %v1205_v4  ;;  %v1210_v11 = vpack.c.bf16 %v309_v10, %v308_v9  ;;  %620 = vmatprep.mubr.f32.mxu0 %v1679_v12  ;;  %v434_v13 = vld [vmem:[#allocation10 + $0x8] sm:$0xff]  ;;  %v435_v17 = vld [vmem:[#allocation10 + $0x10] sm:$0xff]  ;;  %v440_v19 = vld [vmem:[#allocation10 + $0x38] sm:$0xff]  ;;  %s2058_s21 = sld [smem:[#allocation28_spill]]  ;;  %vm552_vm2 = vcmask 523264   ;;  %s1680_s29 = smov [#allocation16]  }
  0xa8   :  { %1207 = vmatprep.subr.bf16.mxu1 %v1677_v5  ;;  %v1242_v16 = vpack.c.bf16 %v436_v14, %v434_v13  ;;  %v438_v18 = vld [vmem:[#allocation10 + $0x28] sm:$0xff]  ;;  %v1244_v20 = vpack.c.bf16 %v435_v17, %v433_v15  ;;  %v437_v22 = vld [vmem:[#allocation10 + $0x20] sm:$0xff]  ;;  %v439_v23 = vld [vmem:[#allocation10 + $0x30] sm:$0xff] }
  0xa9   :  { %v1246_v21 = vpack.c.bf16 %v440_v19, %v438_v18  ;;  %v442_v24 = vld [vmem:[#allocation10 + $0x48] sm:$0xff]  ;;  %v444_v25 = vld [vmem:[#allocation10 + $0x58] sm:$0xff]  ;;  %v1248_v26 = vpack.c.bf16 %v439_v23, %v437_v22  ;;  %v441_v28 = vld [vmem:[#allocation10 + $0x40] sm:$0xff] }
  0xaa   :  { %v176_v1 = vld [vmem:[%s2055_s23] sm:$0xff]  ;;  %1243 = vmatprep.subr.bf16.mxu0 %v1242_v16  ;;  %v1250_v27 = vpack.c.bf16 %v444_v25, %v442_v24  ;;  %v446_v30 = vld [vmem:[#allocation10 + $0x68] sm:$0xff]  ;;  %v448_v31 = vld [vmem:[#allocation10 + $0x78] sm:$0xff]  ;;  %s1097_s23 = sshll.u32 %s1680_s29, 4  ;;  %s1098_s23 = int_to_ptr.vmem [resolvable:$true] %s1097_s23 }
  0xab   :  { %186 = vperm.xlu0 %1437, %v176_v1   ;;  %1209 = vmatpush3.bf16.msra.mxu1 %v1208_v8  ;;  %v443_v29 = vld [vmem:[#allocation10 + $0x50] sm:$0xff]  ;;  %v1254_v33 = vpack.c.bf16 %v448_v31, %v446_v30  ;;  %v292_v42 = vld [vmem:[#allocation7] sm:$0xff]  ;;  %v293_v43 = vld [vmem:[#allocation7 + $0x8] sm:$0xff]  ;;  %p1635_p9 = scmp.lt.s32.totalorder %s1098_s23, %s1098_s23 }
  0xac   :  { %1211 = vmatprep.subr.bf16.mxu1 %v1210_v11  ;;  %1245 = vmatpush1.bf16.msra.mxu0 %v1244_v20  ;;  %v1252_v32 = vpack.c.bf16 %v443_v29, %v441_v28  ;;  %v1110_v34 = vld [vmem:[%s2056_s3] ss:$0 sm:$0xff]  ;;  %v311_v45 = vld [vmem:[#allocation7 + $0x98] sm:$0xff]  ;;  %v1212_v47 = vpack.c.bf16 %v293_v43, %v292_v42  ;;  %v312_v53 = vld [vmem:[#allocation7 + $0xa0] sm:$0xff] }
  0xad   :  { %1247 = vmatprep.subr.bf16.mxu0 %v1246_v21  ;;  %v1111_v35 = vld [vmem:[%s2057_s0] ss:$0 sm:$0xff]  ;;  %v295_v51 = vld [vmem:[#allocation7 + $0x18] sm:$0xff]  ;;  %v313_v54 = vld [vmem:[#allocation7 + $0xa8] sm:$0xff] }
  0xae   :  { %v310_v44 = vld [vmem:[#allocation7 + $0x90] sm:$0xff]  ;;  %v291_v52 = vld [vmem:[#allocation2 + $0x8] sm:$0xff]  ;;  %v1218_v56 = vpack.c.bf16 %v313_v54, %v312_v53  ;;  %v296_v57 = vld [vmem:[#allocation7 + $0x20] sm:$0xff] }
  0xaf   :  { %v1214_v49 = vpack.c.bf16 %v311_v45, %v310_v44  ;;  %v294_v50 = vld [vmem:[#allocation7 + $0x10] sm:$0xff]  ;;  %v297_v58 = vld [vmem:[#allocation7 + $0x28] sm:$0xff]  ;;  %v315_v60 = vld [vmem:[#allocation7 + $0xb8] sm:$0xff] }
  0xb0   :  { %1249 = vmatpush1.bf16.msra.mxu0 %v1248_v26  ;;  %v1216_v55 = vpack.c.bf16 %v295_v51, %v294_v50  ;;  %v314_v59 = vld [vmem:[#allocation7 + $0xb0] sm:$0xff]  ;;  %v1220_v61 = vpack.c.bf16 %v297_v58, %v296_v57  ;;  %v299_v0 = vld [vmem:[#allocation7 + $0x38] sm:$0xff]  ;;  %v316_v1 = vld [vmem:[#allocation7 + $0xc0] sm:$0xff] }
  0xb1   :  { %1251 = vmatprep.subr.bf16.mxu0 %v1250_v27  ;;  %v1222_v62 = vpack.c.bf16 %v315_v60, %v314_v59  ;;  %v298_v63 = vld [vmem:[#allocation7 + $0x30] sm:$0xff]  ;;  %v317_v2 = vld [vmem:[#allocation7 + $0xc8] sm:$0xff]  ;;  %v300_v5 = vld [vmem:[#allocation7 + $0x40] sm:$0xff] }
  0xb2   :  { %v1224_v3 = vpack.c.bf16 %v299_v0, %v298_v63  ;;  %v1226_v4 = vpack.c.bf16 %v317_v2, %v316_v1  ;;  %v301_v6 = vld [vmem:[#allocation7 + $0x48] sm:$0xff]  ;;  %v318_v7 = vld [vmem:[#allocation7 + $0xd0] sm:$0xff]  ;;  %v319_v8 = vld [vmem:[#allocation7 + $0xd8] sm:$0xff] }
  0xb3   :  { %v1228_v9 = vpack.c.bf16 %v301_v6, %v300_v5  ;;  %v1230_v10 = vpack.c.bf16 %v319_v8, %v318_v7  ;;  %v302_v11 = vld [vmem:[#allocation7 + $0x50] sm:$0xff]  ;;  %v303_v13 = vld [vmem:[#allocation7 + $0x58] sm:$0xff]  ;;  %v320_v14 = vld [vmem:[#allocation7 + $0xe0] sm:$0xff] }
  0xb4   :  { %1253 = vmatpush1.bf16.msra.mxu0 %v1252_v32  ;;  %v321_v15 = vld [vmem:[#allocation7 + $0xe8] sm:$0xff]  ;;  %v1232_v16 = vpack.c.bf16 %v303_v13, %v302_v11  ;;  %v304_v18 = vld [vmem:[#allocation7 + $0x60] sm:$0xff]  ;;  %v322_v20 = vld [vmem:[#allocation7 + $0xf0] sm:$0xff] }
  0xb5   :  { %1255 = vmatprep.subr.bf16.mxu0 %v1254_v33  ;;  %v1234_v17 = vpack.c.bf16 %v321_v15, %v320_v14  ;;  %v305_v19 = vld [vmem:[#allocation7 + $0x68] sm:$0xff]  ;;  %v323_v21 = vld [vmem:[#allocation7 + $0xf8] sm:$0xff]  ;;  %v306_v24 = vld [vmem:[#allocation7 + $0x70] sm:$0xff] }
  0xb6   :  { %v1236_v22 = vpack.c.bf16 %v305_v19, %v304_v18  ;;  %v1238_v23 = vpack.c.bf16 %v323_v21, %v322_v20  ;;  %v307_v25 = vld [vmem:[#allocation7 + $0x78] sm:$0xff]  ;;  %v290_v27 = vld [vmem:[#allocation2] sm:$0xff]  ;;  %v445_v28 = vld [vmem:[#allocation10 + $0x60] sm:$0xff] }
  0xb7   :  { %v1240_v26 = vpack.c.bf16 %v307_v25, %v306_v24  ;;  %v447_v29 = vld [vmem:[#allocation10 + $0x70] sm:$0xff]  ;;  %v402_v31 = vld [vmem:[#allocation8 + $0x8] sm:$0xff]  ;;  %v404_v32 = vld [vmem:[#allocation8 + $0x18] sm:$0xff]  ;;  %v699_v25 = vlaneseq }
  0xb8   :  { %v1256_v30 = vpack.c.bf16 %v447_v29, %v445_v28  ;;  %v1258_v33 = vpack.c.bf16 %v404_v32, %v402_v31  ;;  %v405_v44 = vld [vmem:[#allocation8 + $0x20] sm:$0xff]  ;;  %v407_v45 = vld [vmem:[#allocation8 + $0x30] sm:$0xff]  ;;  %v416_v53 = vld [vmem:[#allocation8 + $0x78] sm:$0xff] }
  0xb9   :  { %v409_v50 = vld [vmem:[#allocation8 + $0x40] sm:$0xff]  ;;  %v411_v51 = vld [vmem:[#allocation8 + $0x50] sm:$0xff]  ;;  %v418_v58 = vld [vmem:[#allocation8 + $0x88] sm:$0xff] }
  0xba   :  { %1257 = vmatpush1.bf16.msra.mxu0 %v1256_v30  ;;  %v1268_v54 = vpack.c.bf16 %v411_v51, %v409_v50  ;;  %v415_v57 = vld [vmem:[#allocation8 + $0x70] sm:$0xff]  ;;  %v420_v59 = vld [vmem:[#allocation8 + $0x98] sm:$0xff]  ;;  %v422_v0 = vld [vmem:[#allocation8 + $0xa8] sm:$0xff] }
  0xbb   :  { %1259 = vmatprep.subr.bf16.mxu0 %v1258_v33  ;;  %v419_v63 = vld [vmem:[#allocation8 + $0x90] sm:$0xff]  ;;  %v424_v1 = vld [vmem:[#allocation8 + $0xb8] sm:$0xff]  ;;  %v426_v6 = vld [vmem:[#allocation8 + $0xc8] sm:$0xff] }
  0xbc   :  { %v423_v5 = vld [vmem:[#allocation8 + $0xb0] sm:$0xff]  ;;  %v428_v7 = vld [vmem:[#allocation8 + $0xd8] sm:$0xff]  ;;  %v430_v13 = vld [vmem:[#allocation8 + $0xe8] sm:$0xff] }
  0xbd   :  { %v427_v11 = vld [vmem:[#allocation8 + $0xd0] sm:$0xff]  ;;  %v432_v14 = vld [vmem:[#allocation8 + $0xf8] sm:$0xff] }
  0xbe   :  { %v431_v18 = vld [vmem:[#allocation8 + $0xf0] sm:$0xff] }
  0xbf   :  { %v1115_v21 = vld [vmem:[%s2022_s7] ss:$0 sm:$0xff] }
  0xc0   :  { %v449_v28 = vld [vmem:[%s2025_s10] sm:$0x3] }
 0x12a   :  { %v187_v36 = vpop.permute.xlu0 %186 }
 0x12b   :  { %v195_v37 = vmul.f32 %v1110_v34, %v187_v36  ;;  %v401_v34 = vld [vmem:[#allocation8] sm:$0xff]  ;;  %v1113_v36 = vld [vmem:[%s2058_s21] ss:$0 sm:$0xff] }
 0x12d   :  { %v202_v38 = vadd.f32 %v1111_v35, %v195_v37  ;;  %v403_v35 = vld [vmem:[#allocation8 + $0x10] sm:$0xff]  ;;  %v406_v37 = vld [vmem:[#allocation8 + $0x28] sm:$0xff] }
 0x12f   :  { %v1112_v39 = vmul.f32 -1.442695, %v202_v38 }
 0x131   :  { %1438 = vpow2.f32 %v1112_v39 }
 0x13b   :  { %v1439_v40 = vpop.eup %1438 }
 0x13c   :  { %v206_v41 = vadd.f32 1.0, %v1439_v40  ;;  %v1260_v40 = vpack.c.bf16 %v403_v35, %v401_v34 }
 0x13e   :  { %1440 = vrcp.f32 %v206_v41 }
 0x148   :  { %v1441_v46 = vpop.eup %1440 }
 0x149   :  { %v209_v48 = vmul.f32 %v1441_v46, %v202_v38  ;;  %v408_v38 = vld [vmem:[#allocation8 + $0x38] sm:$0xff]  ;;  %v410_v46 = vld [vmem:[#allocation8 + $0x48] sm:$0xff] }
 0x14a   :  { %v1262_v43 = vpack.c.bf16 %v408_v38, %v406_v37  ;;  %v453_v37 = vld [vmem:[#allocation11 + $0x8] sm:$0xff]  ;;  %v455_v38 = vld [vmem:[#allocation11 + $0x18] sm:$0xff] }
 0x14b   :  { %1202 = vmatmul.mubr.msk.f32.vlgmr.msra.gmra.mrb[0].mxu1 %vm216_vm1, %v209_v48  ;;  %v1264_v48 = vpack.c.bf16 %v407_v45, %v405_v44 }
 0x14c   :  { %1213 = vmatpush3.bf16.msra.mxu1 %v1212_v47  ;;  %395 = vmatprep.mubr.f32.mxu1 %v291_v52  ;;  %v412_v47 = vld [vmem:[#allocation8 + $0x58] sm:$0xff]  ;;  %v414_v52 = vld [vmem:[#allocation8 + $0x68] sm:$0xff] }
 0x14d   :  { %1215 = vmatprep.subr.bf16.mxu1 %v1214_v49  ;;  %v1266_v49 = vpack.c.bf16 %v412_v47, %v410_v46  ;;  %v456_v46 = vld [vmem:[#allocation11 + $0x20] sm:$0xff]  ;;  %v458_v47 = vld [vmem:[#allocation11 + $0x30] sm:$0xff] }
 0x14e   :  { %v1296_v50 = vpack.c.bf16 %v458_v47, %v456_v46  ;;  %v492_v46 = vld [vmem:[#allocation11 + $0x140] sm:$0xff]  ;;  %v494_v47 = vld [vmem:[#allocation11 + $0x150] sm:$0xff] }
 0x150   :  { %1217 = vmatpush3.bf16.msra.mxu1 %v1216_v55  ;;  %v1270_v55 = vpack.c.bf16 %v416_v53, %v414_v52  ;;  %v460_v52 = vld [vmem:[#allocation11 + $0x40] sm:$0xff]  ;;  %v462_v53 = vld [vmem:[#allocation11 + $0x50] sm:$0xff] }
 0x151   :  { %1219 = vmatprep.subr.bf16.mxu1 %v1218_v56  ;;  %v413_v56 = vld [vmem:[#allocation8 + $0x60] sm:$0xff] }
 0x152   :  { %v1272_v60 = vpack.c.bf16 %v415_v57, %v413_v56  ;;  %v1300_v56 = vpack.c.bf16 %v462_v53, %v460_v52  ;;  %v498_v53 = vld [vmem:[#allocation11 + $0x170] sm:$0xff] }
 0x154   :  { %1221 = vmatpush3.bf16.msra.mxu1 %v1220_v61  ;;  %v1274_v61 = vpack.c.bf16 %v420_v59, %v418_v58  ;;  %v464_v58 = vld [vmem:[#allocation11 + $0x60] sm:$0xff]  ;;  %v466_v59 = vld [vmem:[#allocation11 + $0x70] sm:$0xff] }
 0x155   :  { %1223 = vmatprep.subr.bf16.mxu1 %v1222_v62  ;;  %v417_v62 = vld [vmem:[#allocation8 + $0x80] sm:$0xff] }
 0x156   :  { %v1276_v2 = vpack.c.bf16 %v419_v63, %v417_v62  ;;  %v1304_v62 = vpack.c.bf16 %v466_v59, %v464_v58  ;;  %v500_v58 = vld [vmem:[#allocation11 + $0x180] sm:$0xff]  ;;  %v502_v59 = vld [vmem:[#allocation11 + $0x190] sm:$0xff] }
 0x158   :  { %1225 = vmatpush3.bf16.msra.mxu1 %v1224_v3  ;;  %v1278_v3 = vpack.c.bf16 %v424_v1, %v422_v0  ;;  %v468_v0 = vld [vmem:[#allocation11 + $0x80] sm:$0xff]  ;;  %v470_v1 = vld [vmem:[#allocation11 + $0x90] sm:$0xff] }
 0x159   :  { %1227 = vmatprep.subr.bf16.mxu1 %v1226_v4  ;;  %v421_v4 = vld [vmem:[#allocation8 + $0xa0] sm:$0xff] }
 0x15a   :  { %v1280_v8 = vpack.c.bf16 %v423_v5, %v421_v4  ;;  %v1308_v4 = vpack.c.bf16 %v470_v1, %v468_v0  ;;  %v504_v0 = vld [vmem:[#allocation11 + $0x1a0] sm:$0xff]  ;;  %v506_v1 = vld [vmem:[#allocation11 + $0x1b0] sm:$0xff] }
 0x15c   :  { %1229 = vmatpush3.bf16.msra.mxu1 %v1228_v9  ;;  %v1282_v9 = vpack.c.bf16 %v428_v7, %v426_v6  ;;  %v472_v6 = vld [vmem:[#allocation11 + $0xa0] sm:$0xff]  ;;  %v474_v7 = vld [vmem:[#allocation11 + $0xb0] sm:$0xff] }
 0x15d   :  { %1231 = vmatprep.subr.bf16.mxu1 %v1230_v10  ;;  %v425_v10 = vld [vmem:[#allocation8 + $0xc0] sm:$0xff] }
 0x15e   :  { %v1284_v15 = vpack.c.bf16 %v427_v11, %v425_v10  ;;  %v1312_v10 = vpack.c.bf16 %v474_v7, %v472_v6  ;;  %v508_v6 = vld [vmem:[#allocation11 + $0x1c0] sm:$0xff]  ;;  %v510_v7 = vld [vmem:[#allocation11 + $0x1d0] sm:$0xff] }
 0x160   :  { %1233 = vmatpush3.bf16.msra.mxu1 %v1232_v16  ;;  %v1286_v16 = vpack.c.bf16 %v432_v14, %v430_v13 }
 0x161   :  { %1235 = vmatprep.subr.bf16.mxu1 %v1234_v17  ;;  %v429_v17 = vld [vmem:[#allocation8 + $0xe0] sm:$0xff] }
 0x162   :  { %v1288_v19 = vpack.c.bf16 %v431_v18, %v429_v17 }
 0x164   :  { %1237 = vmatpush3.bf16.msra.mxu1 %v1236_v22 }
 0x165   :  { %1239 = vmatprep.subr.bf16.mxu1 %v1238_v23 }
 0x168   :  { %1241 = vmatpush3.bf16.msra.mxu1 %v1240_v26  ;;  %v700_v26 = vshrl.u32 %v699_v25, 7 }
 0x16a   :  { %v1945_v29 = vsub.s32 1, %v700_v26 }
 0x16b   :  { %396 = vmatmul.mubr.f32.vlgmr.msra.gmra.mrb[2].mxu1 %v290_v27  ;;  %v1940_v27 = vsub.s32 0, %v700_v26  ;;  %v480_v26 = vld [vmem:[#allocation11 + $0xe0] sm:$0xff] }
 0x16c   :  { %v706_v31 = vrot.slane %v449_v28, %v1945_v29 }
 0x16d   :  { %v702_v30 = vrot.slane %v449_v28, %v1940_v27  ;;  %v482_v28 = vld [vmem:[#allocation11 + $0xf0] sm:$0xff] }
 0x21e   :  { %v286_v39 = vpop.f32.mrb[0].mxu1 }
 0x21f   :  { %v287_v41 = vadd.f32 %v1113_v36, %v286_v39  ;;  %v1203_v42 = vpop.f32.mrb[1].mxu1  ;;  %v452_v39 = vld [vmem:[#allocation11] sm:$0xff] }
 0x220   :  { %v457_v42 = vld [vmem:[#allocation11 + $0x28] sm:$0xff] }
 0x221   :  { %1116 = vmatmul.mubr.msk.f32.vlgmr.msra.gmra.mrb[0].mxu0 %vm552_vm2, %v287_v41  ;;  %v454_v41 = vld [vmem:[#allocation11 + $0x10] sm:$0xff] }
 0x222   :  { %1261 = vmatpush1.bf16.msra.mxu0 %v1260_v40  ;;  %691 = vmatprep.mubr.f32.mxu0 %v1679_v12  ;;  %v1290_v40 = vpack.c.bf16 %v455_v38, %v453_v37  ;;  %v1292_v44 = vpack.c.bf16 %v454_v41, %v452_v39  ;;  %v489_v37 = vld [vmem:[#allocation11 + $0x128] sm:$0xff]  ;;  %v491_v38 = vld [vmem:[#allocation11 + $0x138] sm:$0xff]  ;;  %v490_v41 = vld [vmem:[#allocation11 + $0x130] sm:$0xff] }
 0x223   :  { %1263 = vmatprep.subr.bf16.mxu0 %v1262_v43  ;;  %v459_v43 = vld [vmem:[#allocation11 + $0x38] sm:$0xff]  ;;  %v1326_v39 = vpack.c.bf16 %v491_v38, %v489_v37 }
 0x224   :  { %v1294_v45 = vpack.c.bf16 %v459_v43, %v457_v42  ;;  %1291 = vmatprep.subr.bf16.mxu1 %v1290_v40  ;;  %v488_v40 = vld [vmem:[#allocation11 + $0x120] sm:$0xff]  ;;  %v493_v43 = vld [vmem:[#allocation11 + $0x148] sm:$0xff] }
 0x225   :  { %1293 = vmatpush1.bf16.msra.mxu1 %v1292_v44  ;;  %v1328_v42 = vpack.c.bf16 %v490_v41, %v488_v40  ;;  %v495_v44 = vld [vmem:[#allocation11 + $0x158] sm:$0xff] }
 0x226   :  { %1265 = vmatpush1.bf16.msra.mxu0 %v1264_v48  ;;  %v461_v48 = vld [vmem:[#allocation11 + $0x48] sm:$0xff]  ;;  %1295 = vmatprep.subr.bf16.mxu1 %v1294_v45  ;;  %v1330_v45 = vpack.c.bf16 %v495_v44, %v493_v43  ;;  %v516_v44 = vld [vmem:[%s2029_s14] sm:$0x3] }
 0x227   :  { %1267 = vmatprep.subr.bf16.mxu0 %v1266_v49  ;;  %v463_v49 = vld [vmem:[#allocation11 + $0x58] sm:$0xff] }
 0x228   :  { %v1298_v51 = vpack.c.bf16 %v463_v49, %v461_v48  ;;  %v1332_v48 = vpack.c.bf16 %v494_v47, %v492_v46  ;;  %v497_v49 = vld [vmem:[#allocation11 + $0x168] sm:$0xff]  ;;  %v772_v46 = vrot.slane %v516_v44, %v1945_v29 }
 0x229   :  { %1297 = vmatpush1.bf16.msra.mxu1 %v1296_v50  ;;  %v499_v50 = vld [vmem:[#allocation11 + $0x178] sm:$0xff] }
 0x22a   :  { %1269 = vmatpush1.bf16.msra.mxu0 %v1268_v54  ;;  %v465_v54 = vld [vmem:[#allocation11 + $0x68] sm:$0xff]  ;;  %1299 = vmatprep.subr.bf16.mxu1 %v1298_v51  ;;  %v496_v51 = vld [vmem:[#allocation11 + $0x160] sm:$0xff]  ;;  %v1334_v52 = vpack.c.bf16 %v499_v50, %v497_v49 }
 0x22b   :  { %1271 = vmatprep.subr.bf16.mxu0 %v1270_v55  ;;  %v467_v55 = vld [vmem:[#allocation11 + $0x78] sm:$0xff] }
 0x22c   :  { %v1302_v57 = vpack.c.bf16 %v467_v55, %v465_v54  ;;  %v501_v54 = vld [vmem:[#allocation11 + $0x188] sm:$0xff]  ;;  %v503_v55 = vld [vmem:[#allocation11 + $0x198] sm:$0xff] }
 0x22d   :  { %1301 = vmatpush1.bf16.msra.mxu1 %v1300_v56  ;;  %v1336_v56 = vpack.c.bf16 %v498_v53, %v496_v51 }
 0x22e   :  { %1273 = vmatpush1.bf16.msra.mxu0 %v1272_v60  ;;  %v469_v60 = vld [vmem:[#allocation11 + $0x88] sm:$0xff]  ;;  %1303 = vmatprep.subr.bf16.mxu1 %v1302_v57  ;;  %v1338_v57 = vpack.c.bf16 %v503_v55, %v501_v54 }
 0x22f   :  { %1275 = vmatprep.subr.bf16.mxu0 %v1274_v61  ;;  %v471_v61 = vld [vmem:[#allocation11 + $0x98] sm:$0xff] }
 0x230   :  { %v1306_v63 = vpack.c.bf16 %v471_v61, %v469_v60  ;;  %v505_v60 = vld [vmem:[#allocation11 + $0x1a8] sm:$0xff]  ;;  %v507_v61 = vld [vmem:[#allocation11 + $0x1b8] sm:$0xff] }
 0x231   :  { %1305 = vmatpush1.bf16.msra.mxu1 %v1304_v62  ;;  %v1340_v62 = vpack.c.bf16 %v502_v59, %v500_v58  ;;  %v535_v59 = vld [vmem:[#allocation13 + $0x80] sm:$0xff] }
 0x232   :  { %1277 = vmatpush1.bf16.msra.mxu0 %v1276_v2  ;;  %v473_v2 = vld [vmem:[#allocation11 + $0xa8] sm:$0xff]  ;;  %1307 = vmatprep.subr.bf16.mxu1 %v1306_v63  ;;  %v1342_v63 = vpack.c.bf16 %v507_v61, %v505_v60 }
 0x233   :  { %1279 = vmatprep.subr.bf16.mxu0 %v1278_v3  ;;  %v475_v3 = vld [vmem:[#allocation11 + $0xb8] sm:$0xff]  ;;  %v536_v60 = vld [vmem:[#allocation13 + $0x88] sm:$0xff] }
 0x234   :  { %v1310_v5 = vpack.c.bf16 %v475_v3, %v473_v2  ;;  %v509_v2 = vld [vmem:[#allocation11 + $0x1c8] sm:$0xff]  ;;  %v511_v3 = vld [vmem:[#allocation11 + $0x1d8] sm:$0xff]  ;;  %v1354_v61 = vpack.c.bf16 %v536_v60, %v535_v59 }
 0x235   :  { %1309 = vmatpush1.bf16.msra.mxu1 %v1308_v4  ;;  %v1344_v4 = vpack.c.bf16 %v506_v1, %v504_v0  ;;  %v537_v1 = vld [vmem:[#allocation13 + $0x90] sm:$0xff] }
 0x236   :  { %1281 = vmatpush1.bf16.msra.mxu0 %v1280_v8  ;;  %v477_v8 = vld [vmem:[#allocation11 + $0xc8] sm:$0xff]  ;;  %1311 = vmatprep.subr.bf16.mxu1 %v1310_v5  ;;  %v1346_v5 = vpack.c.bf16 %v511_v3, %v509_v2  ;;  %v538_v2 = vld [vmem:[#allocation13 + $0x98] sm:$0xff] }
 0x237   :  { %1283 = vmatprep.subr.bf16.mxu0 %v1282_v9  ;;  %v479_v9 = vld [vmem:[#allocation11 + $0xd8] sm:$0xff]  ;;  %v1358_v3 = vpack.c.bf16 %v538_v2, %v537_v1 }
 0x238   :  { %v1314_v11 = vpack.c.bf16 %v479_v9, %v477_v8  ;;  %v513_v8 = vld [vmem:[#allocation11 + $0x1e8] sm:$0xff]  ;;  %v515_v9 = vld [vmem:[#allocation11 + $0x1f8] sm:$0xff] }
 0x239   :  { %1313 = vmatpush1.bf16.msra.mxu1 %v1312_v10  ;;  %v1348_v10 = vpack.c.bf16 %v510_v7, %v508_v6  ;;  %v539_v7 = vld [vmem:[#allocation13 + $0xa0] sm:$0xff] }
 0x23a   :  { %1285 = vmatpush1.bf16.msra.mxu0 %v1284_v15  ;;  %1315 = vmatprep.subr.bf16.mxu1 %v1314_v11  ;;  %v1350_v11 = vpack.c.bf16 %v515_v9, %v513_v8  ;;  %v540_v8 = vld [vmem:[#allocation13 + $0xa8] sm:$0xff] }
 0x23b   :  { %1287 = vmatprep.subr.bf16.mxu0 %v1286_v16  ;;  %v1362_v9 = vpack.c.bf16 %v540_v8, %v539_v7  ;;  %v976_v7 = vld [vmem:[#allocation14 + $0x10] sm:$0xff] }
 0x23e   :  { %v1155_v20 = vpop.f32.mrb[2].mxu1  ;;  %1289 = vmatpush1.bf16.msra.mxu0 %v1288_v19 }
 0x23f   :  { %v1156_v22 = vpop.f32.mrb[3].mxu1  ;;  %1355 = vmatprep.subr.bf16.mxu0 %v1354_v61 }
 0x240   :  { %v1157_v23 = vadd.f32 %v1156_v22, %v1155_v20  ;;  %v476_v20 = vld [vmem:[#allocation11 + $0xc0] sm:$0xff] }
 0x242   :  { %v398_v24 = vadd.f32 %v1157_v23, %v1115_v21  ;;  %v478_v21 = vld [vmem:[#allocation11 + $0xd0] sm:$0xff]  ;;  %v481_v23 = vld [vmem:[#allocation11 + $0xe8] sm:$0xff] }
 0x243   :  { %v1316_v22 = vpack.c.bf16 %v478_v21, %v476_v20  ;;  %v450_v21 = vld [vmem:[%s2026_s11] sm:$0x3] }
 0x244   :  { %692 = vmatmul.mubr.f32.vlgmr.msra.gmra.mrb[0].mxu0 %v398_v24  ;;  %v483_v24 = vld [vmem:[#allocation11 + $0xf8] sm:$0xff] }
 0x245   :  { %1317 = vmatpush1.bf16.msra.mxu1 %v1316_v22  ;;  %v1318_v25 = vpack.c.bf16 %v483_v24, %v481_v23  ;;  %v451_v22 = vld [vmem:[%s2027_s12] sm:$0x3]  ;;  %v732_v23 = vrot.slane %v450_v21, %v1940_v27  ;;  %v736_v24 = vrot.slane %v450_v21, %v1945_v29  ;;  %v543_v21 = vld [vmem:[#allocation13 + $0xc0] sm:$0xff] }
 0x247   :  { %1319 = vmatprep.subr.bf16.mxu1 %v1318_v25 }
 0x317   :  { %v693_v32 = vpop.f32.mrb[0].mxu0 }
 0x318   :  { %v709_v33 = vadd.f32 %v702_v30, %v693_v32  ;;  %v695_v34 = vpop.f32.mrb[1].mxu0  ;;  %v1320_v30 = vpack.c.bf16 %v482_v28, %v480_v26  ;;  %v487_v32 = vld [vmem:[#allocation11 + $0x118] sm:$0xff] }
 0x319   :  { %v710_v35 = vadd.f32 %v706_v31, %v695_v34  ;;  %v485_v31 = vld [vmem:[#allocation11 + $0x108] sm:$0xff]  ;;  %v484_v34 = vld [vmem:[#allocation11 + $0x100] sm:$0xff] }
 0x31a   :  { %1321 = vmatpush1.bf16.msra.mxu1 %v1320_v30  ;;  %v745_v30 = vrot.slane %v451_v22, %v1940_v27 }
 0x31b   :  { %v711_v36 = vadd.f32 %v710_v35, %v709_v33 }
 0x31d   :  { %712 = vadd.xlane.f32.xlu0 %v711_v36 }
 0x3aa   :  { %v713_v13 = vpop.xlane.xlu0 %712 }
 0x3ab   :  { %v715_v14 = vmul.f32 0.00390625, %v713_v13  ;;  %v512_v13 = vld [vmem:[#allocation11 + $0x1e0] sm:$0xff] }
 0x3ad   :  { %v1949_v15 = vsub.f32 %v709_v33, %v715_v14  ;;  %v1951_v16 = vsub.f32 %v710_v35, %v715_v14  ;;  %v1322_v33 = vpack.c.bf16 %v487_v32, %v485_v31  ;;  %v486_v35 = vld [vmem:[#allocation11 + $0x110] sm:$0xff]  ;;  %v749_v31 = vrot.slane %v451_v22, %v1945_v29  ;;  %v544_v22 = vld [vmem:[#allocation13 + $0xc8] sm:$0xff] }
 0x3ae   :  { %v1324_v36 = vpack.c.bf16 %v486_v35, %v484_v34  ;;  %v514_v14 = vld [vmem:[#allocation11 + $0x1f0] sm:$0xff] }
 0x3af   :  { %v718_v17 = vmul.f32 %v1949_v15, %v1949_v15  ;;  %v719_v18 = vmul.f32 %v1951_v16, %v1951_v16  ;;  %1323 = vmatprep.subr.bf16.mxu1 %v1322_v33 }
 0x3b0   :  { %1325 = vmatpush1.bf16.msra.mxu1 %v1324_v36 }
 0x3b1   :  { %v720_v19 = vadd.f32 %v719_v18, %v718_v17  ;;  %1327 = vmatprep.subr.bf16.mxu1 %v1326_v39  ;;  %v1352_v17 = vpack.c.bf16 %v514_v14, %v512_v13  ;;  %v541_v14 = vld [vmem:[#allocation13 + $0xb0] sm:$0xff] }
 0x3b3   :  { %721 = vadd.xlane.f32.xlu1 %v720_v19 }
 0x3b4   :  { %1329 = vmatpush1.bf16.msra.mxu1 %v1328_v42 }
 0x3b5   :  { %1331 = vmatprep.subr.bf16.mxu1 %v1330_v45  ;;  %v768_v45 = vrot.slane %v516_v44, %v1940_v27  ;;  %v534_v44 = vld [vmem:[#allocation13 + $0x78] sm:$0xff] }
 0x3b8   :  { %1333 = vmatpush1.bf16.msra.mxu1 %v1332_v48 }
 0x3b9   :  { %1335 = vmatprep.subr.bf16.mxu1 %v1334_v52 }
 0x3bc   :  { %1337 = vmatpush1.bf16.msra.mxu1 %v1336_v56 }
 0x3bd   :  { %1339 = vmatprep.subr.bf16.mxu1 %v1338_v57 }
 0x3c0   :  { %1341 = vmatpush1.bf16.msra.mxu1 %v1340_v62  ;;  %v519_v62 = vld [vmem:[#allocation13] sm:$0xff] }
 0x3c1   :  { %1343 = vmatprep.subr.bf16.mxu1 %v1342_v63  ;;  %v520_v63 = vld [vmem:[#allocation13 + $0x8] sm:$0xff] }
 0x3c2   :  { %v1356_v0 = vpack.c.bf16 %v520_v63, %v519_v62 }
 0x3c4   :  { %1345 = vmatpush1.bf16.msra.mxu1 %v1344_v4  ;;  %1357 = vmatpush3.bf16.msra.mxu0 %v1356_v0  ;;  %v521_v4 = vld [vmem:[#allocation13 + $0x10] sm:$0xff] }
 0x3c5   :  { %1347 = vmatprep.subr.bf16.mxu1 %v1346_v5  ;;  %v522_v5 = vld [vmem:[#allocation13 + $0x18] sm:$0xff]  ;;  %1359 = vmatprep.subr.bf16.mxu0 %v1358_v3 }
 0x3c6   :  { %v1360_v6 = vpack.c.bf16 %v522_v5, %v521_v4 }
 0x3c8   :  { %1349 = vmatpush1.bf16.msra.mxu1 %v1348_v10  ;;  %1361 = vmatpush3.bf16.msra.mxu0 %v1360_v6  ;;  %v523_v10 = vld [vmem:[#allocation13 + $0x20] sm:$0xff] }
 0x3c9   :  { %1351 = vmatprep.subr.bf16.mxu1 %v1350_v11  ;;  %v524_v11 = vld [vmem:[#allocation13 + $0x28] sm:$0xff]  ;;  %1363 = vmatprep.subr.bf16.mxu0 %v1362_v9  ;;  %v974_v6 = vld [vmem:[#allocation14] sm:$0xff] }
 0x3ca   :  { %v1364_v13 = vpack.c.bf16 %v524_v11, %v523_v10  ;;  %v979_v10 = vld [vmem:[#allocation14 + $0x28] sm:$0xff] }
 0x3cc   :  { %1353 = vmatpush1.bf16.msra.mxu1 %v1352_v17  ;;  %v542_v17 = vld [vmem:[#allocation13 + $0xb8] sm:$0xff]  ;;  %1365 = vmatpush3.bf16.msra.mxu0 %v1364_v13 }
 0x440   :  { %v722_v18 = vpop.xlane.xlu1 %721 }
 0x441   :  { %v723_v19 = vmul.f32 0.00390625, %v722_v18  ;;  %v525_v18 = vld [vmem:[#allocation13 + $0x30] sm:$0xff] }
 0x443   :  { %v724_v20 = vadd.f32 1e-05, %v723_v19  ;;  %v1366_v19 = vpack.c.bf16 %v542_v17, %v541_v14  ;;  %v1388_v17 = vpack.c.bf16 %v976_v7, %v974_v6 }
 0x445   :  { %1442 = vrsqrt.f32 %v724_v20  ;;  %v526_v20 = vld [vmem:[#allocation13 + $0x38] sm:$0xff]  ;;  %1367 = vmatprep.subr.bf16.mxu0 %v1366_v19 }
 0x44f   :  { %v1443_v25 = vpop.eup %1442 }
 0x450   :  { %v726_v26 = vmul.f32 %v1443_v25, %v1949_v15  ;;  %v727_v28 = vmul.f32 %v1443_v25, %v1951_v16  ;;  %v527_v25 = vld [vmem:[#allocation13 + $0x40] sm:$0xff] }
 0x452   :  { %v740_v32 = vmul.f32 %v736_v24, %v727_v28  ;;  %v739_v33 = vmul.f32 %v732_v23, %v726_v26  ;;  %v1368_v23 = vpack.c.bf16 %v526_v20, %v525_v18  ;;  %v1370_v24 = vpack.c.bf16 %v544_v22, %v543_v21  ;;  %v528_v26 = vld [vmem:[#allocation13 + $0x48] sm:$0xff]  ;;  %v545_v28 = vld [vmem:[#allocation13 + $0xd0] sm:$0xff]  ;;  %v978_v20 = vld [vmem:[#allocation14 + $0x20] sm:$0xff] }
 0x453   :  { %v980_v21 = vld [vmem:[#allocation14 + $0x30] sm:$0xff]  ;;  %v983_v22 = vld [vmem:[#allocation14 + $0x48] sm:$0xff] }
 0x454   :  { %v753_v34 = vadd.f32 %v749_v31, %v740_v32  ;;  %v752_v35 = vadd.f32 %v745_v30, %v739_v33  ;;  %v546_v30 = vld [vmem:[#allocation13 + $0xd8] sm:$0xff]  ;;  %1369 = vmatpush3.bf16.msra.mxu0 %v1368_v23  ;;  %v1372_v31 = vpack.c.bf16 %v528_v26, %v527_v25  ;;  %v529_v33 = vld [vmem:[#allocation13 + $0x50] sm:$0xff]  ;;  %v982_v26 = vld [vmem:[#allocation14 + $0x40] sm:$0xff] }
 0x455   :  { %1371 = vmatprep.subr.bf16.mxu0 %v1370_v24  ;;  %v1374_v32 = vpack.c.bf16 %v546_v30, %v545_v28  ;;  %v985_v23 = vld [vmem:[#allocation14 + $0x58] sm:$0xff]  ;;  %v1392_v24 = vpack.c.bf16 %v980_v21, %v978_v20  ;;  %v984_v28 = vld [vmem:[#allocation14 + $0x50] sm:$0xff]  ;;  %v987_v30 = vld [vmem:[#allocation14 + $0x68] sm:$0xff] }
 0x456   :  { %v757_v36 = vmul.f32 0.70710677, %v753_v34  ;;  %v756_v37 = vmul.f32 0.70710677, %v752_v35  ;;  %v755_v40 = vmul.f32 0.5, %v753_v34  ;;  %v754_v42 = vmul.f32 0.5, %v752_v35 }
 0x457   :  { %v530_v34 = vld [vmem:[#allocation13 + $0x58] sm:$0xff]  ;;  %v547_v35 = vld [vmem:[#allocation13 + $0xe0] sm:$0xff]  ;;  %v1394_v25 = vpack.c.bf16 %v985_v23, %v983_v22 }
 0x458   :  { %1444 = verf.f32 %v757_v36  ;;  %v548_v36 = vld [vmem:[#allocation13 + $0xe8] sm:$0xff]  ;;  %1373 = vmatpush3.bf16.msra.mxu0 %v1372_v31  ;;  %v989_v31 = vld [vmem:[#allocation14 + $0x78] sm:$0xff] }
 0x459   :  { %1446 = verf.f32 %v756_v37  ;;  %v1376_v37 = vpack.c.bf16 %v530_v34, %v529_v33  ;;  %1375 = vmatprep.subr.bf16.mxu0 %v1374_v32  ;;  %v1396_v32 = vpack.c.bf16 %v984_v28, %v982_v26  ;;  %v1398_v33 = vpack.c.bf16 %v989_v31, %v987_v30  ;;  %v986_v34 = vld [vmem:[#allocation14 + $0x60] sm:$0xff] }
 0x45c   :  { %1377 = vmatpush3.bf16.msra.mxu0 %v1376_v37  ;;  %v993_v37 = vld [vmem:[#allocation14 + $0x98] sm:$0xff] }
 0x462   :  { %v1445_v38 = vpop.eup %1444 }
 0x463   :  { %v1447_v39 = vpop.eup %1446  ;;  %v761_v41 = vadd.f32 1.0, %v1445_v38  ;;  %v1378_v38 = vpack.c.bf16 %v548_v36, %v547_v35  ;;  %v988_v35 = vld [vmem:[#allocation14 + $0x70] sm:$0xff]  ;;  %v991_v36 = vld [vmem:[#allocation14 + $0x88] sm:$0xff] }
 0x464   :  { %v760_v15 = vadd.f32 1.0, %v1447_v39  ;;  %v531_v39 = vld [vmem:[#allocation13 + $0x60] sm:$0xff] }
 0x465   :  { %v763_v43 = vmul.f32 %v761_v41, %v755_v40  ;;  %v532_v40 = vld [vmem:[#allocation13 + $0x68] sm:$0xff]  ;;  %v549_v41 = vld [vmem:[#allocation13 + $0xf0] sm:$0xff]  ;;  %1379 = vmatprep.subr.bf16.mxu0 %v1378_v38  ;;  %v1400_v38 = vpack.c.bf16 %v988_v35, %v986_v34 }
 0x466   :  { %v762_v16 = vmul.f32 %v760_v15, %v754_v42  ;;  %v550_v42 = vld [vmem:[#allocation13 + $0xf8] sm:$0xff]  ;;  %v1380_v15 = vpack.c.bf16 %v532_v40, %v531_v39  ;;  %v1402_v39 = vpack.c.bf16 %v993_v37, %v991_v36  ;;  %v990_v40 = vld [vmem:[#allocation14 + $0x80] sm:$0xff] }
 0x467   :  { %839 = vmatprep.mubr.f32.mxu1 %v763_v43  ;;  %v1382_v43 = vpack.c.bf16 %v550_v42, %v549_v41  ;;  %v995_v41 = vld [vmem:[#allocation14 + $0xa8] sm:$0xff]  ;;  %v997_v42 = vld [vmem:[#allocation14 + $0xb8] sm:$0xff] }
 0x468   :  { %840 = vmatmul.mubr.f32.vlgmr.msra.gmra.mrb[4].mxu1 %v762_v16  ;;  %v533_v16 = vld [vmem:[#allocation13 + $0x70] sm:$0xff]  ;;  %1381 = vmatpush3.bf16.msra.mxu0 %v1380_v15 }
 0x469   :  { %1383 = vmatprep.subr.bf16.mxu0 %v1382_v43  ;;  %v1406_v43 = vpack.c.bf16 %v997_v42, %v995_v41 }
 0x53b   :  { %v841_v47 = vpop.f32.mrb[4].mxu1 }
 0x53c   :  { %v842_v48 = vadd.f32 %v841_v47, %v768_v45  ;;  %v843_v49 = vpop.f32.mrb[5].mxu1  ;;  %v1384_v45 = vpack.c.bf16 %v534_v44, %v533_v16  ;;  %v977_v47 = vld [vmem:[#allocation14 + $0x18] sm:$0xff]  ;;  %v994_v16 = vld [vmem:[#allocation14 + $0xa0] sm:$0xff]  ;;  %v996_v44 = vld [vmem:[#allocation14 + $0xb0] sm:$0xff] }
 0x53d   :  { %v844_v50 = vadd.f32 %v843_v49, %v772_v46  ;;  %v975_v46 = vld [vmem:[#allocation14 + $0x8] sm:$0xff] }
 0x53e   :  { %1385 = vmatpush3.bf16.msra.mxu0 %v1384_v45  ;;  %v999_v45 = vld [vmem:[#allocation14 + $0xc8] sm:$0xff] }
 0x53f   :  { %v846_v51 = vadd.f32 %v844_v50, %v842_v48 }
 0x541   :  { %847 = vadd.xlane.f32.xlu1 %v846_v51 }
 0x5ce   :  { %v848_v52 = vpop.xlane.xlu1 %847 }
 0x5cf   :  { %v849_v53 = vmul.f32 0.00390625, %v848_v52  ;;  %v517_v52 = vld [vmem:[%s2030_s15] sm:$0x3] }
 0x5d1   :  { %v1974_v54 = vsub.f32 %v842_v48, %v849_v53  ;;  %v1976_v55 = vsub.f32 %v844_v50, %v849_v53  ;;  %v1386_v48 = vpack.c.bf16 %v977_v47, %v975_v46  ;;  %v518_v53 = vld [vmem:[%s2031_s16] sm:$0x3]  ;;  %v1001_v46 = vld [vmem:[#allocation14 + $0xd8] sm:$0xff]  ;;  %v1408_v47 = vpack.c.bf16 %v996_v44, %v994_v16 }
 0x5d2   :  { %v879_v61 = vrot.slane %v518_v53, %v1940_v27  ;;  %v883_v62 = vrot.slane %v518_v53, %v1945_v29  ;;  %v1005_v53 = vld [vmem:[#allocation14 + $0xf8] sm:$0xff] }
 0x5d3   :  { %v852_v56 = vmul.f32 %v1974_v54, %v1974_v54  ;;  %v853_v57 = vmul.f32 %v1976_v55, %v1976_v55  ;;  %1387 = vmatprep.subr.bf16.mxu0 %v1386_v48  ;;  %v1410_v48 = vpack.c.bf16 %v1001_v46, %v999_v45 }
 0x5d5   :  { %v854_v58 = vadd.f32 %v853_v57, %v852_v56  ;;  %v866_v56 = vrot.slane %v517_v52, %v1940_v27  ;;  %v870_v57 = vrot.slane %v517_v52, %v1945_v29  ;;  %v1003_v52 = vld [vmem:[#allocation14 + $0xe8] sm:$0xff] }
 0x5d7   :  { %855 = vadd.xlane.f32.xlu1 %v854_v58 }
 0x664   :  { %v856_v49 = vpop.xlane.xlu1 %855 }
 0x665   :  { %v857_v50 = vmul.f32 0.00390625, %v856_v49  ;;  %v998_v49 = vld [vmem:[#allocation14 + $0xc0] sm:$0xff] }
 0x667   :  { %v858_v51 = vadd.f32 1e-05, %v857_v50  ;;  %v1000_v50 = vld [vmem:[#allocation14 + $0xd0] sm:$0xff] }
 0x669   :  { %1448 = vrsqrt.f32 %v858_v51  ;;  %v1412_v51 = vpack.c.bf16 %v1000_v50, %v998_v49 }
 0x673   :  { %v1449_v58 = vpop.eup %1448 }
 0x674   :  { %v860_v59 = vmul.f32 %v1449_v58, %v1974_v54  ;;  %v861_v60 = vmul.f32 %v1449_v58, %v1976_v55  ;;  %v981_v55 = vld [vmem:[#allocation14 + $0x38] sm:$0xff]  ;;  %v1004_v58 = vld [vmem:[#allocation14 + $0xf0] sm:$0xff] }
 0x675   :  { %v1390_v19 = vpack.c.bf16 %v981_v55, %v979_v10 }
 0x676   :  { %v874_v63 = vmul.f32 %v870_v57, %v861_v60  ;;  %v873_v0 = vmul.f32 %v866_v56, %v860_v59  ;;  %v1414_v56 = vpack.c.bf16 %v1005_v53, %v1003_v52  ;;  %v1002_v57 = vld [vmem:[#allocation14 + $0xe0] sm:$0xff] }
 0x677   :  { %v1416_v59 = vpack.c.bf16 %v1004_v58, %v1002_v57 }
 0x678   :  { %v887_v1 = vadd.f32 %v883_v62, %v874_v63  ;;  %v886_v2 = vadd.f32 %v879_v61, %v873_v0  ;;  %v1117_v61 = vld [vmem:[%s2033_s18] ss:$0 sm:$0xff]  ;;  %s1630_s18 = scalar_lea.vmem %s1098_s23, 256 }
 0x679   :  { %p1631_p8 = scmp.ne.s32.totalorder %s1098_s23, %s1630_s18  ;;  %p1636_p10 = scmp.lt.s32.totalorder %s1630_s18, %s1630_s18 }
 0x67a   :  { %v891_v3 = vmul.f32 0.70710677, %v887_v1  ;;  %v890_v4 = vmul.f32 0.70710677, %v886_v2  ;;  %v889_v9 = vmul.f32 0.5, %v887_v1  ;;  %v888_v11 = vmul.f32 0.5, %v886_v2 }
 0x67b   :  { %v1006_v1 = vld [vmem:[%s2035_s20] sm:$0x3]  ;;  %p1637_p11 = por %p1636_p10, %p1635_p9 }
 0x67c   :  { %1450 = verf.f32 %v891_v3  ;;  %v1011_v2 = vrot.slane %v1006_v1, %v1940_v27  ;;  %v1015_v3 = vrot.slane %v1006_v1, %v1945_v29 }
 0x67d   :  { %1452 = verf.f32 %v890_v4  ;;  %p1638_p12 = pnand %p1637_p11, %p1631_p8 }
 0x686   :  { %v1451_v5 = vpop.eup %1450 }
 0x687   :  { %v1453_v8 = vpop.eup %1452  ;;  %v895_v54 = vadd.f32 1.0, %v1451_v5 }
 0x688   :  { %v894_v13 = vadd.f32 1.0, %v1453_v8 }
 0x689   :  { %v897_v14 = vmul.f32 %v895_v54, %v889_v9 }
 0x68a   :  { %v896_v18 = vmul.f32 %v894_v13, %v888_v11 }
 0x68b   :  { %968 = vmatprep.mubr.f32.mxu0 %v897_v14 }
 0x68c   :  { %969 = vmatmul.mubr.f32.vlgmr.msra.gmra.mrb[2].mxu0 %v896_v18 }
 0x68d   :  { %1389 = vmatpush1.bf16.msra.mxu0 %v1388_v17  ;;  %1082 = vmatprep.mubr.f32.mxu0 %v1679_v12  ;;  %v992_v12 = vld [vmem:[#allocation14 + $0x90] sm:$0xff] }
 0x68e   :  { %1391 = vmatprep.subr.bf16.mxu0 %v1390_v19  ;;  %v1404_v15 = vpack.c.bf16 %v992_v12, %v990_v40 }
 0x691   :  { %1393 = vmatpush1.bf16.msra.mxu0 %v1392_v24 }
 0x692   :  { %1395 = vmatprep.subr.bf16.mxu0 %v1394_v25 }
 0x695   :  { %1397 = vmatpush1.bf16.msra.mxu0 %v1396_v32 }
 0x696   :  { %1399 = vmatprep.subr.bf16.mxu0 %v1398_v33 }
 0x699   :  { %1401 = vmatpush1.bf16.msra.mxu0 %v1400_v38 }
 0x69a   :  { %1403 = vmatprep.subr.bf16.mxu0 %v1402_v39 }
 0x69d   :  { %1405 = vmatpush1.bf16.msra.mxu0 %v1404_v15 }
 0x69e   :  { %1407 = vmatprep.subr.bf16.mxu0 %v1406_v43 }
 0x6a1   :  { %1409 = vmatpush1.bf16.msra.mxu0 %v1408_v47 }
 0x6a2   :  { %1411 = vmatprep.subr.bf16.mxu0 %v1410_v48 }
 0x6a5   :  { %1413 = vmatpush1.bf16.msra.mxu0 %v1412_v51 }
 0x6a6   :  { %1415 = vmatprep.subr.bf16.mxu0 %v1414_v56 }
 0x6a9   :  { %1417 = vmatpush1.bf16.msra.mxu0 %v1416_v59 }
 0x75f   :  { %v1190_v60 = vpop.f32.mrb[2].mxu0 }
 0x760   :  { %v1191_v62 = vpop.f32.mrb[3].mxu0 }
 0x761   :  { %v1192_v63 = vadd.f32 %v1191_v62, %v1190_v60 }
 0x763   :  { %v971_v0 = vadd.f32 %v1192_v63, %v1117_v61 }
 0x765   :  { %1083 = vmatmul.mubr.f32.vlgmr.msra.gmra.mrb[4].mxu0 %v971_v0 }
 0x838   :  { %v1084_v4 = vpop.f32.mrb[4].mxu0 }
 0x839   :  { %v1085_v5 = vadd.f32 %v1084_v4, %v1011_v2  ;;  %v1086_v6 = vpop.f32.mrb[5].mxu0 }
 0x83a   :  { %v1087_v7 = vadd.f32 %v1086_v6, %v1015_v3 }
 0x83b   :  { %1089 = vst [vmem:[#allocation16] sm:$0xff] %v1085_v5 }
 0x83c   :  { %1090 = vst [vmem:[#allocation16 + $0x8] sm:$0xff] %v1087_v7 }
 0x83d   :  { %1641 = shalt.err (!%p1638_p12)
}
 0x83e   :  { %s2059_s25 = sld [smem:[#allocation29_spill]] }
 0x844   :  { %s1642_s3 = scalar_lea.hbm %s2059_s25, 256 }
 0x845   :  { %p1643_p13 = scmp.ne.s32.totalorder %s2059_s25, %s1642_s3  ;;  %p1646_p0 = scmp.lt.u32.totalorder %s1642_s3, %s2059_s25 }
 0x847   :  { %p1648_p1 = pnand %p1646_p0, %p1643_p13 }
 0x849   :  { %1651 = shalt.err (!%p1648_p1)
}
 0x84a   :  { %1100 = dma.vmem_to_hbm [thread:$0]  %s1098_s23, 256, %s2059_s25, [#allocation4]  }
 0x84b   :  { %1662 = dma.done.wait [#allocation4], 256  }
 0x84c   :  { %1663 = vsyncadd [#allocation4], 4294967040 }
 0x84d   :  { %1104 = vsyncpa [#allocation3], 1 }
 0x84e   :  { %1105 = vsyncpa [#allocation6], 1 }
 0x84f   :  { %1106 = vsyncpa [#allocation9], 1 }
 0x850   :  { %1107 = vsyncpa [#allocation12], 1 }
 0x851   :  { %1108 = vsyncpa [#allocation15], 1 }
 0x852   :  { %1109 = vsyncpa [#allocation4], 1 }

// kernel: tpu_custom_call.1
= control target key start
LH: loop header
LB: loop body
LE: loop exit
PB: predicated region body
PF: predicated region fallthrough
CT: control target
= control target key end

     0   :  { %s2015_s0 = inlined_call_operand.hbm [shape: f32[8,256], index: 0, kind: input, shape index: {}]   ;;  %s2016_s1 = inlined_call_operand.vmem [shape: f32[8,1], index: 1, kind: input, shape index: {}]   ;;  %s2017_s2 = inlined_call_operand.vmem [shape: f32[1,32], index: 2, kind: input, shape index: {}]   ;;  %s2018_s3 = inlined_call_operand.vmem [shape: f32[1,32], index: 3, kind: input, shape index: {}]   ;;  %s2019_s4 = inlined_call_operand.hbm [shape: f32[32,64], index: 4, kind: input, shape index: {}]   ;;  %s2020_s5 = inlined_call_operand.vmem [shape: f32[1,64], index: 5, kind: input, shape index: {}]   ;;  %s2021_s6 = inlined_call_operand.hbm [shape: f32[256,128], index: 6, kind: input, shape index: {}]   ;;  %s2022_s7 = inlined_call_operand.vmem [shape: f32[1,128], index: 7, kind: input, shape index: {}]   ;;  %s2023_s8 = inlined_call_operand.hbm [shape: f32[128,256], index: 8, kind: input, shape index: {}]   ;;  %s2024_s9 = inlined_call_operand.hbm [shape: f32[64,256], index: 9, kind: input, shape index: {}]   ;;  %s2025_s10 = inlined_call_operand.vmem [shape: f32[1,256], index: 10, kind: input, shape index: {}]   ;;  %s2026_s11 = inlined_call_operand.vmem [shape: f32[1,256], index: 11, kind: input, shape index: {}]   ;;  %s2027_s12 = inlined_call_operand.vmem [shape: f32[1,256], index: 12, kind: input, shape index: {}]   ;;  %s2028_s13 = inlined_call_operand.hbm [shape: f32[256,256], index: 13, kind: input, shape index: {}]   ;;  %s2029_s14 = inlined_call_operand.vmem [shape: f32[1,256], index: 14, kind: input, shape index: {}]   ;;  %s2030_s15 = inlined_call_operand.vmem [shape: f32[1,256], index: 15, kind: input, shape index: {}]   ;;  %s2031_s16 = inlined_call_operand.vmem [shape: f32[1,256], index: 16, kind: input, shape index: {}]   ;;  %s2032_s17 = inlined_call_operand.hbm [shape: f32[256,128], index: 17, kind: input, shape index: {}]   ;;  %s2033_s18 = inlined_call_operand.vmem [shape: f32[1,128], index: 18, kind: input, shape index: {}]   ;;  %s2034_s19 = inlined_call_operand.hbm [shape: f32[128,256], index: 19, kind: input, shape index: {}]   ;;  %s2035_s20 = inlined_call_operand.vmem [shape: f32[1,256], index: 20, kind: input, shape index: {}]   ;;  %s2036_s21 = inlined_call_operand.hbm [shape: f32[8,256], index: 21, kind: output, shape index: {}]  }
   0x1   :  { %2044 = sst [smem:[#allocation23_spill]] %s2015_s0 }
   0x2   :  { %2045 = sst [smem:[#allocation24_spill]] %s2016_s1 }
   0x3   :  { %2046 = sst [smem:[#allocation25_spill]] %s2017_s2 }
   0x4   :  { %2047 = sst [smem:[#allocation26_spill]] %s2018_s3 }
   0x5   :  { %2048 = sst [smem:[#allocation27_spill]] %s2019_s4 }
   0x6   :  { %2049 = sst [smem:[#allocation28_spill]] %s2020_s5 }
   0x7   :  { %2050 = sst [smem:[#allocation29_spill]] %s2036_s21 }
   0x8   :  { %26 = vsyncpa [#allocation3], 0 }
   0x9   :  { %27 = vsyncpa [#allocation6], 0 }
   0xa   :  { %28 = vsyncpa [#allocation9], 0 }
   0xb   :  { %29 = vsyncpa [#allocation12], 0 }
   0xc   :  { %30 = vsyncpa [#allocation15], 0 }
   0xd   :  { %31 = vsyncpa [#allocation4], 0  ;;  %s1664_s2 = smov [#allocation5]   ;;  %s2051_s3 = sld [smem:[#allocation27_spill]] }
   0xe   :  { %s53_s25 = sshll.u32 %s1664_s2, 4  ;;  %s54_s25 = int_to_ptr.vmem [resolvable:$true] %s53_s25 }
  0x13   :  { %s1454_s28 = scalar_lea.hbm %s2051_s3, 512 }
  0x14   :  { %p1455_p0 = scmp.ne.s32.totalorder %s2051_s3, %s1454_s28  ;;  %p1458_p1 = scmp.lt.u32.totalorder %s1454_s28, %s2051_s3 }
  0x16   :  { %p1460_p2 = pnand %p1458_p1, %p1455_p0 }
  0x18   :  { %1463 = shalt.err (!%p1460_p2)
}
  0x19   :  { %s1464_s5 = scalar_lea.vmem %s54_s25, 512  ;;  %p1469_p4 = scmp.lt.s32.totalorder %s54_s25, %s54_s25 }
  0x1a   :  { %p1465_p3 = scmp.ne.s32.totalorder %s54_s25, %s1464_s5  ;;  %p1470_p5 = scmp.lt.s32.totalorder %s1464_s5, %s1464_s5 }
  0x1c   :  { %p1471_p6 = por %p1470_p5, %p1469_p4 }
  0x1e   :  { %p1472_p7 = pnand %p1471_p6, %p1465_p3 }
  0x20   :  { %1475 = shalt.err (!%p1472_p7)
}
  0x21   :  { %s2040_s22 = smov 128   ;;  %s2042_s23 = smov 8  }
  0x22   :  { %59 = dma.hbm_to_vmem [thread:$0]  %s2051_s3, 512, %s54_s25, [#allocation6], %s2040_s22, %s2040_s22, %s2042_s23  }
  0x23   :  { %s1667_s2 = smov [#allocation8]   ;;  %s1476_s29 = scalar_lea.hbm %s2023_s8, 4096 }
  0x24   :  { %s81_s26 = sshll.u32 %s1667_s2, 4  ;;  %p1477_p8 = scmp.ne.s32.totalorder %s2023_s8, %s1476_s29  ;;  %s82_s26 = int_to_ptr.vmem [resolvable:$true] %s81_s26 }
  0x25   :  { %p1480_p9 = scmp.lt.u32.totalorder %s1476_s29, %s2023_s8 }
  0x27   :  { %p1482_p10 = pnand %p1480_p9, %p1477_p8 }
  0x29   :  { %1485 = shalt.err (!%p1482_p10)
}
  0x2a   :  { %s1486_s21 = scalar_lea.vmem %s82_s26, 4096  ;;  %p1491_p12 = scmp.lt.s32.totalorder %s82_s26, %s82_s26 }
  0x2b   :  { %p1487_p11 = scmp.ne.s32.totalorder %s82_s26, %s1486_s21  ;;  %p1492_p13 = scmp.lt.s32.totalorder %s1486_s21, %s1486_s21 }
  0x2d   :  { %p1493_p0 = por %p1492_p13, %p1491_p12 }
  0x2f   :  { %p1494_p1 = pnand %p1493_p0, %p1487_p11 }
  0x31   :  { %1497 = shalt.err (!%p1494_p1)
}
  0x32   :  { %s1668_s25 = smov 256   ;;  %s1669_s3 = smov 16  }
  0x33   :  { %87 = dma.hbm_to_vmem [thread:$0]  %s2023_s8, 4096, %s82_s26, [#allocation9], %s1668_s25, %s1668_s25, %s1669_s3  }
  0x34   :  { %s1670_s2 = smov [#allocation11]   ;;  %s1671_s28 = smov [#allocation2]  }
  0x35   :  { %s111_s27 = sshll.u32 %s1670_s2, 4  ;;  %s38_s29 = sshll.u32 %s1671_s28, 4  ;;  %s112_s27 = int_to_ptr.vmem [resolvable:$true] %s111_s27  ;;  %s39_s29 = int_to_ptr.vmem [resolvable:$true] %s38_s29 }
  0x36   :  { %s1498_s4 = scalar_lea.hbm %s2028_s13, 8192 }
  0x37   :  { %p1499_p2 = scmp.ne.s32.totalorder %s2028_s13, %s1498_s4  ;;  %p1502_p3 = scmp.lt.u32.totalorder %s1498_s4, %s2028_s13 }
  0x39   :  { %p1504_p4 = pnand %p1502_p3, %p1499_p2 }
  0x3b   :  { %1507 = shalt.err (!%p1504_p4)
}
  0x3c   :  { %s1508_s8 = scalar_lea.vmem %s112_s27, 8192  ;;  %p1513_p6 = scmp.lt.s32.totalorder %s112_s27, %s112_s27 }
  0x3d   :  { %p1509_p5 = scmp.ne.s32.totalorder %s112_s27, %s1508_s8  ;;  %p1514_p7 = scmp.lt.s32.totalorder %s1508_s8, %s1508_s8 }
  0x3f   :  { %p1515_p8 = por %p1514_p7, %p1513_p6 }
  0x41   :  { %p1516_p9 = pnand %p1515_p8, %p1509_p5 }
  0x43   :  { %1519 = shalt.err (!%p1516_p9)
}
  0x44   :  { %117 = dma.hbm_to_vmem [thread:$0]  %s2028_s13, 8192, %s112_s27, [#allocation12], %s1668_s25, %s1668_s25, %s1669_s3  }
  0x45   :  { %s2052_s22 = sld [smem:[#allocation23_spill]] }
  0x4b   :  { %s1520_s23 = scalar_lea.hbm %s2052_s22, 256 }
  0x4c   :  { %p1521_p10 = scmp.ne.s32.totalorder %s2052_s22, %s1520_s23  ;;  %p1524_p11 = scmp.lt.u32.totalorder %s1520_s23, %s2052_s22 }
  0x4e   :  { %p1526_p12 = pnand %p1524_p11, %p1521_p10 }
  0x50   :  { %1529 = shalt.err (!%p1526_p12)
}
  0x51   :  { %s1530_s30 = scalar_lea.vmem %s39_s29, 256  ;;  %p1535_p0 = scmp.lt.s32.totalorder %s39_s29, %s39_s29 }
  0x52   :  { %p1531_p13 = scmp.ne.s32.totalorder %s39_s29, %s1530_s30  ;;  %p1536_p1 = scmp.lt.s32.totalorder %s1530_s30, %s1530_s30 }
  0x54   :  { %p1537_p2 = por %p1536_p1, %p1535_p0 }
  0x56   :  { %p1538_p3 = pnand %p1537_p2, %p1531_p13 }
  0x58   :  { %1541 = shalt.err (!%p1538_p3)
}
  0x59   :  { %41 = dma.hbm_to_vmem [thread:$0]  %s2052_s22, 256, %s39_s29, [#allocation3]  }
  0x5a   :  { %s1672_s5 = smov [#allocation7]   ;;  %s1673_s26 = smov [#allocation10]  }
  0x5b   :  { %s67_s8 = sshll.u32 %s1672_s5, 4  ;;  %s93_s1 = sshll.u32 %s1673_s26, 4  ;;  %s68_s8 = int_to_ptr.vmem [resolvable:$true] %s67_s8  ;;  %s1848_s1 = int_to_ptr.vmem [resolvable:$true] %s93_s1 }
  0x5c   :  { %s1542_s23 = scalar_lea.hbm %s2021_s6, 4096 }
  0x5d   :  { %p1543_p4 = scmp.ne.s32.totalorder %s2021_s6, %s1542_s23  ;;  %p1546_p5 = scmp.lt.u32.totalorder %s1542_s23, %s2021_s6 }
  0x5f   :  { %p1548_p6 = pnand %p1546_p5, %p1543_p4 }
  0x61   :  { %1551 = shalt.err (!%p1548_p6)
}
  0x62   :  { %s1552_s29 = scalar_lea.vmem %s68_s8, 4096  ;;  %p1557_p8 = scmp.lt.s32.totalorder %s68_s8, %s68_s8 }
  0x63   :  { %p1553_p7 = scmp.ne.s32.totalorder %s68_s8, %s1552_s29  ;;  %p1558_p9 = scmp.lt.s32.totalorder %s1552_s29, %s1552_s29 }
  0x65   :  { %p1559_p10 = por %p1558_p9, %p1557_p8 }
  0x67   :  { %p1560_p11 = pnand %p1559_p10, %p1553_p7 }
  0x69   :  { %1563 = shalt.err (!%p1560_p11)
}
  0x6a   :  { %s2053_s22 = smov 8   ;;  %s2054_s30 = smov 128  }
  0x6b   :  { %73 = dma.hbm_to_vmem [thread:$0]  %s2021_s6, 4096, %s68_s8, [#allocation6], %s2054_s30, %s2054_s30, %s2053_s22  }
  0x6c   :  { %s1564_s24 = scalar_lea.hbm %s2024_s9, 2048 }
  0x6d   :  { %p1565_p12 = scmp.ne.s32.totalorder %s2024_s9, %s1564_s24  ;;  %p1568_p13 = scmp.lt.u32.totalorder %s1564_s24, %s2024_s9 }
  0x6f   :  { %p1570_p0 = pnand %p1568_p13, %p1565_p12 }
  0x71   :  { %1573 = shalt.err (!%p1570_p0)
}
  0x72   :  { %s1574_s21 = scalar_lea.vmem %s1848_s1, 2048  ;;  %p1579_p2 = scmp.lt.s32.totalorder %s1848_s1, %s1848_s1 }
  0x73   :  { %p1575_p1 = scmp.ne.s32.totalorder %s1848_s1, %s1574_s21  ;;  %p1580_p3 = scmp.lt.s32.totalorder %s1574_s21, %s1574_s21 }
  0x75   :  { %p1581_p4 = por %p1580_p3, %p1579_p2 }
  0x77   :  { %p1582_p5 = pnand %p1581_p4, %p1575_p1 }
  0x79   :  { %1585 = shalt.err (!%p1582_p5)
}
  0x7a   :  { %99 = dma.hbm_to_vmem [thread:$0]  %s2024_s9, 2048, %s1848_s1, [#allocation9], %s1668_s25, %s1668_s25, %s1669_s3  }
  0x7b   :  { %s1674_s4 = smov [#allocation13]   ;;  %s1675_s13 = smov [#allocation14]  }
  0x7c   :  { %s129_s29 = sshll.u32 %s1674_s4, 4  ;;  %s143_s27 = sshll.u32 %s1675_s13, 4  ;;  %s130_s29 = int_to_ptr.vmem [resolvable:$true] %s129_s29  ;;  %s1885_s27 = int_to_ptr.vmem [resolvable:$true] %s143_s27 }
  0x7d   :  { %s1586_s24 = scalar_lea.hbm %s2032_s17, 4096 }
  0x7e   :  { %p1587_p6 = scmp.ne.s32.totalorder %s2032_s17, %s1586_s24  ;;  %p1590_p7 = scmp.lt.u32.totalorder %s1586_s24, %s2032_s17 }
  0x80   :  { %p1592_p8 = pnand %p1590_p7, %p1587_p6 }
  0x82   :  { %1595 = shalt.err (!%p1592_p8)
}
  0x83   :  { %s1596_s9 = scalar_lea.vmem %s130_s29, 4096  ;;  %p1601_p10 = scmp.lt.s32.totalorder %s130_s29, %s130_s29 }
  0x84   :  { %p1597_p9 = scmp.ne.s32.totalorder %s130_s29, %s1596_s9  ;;  %p1602_p11 = scmp.lt.s32.totalorder %s1596_s9, %s1596_s9 }
  0x86   :  { %p1603_p12 = por %p1602_p11, %p1601_p10 }
  0x88   :  { %p1604_p13 = pnand %p1603_p12, %p1597_p9 }
  0x8a   :  { %1607 = shalt.err (!%p1604_p13)
}
  0x8b   :  { %135 = dma.hbm_to_vmem [thread:$0]  %s2032_s17, 4096, %s130_s29, [#allocation12], %s2054_s30, %s2054_s30, %s2053_s22  }
  0x8c   :  { %s1608_s4 = scalar_lea.hbm %s2034_s19, 4096 }
  0x8d   :  { %p1609_p0 = scmp.ne.s32.totalorder %s2034_s19, %s1608_s4  ;;  %p1612_p1 = scmp.lt.u32.totalorder %s1608_s4, %s2034_s19 }
  0x8f   :  { %p1614_p2 = pnand %p1612_p1, %p1609_p0 }
  0x91   :  { %1617 = shalt.err (!%p1614_p2)
}
  0x92   :  { %s1618_s2 = scalar_lea.vmem %s1885_s27, 4096  ;;  %p1623_p4 = scmp.lt.s32.totalorder %s1885_s27, %s1885_s27 }
  0x93   :  { %p1619_p3 = scmp.ne.s32.totalorder %s1885_s27, %s1618_s2  ;;  %p1624_p5 = scmp.lt.s32.totalorder %s1618_s2, %s1618_s2 }
  0x95   :  { %p1625_p6 = por %p1624_p5, %p1623_p4 }
  0x97   :  { %p1626_p7 = pnand %p1625_p6, %p1619_p3 }
  0x99   :  { %1629 = shalt.err (!%p1626_p7)
}
  0x9a   :  { %149 = dma.hbm_to_vmem [thread:$0]  %s2034_s19, 4096, %s1885_s27, [#allocation15], %s1668_s25, %s1668_s25, %s1669_s3  }
  0x9b   :  { %1652 = dma.done.wait [#allocation3], 256  }
  0x9c   :  { %1653 = vsyncadd [#allocation3], 4294967040 }
  0x9d   :  { %1654 = dma.done.wait [#allocation6], 4608  }
  0x9e   :  { %1655 = vsyncadd [#allocation6], 4294962688 }
  0x9f   :  { %1656 = dma.done.wait [#allocation9], 6144  }
  0xa0   :  { %1657 = vsyncadd [#allocation9], 4294961152 }
  0xa1   :  { %1658 = dma.done.wait [#allocation12], 12288  }
  0xa2   :  { %1659 = vsyncadd [#allocation12], 4294955008 }
  0xa3   :  { %1660 = dma.done.wait [#allocation15], 4096  }
  0xa4   :  { %1661 = vsyncadd [#allocation15], 4294963200  ;;  %v1676_v0 = vmov 0   ;;  %s2055_s23 = sld [smem:[#allocation24_spill]]  ;;  %v179_v2 = vld [vmem:[#allocation5] sm:$0xff]  ;;  %v180_v3 = vld [vmem:[#allocation5 + $0x8] sm:$0xff] }
  0xa5   :  { %1437 = vset.pattern.permute.xlu0 %v1676_v0  ;;  %v1205_v4 = vpack.c.bf16 %v180_v3, %v179_v2  ;;  %v1677_v5 = vmov 0.0|0.0   ;;  %v181_v6 = vld [vmem:[#allocation5 + $0x10] sm:$0xff]  ;;  %v182_v7 = vld [vmem:[#allocation5 + $0x18] sm:$0xff]  ;;  %v308_v9 = vld [vmem:[#allocation7 + $0x80] sm:$0xff]  ;;  %vm1678_vm0 = vmmov 0   ;;  %v1679_v12 = vmov 0.0  }
  0xa6   :  { %1204 = vmatprep.subr.bf16.mxu1 %v1677_v5  ;;  %v1208_v8 = vpack.c.bf16 %v182_v7, %v181_v6  ;;  %v309_v10 = vld [vmem:[#allocation7 + $0x88] sm:$0xff]  ;;  %1201 = vmatprep.mubr.msk.f32.mxu1 %vm1678_vm0, %v1679_v12  ;;  %v436_v14 = vld [vmem:[#allocation10 + $0x18] sm:$0xff]  ;;  %v433_v15 = vld [vmem:[#allocation10] sm:$0xff]  ;;  %s2056_s3 = sld [smem:[#allocation25_spill]]  ;;  %s2057_s0 = sld [smem:[#allocation26_spill]]  ;;  %vm216_vm1 = vcmask 261120  }
  0xa7   :  { %1206 = vmatpush3.bf16.msra.mxu1 %v1205_v4  ;;  %v1210_v11 = vpack.c.bf16 %v309_v10, %v308_v9  ;;  %620 = vmatprep.mubr.f32.mxu0 %v1679_v12  ;;  %v434_v13 = vld [vmem:[#allocation10 + $0x8] sm:$0xff]  ;;  %v435_v17 = vld [vmem:[#allocation10 + $0x10] sm:$0xff]  ;;  %v440_v19 = vld [vmem:[#allocation10 + $0x38] sm:$0xff]  ;;  %s2058_s21 = sld [smem:[#allocation28_spill]]  ;;  %vm552_vm2 = vcmask 523264   ;;  %s1680_s29 = smov [#allocation16]  }
  0xa8   :  { %1207 = vmatprep.subr.bf16.mxu1 %v1677_v5  ;;  %v1242_v16 = vpack.c.bf16 %v436_v14, %v434_v13  ;;  %v438_v18 = vld [vmem:[#allocation10 + $0x28] sm:$0xff]  ;;  %v1244_v20 = vpack.c.bf16 %v435_v17, %v433_v15  ;;  %v437_v22 = vld [vmem:[#allocation10 + $0x20] sm:$0xff]  ;;  %v439_v23 = vld [vmem:[#allocation10 + $0x30] sm:$0xff] }
  0xa9   :  { %v1246_v21 = vpack.c.bf16 %v440_v19, %v438_v18  ;;  %v442_v24 = vld [vmem:[#allocation10 + $0x48] sm:$0xff]  ;;  %v444_v25 = vld [vmem:[#allocation10 + $0x58] sm:$0xff]  ;;  %v1248_v26 = vpack.c.bf16 %v439_v23, %v437_v22  ;;  %v441_v28 = vld [vmem:[#allocation10 + $0x40] sm:$0xff] }
  0xaa   :  { %v176_v1 = vld [vmem:[%s2055_s23] sm:$0xff]  ;;  %1243 = vmatprep.subr.bf16.mxu0 %v1242_v16  ;;  %v1250_v27 = vpack.c.bf16 %v444_v25, %v442_v24  ;;  %v446_v30 = vld [vmem:[#allocation10 + $0x68] sm:$0xff]  ;;  %v448_v31 = vld [vmem:[#allocation10 + $0x78] sm:$0xff]  ;;  %s1097_s23 = sshll.u32 %s1680_s29, 4  ;;  %s1098_s23 = int_to_ptr.vmem [resolvable:$true] %s1097_s23 }
  0xab   :  { %186 = vperm.xlu0 %1437, %v176_v1   ;;  %1209 = vmatpush3.bf16.msra.mxu1 %v1208_v8  ;;  %v443_v29 = vld [vmem:[#allocation10 + $0x50] sm:$0xff]  ;;  %v1254_v33 = vpack.c.bf16 %v448_v31, %v446_v30  ;;  %v292_v42 = vld [vmem:[#allocation7] sm:$0xff]  ;;  %v293_v43 = vld [vmem:[#allocation7 + $0x8] sm:$0xff]  ;;  %p1635_p9 = scmp.lt.s32.totalorder %s1098_s23, %s1098_s23 }
  0xac   :  { %1211 = vmatprep.subr.bf16.mxu1 %v1210_v11  ;;  %1245 = vmatpush1.bf16.msra.mxu0 %v1244_v20  ;;  %v1252_v32 = vpack.c.bf16 %v443_v29, %v441_v28  ;;  %v1110_v34 = vld [vmem:[%s2056_s3] ss:$0 sm:$0xff]  ;;  %v311_v45 = vld [vmem:[#allocation7 + $0x98] sm:$0xff]  ;;  %v1212_v47 = vpack.c.bf16 %v293_v43, %v292_v42  ;;  %v312_v53 = vld [vmem:[#allocation7 + $0xa0] sm:$0xff] }
  0xad   :  { %1247 = vmatprep.subr.bf16.mxu0 %v1246_v21  ;;  %v1111_v35 = vld [vmem:[%s2057_s0] ss:$0 sm:$0xff]  ;;  %v295_v51 = vld [vmem:[#allocation7 + $0x18] sm:$0xff]  ;;  %v313_v54 = vld [vmem:[#allocation7 + $0xa8] sm:$0xff] }
  0xae   :  { %v310_v44 = vld [vmem:[#allocation7 + $0x90] sm:$0xff]  ;;  %v291_v52 = vld [vmem:[#allocation2 + $0x8] sm:$0xff]  ;;  %v1218_v56 = vpack.c.bf16 %v313_v54, %v312_v53  ;;  %v296_v57 = vld [vmem:[#allocation7 + $0x20] sm:$0xff] }
  0xaf   :  { %v1214_v49 = vpack.c.bf16 %v311_v45, %v310_v44  ;;  %v294_v50 = vld [vmem:[#allocation7 + $0x10] sm:$0xff]  ;;  %v297_v58 = vld [vmem:[#allocation7 + $0x28] sm:$0xff]  ;;  %v315_v60 = vld [vmem:[#allocation7 + $0xb8] sm:$0xff] }
  0xb0   :  { %1249 = vmatpush1.bf16.msra.mxu0 %v1248_v26  ;;  %v1216_v55 = vpack.c.bf16 %v295_v51, %v294_v50  ;;  %v314_v59 = vld [vmem:[#allocation7 + $0xb0] sm:$0xff]  ;;  %v1220_v61 = vpack.c.bf16 %v297_v58, %v296_v57  ;;  %v299_v0 = vld [vmem:[#allocation7 + $0x38] sm:$0xff]  ;;  %v316_v1 = vld [vmem:[#allocation7 + $0xc0] sm:$0xff] }
  0xb1   :  { %1251 = vmatprep.subr.bf16.mxu0 %v1250_v27  ;;  %v1222_v62 = vpack.c.bf16 %v315_v60, %v314_v59  ;;  %v298_v63 = vld [vmem:[#allocation7 + $0x30] sm:$0xff]  ;;  %v317_v2 = vld [vmem:[#allocation7 + $0xc8] sm:$0xff]  ;;  %v300_v5 = vld [vmem:[#allocation7 + $0x40] sm:$0xff] }
  0xb2   :  { %v1224_v3 = vpack.c.bf16 %v299_v0, %v298_v63  ;;  %v1226_v4 = vpack.c.bf16 %v317_v2, %v316_v1  ;;  %v301_v6 = vld [vmem:[#allocation7 + $0x48] sm:$0xff]  ;;  %v318_v7 = vld [vmem:[#allocation7 + $0xd0] sm:$0xff]  ;;  %v319_v8 = vld [vmem:[#allocation7 + $0xd8] sm:$0xff] }
  0xb3   :  { %v1228_v9 = vpack.c.bf16 %v301_v6, %v300_v5  ;;  %v1230_v10 = vpack.c.bf16 %v319_v8, %v318_v7  ;;  %v302_v11 = vld [vmem:[#allocation7 + $0x50] sm:$0xff]  ;;  %v303_v13 = vld [vmem:[#allocation7 + $0x58] sm:$0xff]  ;;  %v320_v14 = vld [vmem:[#allocation7 + $0xe0] sm:$0xff] }
  0xb4   :  { %1253 = vmatpush1.bf16.msra.mxu0 %v1252_v32  ;;  %v321_v15 = vld [vmem:[#allocation7 + $0xe8] sm:$0xff]  ;;  %v1232_v16 = vpack.c.bf16 %v303_v13, %v302_v11  ;;  %v304_v18 = vld [vmem:[#allocation7 + $0x60] sm:$0xff]  ;;  %v322_v20 = vld [vmem:[#allocation7 + $0xf0] sm:$0xff] }
  0xb5   :  { %1255 = vmatprep.subr.bf16.mxu0 %v1254_v33  ;;  %v1234_v17 = vpack.c.bf16 %v321_v15, %v320_v14  ;;  %v305_v19 = vld [vmem:[#allocation7 + $0x68] sm:$0xff]  ;;  %v323_v21 = vld [vmem:[#allocation7 + $0xf8] sm:$0xff]  ;;  %v306_v24 = vld [vmem:[#allocation7 + $0x70] sm:$0xff] }
  0xb6   :  { %v1236_v22 = vpack.c.bf16 %v305_v19, %v304_v18  ;;  %v1238_v23 = vpack.c.bf16 %v323_v21, %v322_v20  ;;  %v307_v25 = vld [vmem:[#allocation7 + $0x78] sm:$0xff]  ;;  %v290_v27 = vld [vmem:[#allocation2] sm:$0xff]  ;;  %v445_v28 = vld [vmem:[#allocation10 + $0x60] sm:$0xff] }
  0xb7   :  { %v1240_v26 = vpack.c.bf16 %v307_v25, %v306_v24  ;;  %v447_v29 = vld [vmem:[#allocation10 + $0x70] sm:$0xff]  ;;  %v402_v31 = vld [vmem:[#allocation8 + $0x8] sm:$0xff]  ;;  %v404_v32 = vld [vmem:[#allocation8 + $0x18] sm:$0xff]  ;;  %v699_v25 = vlaneseq }
  0xb8   :  { %v1256_v30 = vpack.c.bf16 %v447_v29, %v445_v28  ;;  %v1258_v33 = vpack.c.bf16 %v404_v32, %v402_v31  ;;  %v405_v44 = vld [vmem:[#allocation8 + $0x20] sm:$0xff]  ;;  %v407_v45 = vld [vmem:[#allocation8 + $0x30] sm:$0xff]  ;;  %v416_v53 = vld [vmem:[#allocation8 + $0x78] sm:$0xff] }
  0xb9   :  { %v409_v50 = vld [vmem:[#allocation8 + $0x40] sm:$0xff]  ;;  %v411_v51 = vld [vmem:[#allocation8 + $0x50] sm:$0xff]  ;;  %v418_v58 = vld [vmem:[#allocation8 + $0x88] sm:$0xff] }
  0xba   :  { %1257 = vmatpush1.bf16.msra.mxu0 %v1256_v30  ;;  %v1268_v54 = vpack.c.bf16 %v411_v51, %v409_v50  ;;  %v415_v57 = vld [vmem:[#allocation8 + $0x70] sm:$0xff]  ;;  %v420_v59 = vld [vmem:[#allocation8 + $0x98] sm:$0xff]  ;;  %v422_v0 = vld [vmem:[#allocation8 + $0xa8] sm:$0xff] }
  0xbb   :  { %1259 = vmatprep.subr.bf16.mxu0 %v1258_v33  ;;  %v419_v63 = vld [vmem:[#allocation8 + $0x90] sm:$0xff]  ;;  %v424_v1 = vld [vmem:[#allocation8 + $0xb8] sm:$0xff]  ;;  %v426_v6 = vld [vmem:[#allocation8 + $0xc8] sm:$0xff] }
  0xbc   :  { %v423_v5 = vld [vmem:[#allocation8 + $0xb0] sm:$0xff]  ;;  %v428_v7 = vld [vmem:[#allocation8 + $0xd8] sm:$0xff]  ;;  %v430_v13 = vld [vmem:[#allocation8 + $0xe8] sm:$0xff] }
  0xbd   :  { %v427_v11 = vld [vmem:[#allocation8 + $0xd0] sm:$0xff]  ;;  %v432_v14 = vld [vmem:[#allocation8 + $0xf8] sm:$0xff] }
  0xbe   :  { %v431_v18 = vld [vmem:[#allocation8 + $0xf0] sm:$0xff] }
  0xbf   :  { %v1115_v21 = vld [vmem:[%s2022_s7] ss:$0 sm:$0xff] }
  0xc0   :  { %v449_v28 = vld [vmem:[%s2025_s10] sm:$0x3] }
 0x12a   :  { %v187_v36 = vpop.permute.xlu0 %186 }
 0x12b   :  { %v195_v37 = vmul.f32 %v1110_v34, %v187_v36  ;;  %v401_v34 = vld [vmem:[#allocation8] sm:$0xff]  ;;  %v1113_v36 = vld [vmem:[%s2058_s21] ss:$0 sm:$0xff] }
 0x12d   :  { %v202_v38 = vadd.f32 %v1111_v35, %v195_v37  ;;  %v403_v35 = vld [vmem:[#allocation8 + $0x10] sm:$0xff]  ;;  %v406_v37 = vld [vmem:[#allocation8 + $0x28] sm:$0xff] }
 0x12f   :  { %v1112_v39 = vmul.f32 -1.442695, %v202_v38 }
 0x131   :  { %1438 = vpow2.f32 %v1112_v39 }
 0x13b   :  { %v1439_v40 = vpop.eup %1438 }
 0x13c   :  { %v206_v41 = vadd.f32 1.0, %v1439_v40  ;;  %v1260_v40 = vpack.c.bf16 %v403_v35, %v401_v34 }
 0x13e   :  { %1440 = vrcp.f32 %v206_v41 }
 0x148   :  { %v1441_v46 = vpop.eup %1440 }
 0x149   :  { %v209_v48 = vmul.f32 %v1441_v46, %v202_v38  ;;  %v408_v38 = vld [vmem:[#allocation8 + $0x38] sm:$0xff]  ;;  %v410_v46 = vld [vmem:[#allocation8 + $0x48] sm:$0xff] }
 0x14a   :  { %v1262_v43 = vpack.c.bf16 %v408_v38, %v406_v37  ;;  %v453_v37 = vld [vmem:[#allocation11 + $0x8] sm:$0xff]  ;;  %v455_v38 = vld [vmem:[#allocation11 + $0x18] sm:$0xff] }
 0x14b   :  { %1202 = vmatmul.mubr.msk.f32.vlgmr.msra.gmra.mrb[0].mxu1 %vm216_vm1, %v209_v48  ;;  %v1264_v48 = vpack.c.bf16 %v407_v45, %v405_v44 }
 0x14c   :  { %1213 = vmatpush3.bf16.msra.mxu1 %v1212_v47  ;;  %395 = vmatprep.mubr.f32.mxu1 %v291_v52  ;;  %v412_v47 = vld [vmem:[#allocation8 + $0x58] sm:$0xff]  ;;  %v414_v52 = vld [vmem:[#allocation8 + $0x68] sm:$0xff] }
 0x14d   :  { %1215 = vmatprep.subr.bf16.mxu1 %v1214_v49  ;;  %v1266_v49 = vpack.c.bf16 %v412_v47, %v410_v46  ;;  %v456_v46 = vld [vmem:[#allocation11 + $0x20] sm:$0xff]  ;;  %v458_v47 = vld [vmem:[#allocation11 + $0x30] sm:$0xff] }
 0x14e   :  { %v1296_v50 = vpack.c.bf16 %v458_v47, %v456_v46  ;;  %v492_v46 = vld [vmem:[#allocation11 + $0x140] sm:$0xff]  ;;  %v494_v47 = vld [vmem:[#allocation11 + $0x150] sm:$0xff] }
 0x150   :  { %1217 = vmatpush3.bf16.msra.mxu1 %v1216_v55  ;;  %v1270_v55 = vpack.c.bf16 %v416_v53, %v414_v52  ;;  %v460_v52 = vld [vmem:[#allocation11 + $0x40] sm:$0xff]  ;;  %v462_v53 = vld [vmem:[#allocation11 + $0x50] sm:$0xff] }
 0x151   :  { %1219 = vmatprep.subr.bf16.mxu1 %v1218_v56  ;;  %v413_v56 = vld [vmem:[#allocation8 + $0x60] sm:$0xff] }
 0x152   :  { %v1272_v60 = vpack.c.bf16 %v415_v57, %v413_v56  ;;  %v1300_v56 = vpack.c.bf16 %v462_v53, %v460_v52  ;;  %v498_v53 = vld [vmem:[#allocation11 + $0x170] sm:$0xff] }
 0x154   :  { %1221 = vmatpush3.bf16.msra.mxu1 %v1220_v61  ;;  %v1274_v61 = vpack.c.bf16 %v420_v59, %v418_v58  ;;  %v464_v58 = vld [vmem:[#allocation11 + $0x60] sm:$0xff]  ;;  %v466_v59 = vld [vmem:[#allocation11 + $0x70] sm:$0xff] }
 0x155   :  { %1223 = vmatprep.subr.bf16.mxu1 %v1222_v62  ;;  %v417_v62 = vld [vmem:[#allocation8 + $0x80] sm:$0xff] }
 0x156   :  { %v1276_v2 = vpack.c.bf16 %v419_v63, %v417_v62  ;;  %v1304_v62 = vpack.c.bf16 %v466_v59, %v464_v58  ;;  %v500_v58 = vld [vmem:[#allocation11 + $0x180] sm:$0xff]  ;;  %v502_v59 = vld [vmem:[#allocation11 + $0x190] sm:$0xff] }
 0x158   :  { %1225 = vmatpush3.bf16.msra.mxu1 %v1224_v3  ;;  %v1278_v3 = vpack.c.bf16 %v424_v1, %v422_v0  ;;  %v468_v0 = vld [vmem:[#allocation11 + $0x80] sm:$0xff]  ;;  %v470_v1 = vld [vmem:[#allocation11 + $0x90] sm:$0xff] }
 0x159   :  { %1227 = vmatprep.subr.bf16.mxu1 %v1226_v4  ;;  %v421_v4 = vld [vmem:[#allocation8 + $0xa0] sm:$0xff] }
 0x15a   :  { %v1280_v8 = vpack.c.bf16 %v423_v5, %v421_v4  ;;  %v1308_v4 = vpack.c.bf16 %v470_v1, %v468_v0  ;;  %v504_v0 = vld [vmem:[#allocation11 + $0x1a0] sm:$0xff]  ;;  %v506_v1 = vld [vmem:[#allocation11 + $0x1b0] sm:$0xff] }
 0x15c   :  { %1229 = vmatpush3.bf16.msra.mxu1 %v1228_v9  ;;  %v1282_v9 = vpack.c.bf16 %v428_v7, %v426_v6  ;;  %v472_v6 = vld [vmem:[#allocation11 + $0xa0] sm:$0xff]  ;;  %v474_v7 = vld [vmem:[#allocation11 + $0xb0] sm:$0xff] }
 0x15d   :  { %1231 = vmatprep.subr.bf16.mxu1 %v1230_v10  ;;  %v425_v10 = vld [vmem:[#allocation8 + $0xc0] sm:$0xff] }
 0x15e   :  { %v1284_v15 = vpack.c.bf16 %v427_v11, %v425_v10  ;;  %v1312_v10 = vpack.c.bf16 %v474_v7, %v472_v6  ;;  %v508_v6 = vld [vmem:[#allocation11 + $0x1c0] sm:$0xff]  ;;  %v510_v7 = vld [vmem:[#allocation11 + $0x1d0] sm:$0xff] }
 0x160   :  { %1233 = vmatpush3.bf16.msra.mxu1 %v1232_v16  ;;  %v1286_v16 = vpack.c.bf16 %v432_v14, %v430_v13 }
 0x161   :  { %1235 = vmatprep.subr.bf16.mxu1 %v1234_v17  ;;  %v429_v17 = vld [vmem:[#allocation8 + $0xe0] sm:$0xff] }
 0x162   :  { %v1288_v19 = vpack.c.bf16 %v431_v18, %v429_v17 }
 0x164   :  { %1237 = vmatpush3.bf16.msra.mxu1 %v1236_v22 }
 0x165   :  { %1239 = vmatprep.subr.bf16.mxu1 %v1238_v23 }
 0x168   :  { %1241 = vmatpush3.bf16.msra.mxu1 %v1240_v26  ;;  %v700_v26 = vshrl.u32 %v699_v25, 7 }
 0x16a   :  { %v1945_v29 = vsub.s32 1, %v700_v26 }
 0x16b   :  { %396 = vmatmul.mubr.f32.vlgmr.msra.gmra.mrb[2].mxu1 %v290_v27  ;;  %v1940_v27 = vsub.s32 0, %v700_v26  ;;  %v480_v26 = vld [vmem:[#allocation11 + $0xe0] sm:$0xff] }
 0x16c   :  { %v706_v31 = vrot.slane %v449_v28, %v1945_v29 }
 0x16d   :  { %v702_v30 = vrot.slane %v449_v28, %v1940_v27  ;;  %v482_v28 = vld [vmem:[#allocation11 + $0xf0] sm:$0xff] }
 0x21e   :  { %v286_v39 = vpop.f32.mrb[0].mxu1 }
 0x21f   :  { %v287_v41 = vadd.f32 %v1113_v36, %v286_v39  ;;  %v1203_v42 = vpop.f32.mrb[1].mxu1  ;;  %v452_v39 = vld [vmem:[#allocation11] sm:$0xff] }
 0x220   :  { %v457_v42 = vld [vmem:[#allocation11 + $0x28] sm:$0xff] }
 0x221   :  { %1116 = vmatmul.mubr.msk.f32.vlgmr.msra.gmra.mrb[0].mxu0 %vm552_vm2, %v287_v41  ;;  %v454_v41 = vld [vmem:[#allocation11 + $0x10] sm:$0xff] }
 0x222   :  { %1261 = vmatpush1.bf16.msra.mxu0 %v1260_v40  ;;  %691 = vmatprep.mubr.f32.mxu0 %v1679_v12  ;;  %v1290_v40 = vpack.c.bf16 %v455_v38, %v453_v37  ;;  %v1292_v44 = vpack.c.bf16 %v454_v41, %v452_v39  ;;  %v489_v37 = vld [vmem:[#allocation11 + $0x128] sm:$0xff]  ;;  %v491_v38 = vld [vmem:[#allocation11 + $0x138] sm:$0xff]  ;;  %v490_v41 = vld [vmem:[#allocation11 + $0x130] sm:$0xff] }
 0x223   :  { %1263 = vmatprep.subr.bf16.mxu0 %v1262_v43  ;;  %v459_v43 = vld [vmem:[#allocation11 + $0x38] sm:$0xff]  ;;  %v1326_v39 = vpack.c.bf16 %v491_v38, %v489_v37 }
 0x224   :  { %v1294_v45 = vpack.c.bf16 %v459_v43, %v457_v42  ;;  %1291 = vmatprep.subr.bf16.mxu1 %v1290_v40  ;;  %v488_v40 = vld [vmem:[#allocation11 + $0x120] sm:$0xff]  ;;  %v493_v43 = vld [vmem:[#allocation11 + $0x148] sm:$0xff] }
 0x225   :  { %1293 = vmatpush1.bf16.msra.mxu1 %v1292_v44  ;;  %v1328_v42 = vpack.c.bf16 %v490_v41, %v488_v40  ;;  %v495_v44 = vld [vmem:[#allocation11 + $0x158] sm:$0xff] }
 0x226   :  { %1265 = vmatpush1.bf16.msra.mxu0 %v1264_v48  ;;  %v461_v48 = vld [vmem:[#allocation11 + $0x48] sm:$0xff]  ;;  %1295 = vmatprep.subr.bf16.mxu1 %v1294_v45  ;;  %v1330_v45 = vpack.c.bf16 %v495_v44, %v493_v43  ;;  %v516_v44 = vld [vmem:[%s2029_s14] sm:$0x3] }
 0x227   :  { %1267 = vmatprep.subr.bf16.mxu0 %v1266_v49  ;;  %v463_v49 = vld [vmem:[#allocation11 + $0x58] sm:$0xff] }
 0x228   :  { %v1298_v51 = vpack.c.bf16 %v463_v49, %v461_v48  ;;  %v1332_v48 = vpack.c.bf16 %v494_v47, %v492_v46  ;;  %v497_v49 = vld [vmem:[#allocation11 + $0x168] sm:$0xff]  ;;  %v772_v46 = vrot.slane %v516_v44, %v1945_v29 }
 0x229   :  { %1297 = vmatpush1.bf16.msra.mxu1 %v1296_v50  ;;  %v499_v50 = vld [vmem:[#allocation11 + $0x178] sm:$0xff] }
 0x22a   :  { %1269 = vmatpush1.bf16.msra.mxu0 %v1268_v54  ;;  %v465_v54 = vld [vmem:[#allocation11 + $0x68] sm:$0xff]  ;;  %1299 = vmatprep.subr.bf16.mxu1 %v1298_v51  ;;  %v496_v51 = vld [vmem:[#allocation11 + $0x160] sm:$0xff]  ;;  %v1334_v52 = vpack.c.bf16 %v499_v50, %v497_v49 }
 0x22b   :  { %1271 = vmatprep.subr.bf16.mxu0 %v1270_v55  ;;  %v467_v55 = vld [vmem:[#allocation11 + $0x78] sm:$0xff] }
 0x22c   :  { %v1302_v57 = vpack.c.bf16 %v467_v55, %v465_v54  ;;  %v501_v54 = vld [vmem:[#allocation11 + $0x188] sm:$0xff]  ;;  %v503_v55 = vld [vmem:[#allocation11 + $0x198] sm:$0xff] }
 0x22d   :  { %1301 = vmatpush1.bf16.msra.mxu1 %v1300_v56  ;;  %v1336_v56 = vpack.c.bf16 %v498_v53, %v496_v51 }
 0x22e   :  { %1273 = vmatpush1.bf16.msra.mxu0 %v1272_v60  ;;  %v469_v60 = vld [vmem:[#allocation11 + $0x88] sm:$0xff]  ;;  %1303 = vmatprep.subr.bf16.mxu1 %v1302_v57  ;;  %v1338_v57 = vpack.c.bf16 %v503_v55, %v501_v54 }
 0x22f   :  { %1275 = vmatprep.subr.bf16.mxu0 %v1274_v61  ;;  %v471_v61 = vld [vmem:[#allocation11 + $0x98] sm:$0xff] }
 0x230   :  { %v1306_v63 = vpack.c.bf16 %v471_v61, %v469_v60  ;;  %v505_v60 = vld [vmem:[#allocation11 + $0x1a8] sm:$0xff]  ;;  %v507_v61 = vld [vmem:[#allocation11 + $0x1b8] sm:$0xff] }
 0x231   :  { %1305 = vmatpush1.bf16.msra.mxu1 %v1304_v62  ;;  %v1340_v62 = vpack.c.bf16 %v502_v59, %v500_v58  ;;  %v535_v59 = vld [vmem:[#allocation13 + $0x80] sm:$0xff] }
 0x232   :  { %1277 = vmatpush1.bf16.msra.mxu0 %v1276_v2  ;;  %v473_v2 = vld [vmem:[#allocation11 + $0xa8] sm:$0xff]  ;;  %1307 = vmatprep.subr.bf16.mxu1 %v1306_v63  ;;  %v1342_v63 = vpack.c.bf16 %v507_v61, %v505_v60 }
 0x233   :  { %1279 = vmatprep.subr.bf16.mxu0 %v1278_v3  ;;  %v475_v3 = vld [vmem:[#allocation11 + $0xb8] sm:$0xff]  ;;  %v536_v60 = vld [vmem:[#allocation13 + $0x88] sm:$0xff] }
 0x234   :  { %v1310_v5 = vpack.c.bf16 %v475_v3, %v473_v2  ;;  %v509_v2 = vld [vmem:[#allocation11 + $0x1c8] sm:$0xff]  ;;  %v511_v3 = vld [vmem:[#allocation11 + $0x1d8] sm:$0xff]  ;;  %v1354_v61 = vpack.c.bf16 %v536_v60, %v535_v59 }
 0x235   :  { %1309 = vmatpush1.bf16.msra.mxu1 %v1308_v4  ;;  %v1344_v4 = vpack.c.bf16 %v506_v1, %v504_v0  ;;  %v537_v1 = vld [vmem:[#allocation13 + $0x90] sm:$0xff] }
 0x236   :  { %1281 = vmatpush1.bf16.msra.mxu0 %v1280_v8  ;;  %v477_v8 = vld [vmem:[#allocation11 + $0xc8] sm:$0xff]  ;;  %1311 = vmatprep.subr.bf16.mxu1 %v1310_v5  ;;  %v1346_v5 = vpack.c.bf16 %v511_v3, %v509_v2  ;;  %v538_v2 = vld [vmem:[#allocation13 + $0x98] sm:$0xff] }
 0x237   :  { %1283 = vmatprep.subr.bf16.mxu0 %v1282_v9  ;;  %v479_v9 = vld [vmem:[#allocation11 + $0xd8] sm:$0xff]  ;;  %v1358_v3 = vpack.c.bf16 %v538_v2, %v537_v1 }
 0x238   :  { %v1314_v11 = vpack.c.bf16 %v479_v9, %v477_v8  ;;  %v513_v8 = vld [vmem:[#allocation11 + $0x1e8] sm:$0xff]  ;;  %v515_v9 = vld [vmem:[#allocation11 + $0x1f8] sm:$0xff] }
 0x239   :  { %1313 = vmatpush1.bf16.msra.mxu1 %v1312_v10  ;;  %v1348_v10 = vpack.c.bf16 %v510_v7, %v508_v6  ;;  %v539_v7 = vld [vmem:[#allocation13 + $0xa0] sm:$0xff] }
 0x23a   :  { %1285 = vmatpush1.bf16.msra.mxu0 %v1284_v15  ;;  %1315 = vmatprep.subr.bf16.mxu1 %v1314_v11  ;;  %v1350_v11 = vpack.c.bf16 %v515_v9, %v513_v8  ;;  %v540_v8 = vld [vmem:[#allocation13 + $0xa8] sm:$0xff] }
 0x23b   :  { %1287 = vmatprep.subr.bf16.mxu0 %v1286_v16  ;;  %v1362_v9 = vpack.c.bf16 %v540_v8, %v539_v7  ;;  %v976_v7 = vld [vmem:[#allocation14 + $0x10] sm:$0xff] }
 0x23e   :  { %v1155_v20 = vpop.f32.mrb[2].mxu1  ;;  %1289 = vmatpush1.bf16.msra.mxu0 %v1288_v19 }
 0x23f   :  { %v1156_v22 = vpop.f32.mrb[3].mxu1  ;;  %1355 = vmatprep.subr.bf16.mxu0 %v1354_v61 }
 0x240   :  { %v1157_v23 = vadd.f32 %v1156_v22, %v1155_v20  ;;  %v476_v20 = vld [vmem:[#allocation11 + $0xc0] sm:$0xff] }
 0x242   :  { %v398_v24 = vadd.f32 %v1157_v23, %v1115_v21  ;;  %v478_v21 = vld [vmem:[#allocation11 + $0xd0] sm:$0xff]  ;;  %v481_v23 = vld [vmem:[#allocation11 + $0xe8] sm:$0xff] }
 0x243   :  { %v1316_v22 = vpack.c.bf16 %v478_v21, %v476_v20  ;;  %v450_v21 = vld [vmem:[%s2026_s11] sm:$0x3] }
 0x244   :  { %692 = vmatmul.mubr.f32.vlgmr.msra.gmra.mrb[0].mxu0 %v398_v24  ;;  %v483_v24 = vld [vmem:[#allocation11 + $0xf8] sm:$0xff] }
 0x245   :  { %1317 = vmatpush1.bf16.msra.mxu1 %v1316_v22  ;;  %v1318_v25 = vpack.c.bf16 %v483_v24, %v481_v23  ;;  %v451_v22 = vld [vmem:[%s2027_s12] sm:$0x3]  ;;  %v732_v23 = vrot.slane %v450_v21, %v1940_v27  ;;  %v736_v24 = vrot.slane %v450_v21, %v1945_v29  ;;  %v543_v21 = vld [vmem:[#allocation13 + $0xc0] sm:$0xff] }
 0x247   :  { %1319 = vmatprep.subr.bf16.mxu1 %v1318_v25 }
 0x317   :  { %v693_v32 = vpop.f32.mrb[0].mxu0 }
 0x318   :  { %v709_v33 = vadd.f32 %v702_v30, %v693_v32  ;;  %v695_v34 = vpop.f32.mrb[1].mxu0  ;;  %v1320_v30 = vpack.c.bf16 %v482_v28, %v480_v26  ;;  %v487_v32 = vld [vmem:[#allocation11 + $0x118] sm:$0xff] }
 0x319   :  { %v710_v35 = vadd.f32 %v706_v31, %v695_v34  ;;  %v485_v31 = vld [vmem:[#allocation11 + $0x108] sm:$0xff]  ;;  %v484_v34 = vld [vmem:[#allocation11 + $0x100] sm:$0xff] }
 0x31a   :  { %1321 = vmatpush1.bf16.msra.mxu1 %v1320_v30  ;;  %v745_v30 = vrot.slane %v451_v22, %v1940_v27 }
 0x31b   :  { %v711_v36 = vadd.f32 %v710_v35, %v709_v33 }
 0x31d   :  { %712 = vadd.xlane.f32.xlu0 %v711_v36 }
 0x3aa   :  { %v713_v13 = vpop.xlane.xlu0 %712 }
 0x3ab   :  { %v715_v14 = vmul.f32 0.00390625, %v713_v13  ;;  %v512_v13 = vld [vmem:[#allocation11 + $0x1e0] sm:$0xff] }
 0x3ad   :  { %v1949_v15 = vsub.f32 %v709_v33, %v715_v14  ;;  %v1951_v16 = vsub.f32 %v710_v35, %v715_v14  ;;  %v1322_v33 = vpack.c.bf16 %v487_v32, %v485_v31  ;;  %v486_v35 = vld [vmem:[#allocation11 + $0x110] sm:$0xff]  ;;  %v749_v31 = vrot.slane %v451_v22, %v1945_v29  ;;  %v544_v22 = vld [vmem:[#allocation13 + $0xc8] sm:$0xff] }
 0x3ae   :  { %v1324_v36 = vpack.c.bf16 %v486_v35, %v484_v34  ;;  %v514_v14 = vld [vmem:[#allocation11 + $0x1f0] sm:$0xff] }
 0x3af   :  { %v718_v17 = vmul.f32 %v1949_v15, %v1949_v15  ;;  %v719_v18 = vmul.f32 %v1951_v16, %v1951_v16  ;;  %1323 = vmatprep.subr.bf16.mxu1 %v1322_v33 }
 0x3b0   :  { %1325 = vmatpush1.bf16.msra.mxu1 %v1324_v36 }
 0x3b1   :  { %v720_v19 = vadd.f32 %v719_v18, %v718_v17  ;;  %1327 = vmatprep.subr.bf16.mxu1 %v1326_v39  ;;  %v1352_v17 = vpack.c.bf16 %v514_v14, %v512_v13  ;;  %v541_v14 = vld [vmem:[#allocation13 + $0xb0] sm:$0xff] }
 0x3b3   :  { %721 = vadd.xlane.f32.xlu1 %v720_v19 }
 0x3b4   :  { %1329 = vmatpush1.bf16.msra.mxu1 %v1328_v42 }
 0x3b5   :  { %1331 = vmatprep.subr.bf16.mxu1 %v1330_v45  ;;  %v768_v45 = vrot.slane %v516_v44, %v1940_v27  ;;  %v534_v44 = vld [vmem:[#allocation13 + $0x78] sm:$0xff] }
 0x3b8   :  { %1333 = vmatpush1.bf16.msra.mxu1 %v1332_v48 }
 0x3b9   :  { %1335 = vmatprep.subr.bf16.mxu1 %v1334_v52 }
 0x3bc   :  { %1337 = vmatpush1.bf16.msra.mxu1 %v1336_v56 }
 0x3bd   :  { %1339 = vmatprep.subr.bf16.mxu1 %v1338_v57 }
 0x3c0   :  { %1341 = vmatpush1.bf16.msra.mxu1 %v1340_v62  ;;  %v519_v62 = vld [vmem:[#allocation13] sm:$0xff] }
 0x3c1   :  { %1343 = vmatprep.subr.bf16.mxu1 %v1342_v63  ;;  %v520_v63 = vld [vmem:[#allocation13 + $0x8] sm:$0xff] }
 0x3c2   :  { %v1356_v0 = vpack.c.bf16 %v520_v63, %v519_v62 }
 0x3c4   :  { %1345 = vmatpush1.bf16.msra.mxu1 %v1344_v4  ;;  %1357 = vmatpush3.bf16.msra.mxu0 %v1356_v0  ;;  %v521_v4 = vld [vmem:[#allocation13 + $0x10] sm:$0xff] }
 0x3c5   :  { %1347 = vmatprep.subr.bf16.mxu1 %v1346_v5  ;;  %v522_v5 = vld [vmem:[#allocation13 + $0x18] sm:$0xff]  ;;  %1359 = vmatprep.subr.bf16.mxu0 %v1358_v3 }
 0x3c6   :  { %v1360_v6 = vpack.c.bf16 %v522_v5, %v521_v4 }
 0x3c8   :  { %1349 = vmatpush1.bf16.msra.mxu1 %v1348_v10  ;;  %1361 = vmatpush3.bf16.msra.mxu0 %v1360_v6  ;;  %v523_v10 = vld [vmem:[#allocation13 + $0x20] sm:$0xff] }
 0x3c9   :  { %1351 = vmatprep.subr.bf16.mxu1 %v1350_v11  ;;  %v524_v11 = vld [vmem:[#allocation13 + $0x28] sm:$0xff]  ;;  %1363 = vmatprep.subr.bf16.mxu0 %v1362_v9  ;;  %v974_v6 = vld [vmem:[#allocation14] sm:$0xff] }
 0x3ca   :  { %v1364_v13 = vpack.c.bf16 %v524_v11, %v523_v10  ;;  %v979_v10 = vld [vmem:[#allocation14 + $0x28] sm:$0xff] }
 0x3cc   :  { %1353 = vmatpush1.bf16.msra.mxu1 %v1352_v17  ;;  %v542_v17 = vld [vmem:[#allocation13 + $0xb8] sm:$0xff]  ;;  %1365 = vmatpush3.bf16.msra.mxu0 %v1364_v13 }
 0x440   :  { %v722_v18 = vpop.xlane.xlu1 %721 }
 0x441   :  { %v723_v19 = vmul.f32 0.00390625, %v722_v18  ;;  %v525_v18 = vld [vmem:[#allocation13 + $0x30] sm:$0xff] }
 0x443   :  { %v724_v20 = vadd.f32 1e-05, %v723_v19  ;;  %v1366_v19 = vpack.c.bf16 %v542_v17, %v541_v14  ;;  %v1388_v17 = vpack.c.bf16 %v976_v7, %v974_v6 }
 0x445   :  { %1442 = vrsqrt.f32 %v724_v20  ;;  %v526_v20 = vld [vmem:[#allocation13 + $0x38] sm:$0xff]  ;;  %1367 = vmatprep.subr.bf16.mxu0 %v1366_v19 }
 0x44f   :  { %v1443_v25 = vpop.eup %1442 }
 0x450   :  { %v726_v26 = vmul.f32 %v1443_v25, %v1949_v15  ;;  %v727_v28 = vmul.f32 %v1443_v25, %v1951_v16  ;;  %v527_v25 = vld [vmem:[#allocation13 + $0x40] sm:$0xff] }
 0x452   :  { %v740_v32 = vmul.f32 %v736_v24, %v727_v28  ;;  %v739_v33 = vmul.f32 %v732_v23, %v726_v26  ;;  %v1368_v23 = vpack.c.bf16 %v526_v20, %v525_v18  ;;  %v1370_v24 = vpack.c.bf16 %v544_v22, %v543_v21  ;;  %v528_v26 = vld [vmem:[#allocation13 + $0x48] sm:$0xff]  ;;  %v545_v28 = vld [vmem:[#allocation13 + $0xd0] sm:$0xff]  ;;  %v978_v20 = vld [vmem:[#allocation14 + $0x20] sm:$0xff] }
 0x453   :  { %v980_v21 = vld [vmem:[#allocation14 + $0x30] sm:$0xff]  ;;  %v983_v22 = vld [vmem:[#allocation14 + $0x48] sm:$0xff] }
 0x454   :  { %v753_v34 = vadd.f32 %v749_v31, %v740_v32  ;;  %v752_v35 = vadd.f32 %v745_v30, %v739_v33  ;;  %v546_v30 = vld [vmem:[#allocation13 + $0xd8] sm:$0xff]  ;;  %1369 = vmatpush3.bf16.msra.mxu0 %v1368_v23  ;;  %v1372_v31 = vpack.c.bf16 %v528_v26, %v527_v25  ;;  %v529_v33 = vld [vmem:[#allocation13 + $0x50] sm:$0xff]  ;;  %v982_v26 = vld [vmem:[#allocation14 + $0x40] sm:$0xff] }
 0x455   :  { %1371 = vmatprep.subr.bf16.mxu0 %v1370_v24  ;;  %v1374_v32 = vpack.c.bf16 %v546_v30, %v545_v28  ;;  %v985_v23 = vld [vmem:[#allocation14 + $0x58] sm:$0xff]  ;;  %v1392_v24 = vpack.c.bf16 %v980_v21, %v978_v20  ;;  %v984_v28 = vld [vmem:[#allocation14 + $0x50] sm:$0xff]  ;;  %v987_v30 = vld [vmem:[#allocation14 + $0x68] sm:$0xff] }
 0x456   :  { %v757_v36 = vmul.f32 0.70710677, %v753_v34  ;;  %v756_v37 = vmul.f32 0.70710677, %v752_v35  ;;  %v755_v40 = vmul.f32 0.5, %v753_v34  ;;  %v754_v42 = vmul.f32 0.5, %v752_v35 }
 0x457   :  { %v530_v34 = vld [vmem:[#allocation13 + $0x58] sm:$0xff]  ;;  %v547_v35 = vld [vmem:[#allocation13 + $0xe0] sm:$0xff]  ;;  %v1394_v25 = vpack.c.bf16 %v985_v23, %v983_v22 }
 0x458   :  { %1444 = verf.f32 %v757_v36  ;;  %v548_v36 = vld [vmem:[#allocation13 + $0xe8] sm:$0xff]  ;;  %1373 = vmatpush3.bf16.msra.mxu0 %v1372_v31  ;;  %v989_v31 = vld [vmem:[#allocation14 + $0x78] sm:$0xff] }
 0x459   :  { %1446 = verf.f32 %v756_v37  ;;  %v1376_v37 = vpack.c.bf16 %v530_v34, %v529_v33  ;;  %1375 = vmatprep.subr.bf16.mxu0 %v1374_v32  ;;  %v1396_v32 = vpack.c.bf16 %v984_v28, %v982_v26  ;;  %v1398_v33 = vpack.c.bf16 %v989_v31, %v987_v30  ;;  %v986_v34 = vld [vmem:[#allocation14 + $0x60] sm:$0xff] }
 0x45c   :  { %1377 = vmatpush3.bf16.msra.mxu0 %v1376_v37  ;;  %v993_v37 = vld [vmem:[#allocation14 + $0x98] sm:$0xff] }
 0x462   :  { %v1445_v38 = vpop.eup %1444 }
 0x463   :  { %v1447_v39 = vpop.eup %1446  ;;  %v761_v41 = vadd.f32 1.0, %v1445_v38  ;;  %v1378_v38 = vpack.c.bf16 %v548_v36, %v547_v35  ;;  %v988_v35 = vld [vmem:[#allocation14 + $0x70] sm:$0xff]  ;;  %v991_v36 = vld [vmem:[#allocation14 + $0x88] sm:$0xff] }
 0x464   :  { %v760_v15 = vadd.f32 1.0, %v1447_v39  ;;  %v531_v39 = vld [vmem:[#allocation13 + $0x60] sm:$0xff] }
 0x465   :  { %v763_v43 = vmul.f32 %v761_v41, %v755_v40  ;;  %v532_v40 = vld [vmem:[#allocation13 + $0x68] sm:$0xff]  ;;  %v549_v41 = vld [vmem:[#allocation13 + $0xf0] sm:$0xff]  ;;  %1379 = vmatprep.subr.bf16.mxu0 %v1378_v38  ;;  %v1400_v38 = vpack.c.bf16 %v988_v35, %v986_v34 }
 0x466   :  { %v762_v16 = vmul.f32 %v760_v15, %v754_v42  ;;  %v550_v42 = vld [vmem:[#allocation13 + $0xf8] sm:$0xff]  ;;  %v1380_v15 = vpack.c.bf16 %v532_v40, %v531_v39  ;;  %v1402_v39 = vpack.c.bf16 %v993_v37, %v991_v36  ;;  %v990_v40 = vld [vmem:[#allocation14 + $0x80] sm:$0xff] }
 0x467   :  { %839 = vmatprep.mubr.f32.mxu1 %v763_v43  ;;  %v1382_v43 = vpack.c.bf16 %v550_v42, %v549_v41  ;;  %v995_v41 = vld [vmem:[#allocation14 + $0xa8] sm:$0xff]  ;;  %v997_v42 = vld [vmem:[#allocation14 + $0xb8] sm:$0xff] }
 0x468   :  { %840 = vmatmul.mubr.f32.vlgmr.msra.gmra.mrb[4].mxu1 %v762_v16  ;;  %v533_v16 = vld [vmem:[#allocation13 + $0x70] sm:$0xff]  ;;  %1381 = vmatpush3.bf16.msra.mxu0 %v1380_v15 }
 0x469   :  { %1383 = vmatprep.subr.bf16.mxu0 %v1382_v43  ;;  %v1406_v43 = vpack.c.bf16 %v997_v42, %v995_v41 }
 0x53b   :  { %v841_v47 = vpop.f32.mrb[4].mxu1 }
 0x53c   :  { %v842_v48 = vadd.f32 %v841_v47, %v768_v45  ;;  %v843_v49 = vpop.f32.mrb[5].mxu1  ;;  %v1384_v45 = vpack.c.bf16 %v534_v44, %v533_v16  ;;  %v977_v47 = vld [vmem:[#allocation14 + $0x18] sm:$0xff]  ;;  %v994_v16 = vld [vmem:[#allocation14 + $0xa0] sm:$0xff]  ;;  %v996_v44 = vld [vmem:[#allocation14 + $0xb0] sm:$0xff] }
 0x53d   :  { %v844_v50 = vadd.f32 %v843_v49, %v772_v46  ;;  %v975_v46 = vld [vmem:[#allocation14 + $0x8] sm:$0xff] }
 0x53e   :  { %1385 = vmatpush3.bf16.msra.mxu0 %v1384_v45  ;;  %v999_v45 = vld [vmem:[#allocation14 + $0xc8] sm:$0xff] }
 0x53f   :  { %v846_v51 = vadd.f32 %v844_v50, %v842_v48 }
 0x541   :  { %847 = vadd.xlane.f32.xlu1 %v846_v51 }
 0x5ce   :  { %v848_v52 = vpop.xlane.xlu1 %847 }
 0x5cf   :  { %v849_v53 = vmul.f32 0.00390625, %v848_v52  ;;  %v517_v52 = vld [vmem:[%s2030_s15] sm:$0x3] }
 0x5d1   :  { %v1974_v54 = vsub.f32 %v842_v48, %v849_v53  ;;  %v1976_v55 = vsub.f32 %v844_v50, %v849_v53  ;;  %v1386_v48 = vpack.c.bf16 %v977_v47, %v975_v46  ;;  %v518_v53 = vld [vmem:[%s2031_s16] sm:$0x3]  ;;  %v1001_v46 = vld [vmem:[#allocation14 + $0xd8] sm:$0xff]  ;;  %v1408_v47 = vpack.c.bf16 %v996_v44, %v994_v16 }
 0x5d2   :  { %v879_v61 = vrot.slane %v518_v53, %v1940_v27  ;;  %v883_v62 = vrot.slane %v518_v53, %v1945_v29  ;;  %v1005_v53 = vld [vmem:[#allocation14 + $0xf8] sm:$0xff] }
 0x5d3   :  { %v852_v56 = vmul.f32 %v1974_v54, %v1974_v54  ;;  %v853_v57 = vmul.f32 %v1976_v55, %v1976_v55  ;;  %1387 = vmatprep.subr.bf16.mxu0 %v1386_v48  ;;  %v1410_v48 = vpack.c.bf16 %v1001_v46, %v999_v45 }
 0x5d5   :  { %v854_v58 = vadd.f32 %v853_v57, %v852_v56  ;;  %v866_v56 = vrot.slane %v517_v52, %v1940_v27  ;;  %v870_v57 = vrot.slane %v517_v52, %v1945_v29  ;;  %v1003_v52 = vld [vmem:[#allocation14 + $0xe8] sm:$0xff] }
 0x5d7   :  { %855 = vadd.xlane.f32.xlu1 %v854_v58 }
 0x664   :  { %v856_v49 = vpop.xlane.xlu1 %855 }
 0x665   :  { %v857_v50 = vmul.f32 0.00390625, %v856_v49  ;;  %v998_v49 = vld [vmem:[#allocation14 + $0xc0] sm:$0xff] }
 0x667   :  { %v858_v51 = vadd.f32 1e-05, %v857_v50  ;;  %v1000_v50 = vld [vmem:[#allocation14 + $0xd0] sm:$0xff] }
 0x669   :  { %1448 = vrsqrt.f32 %v858_v51  ;;  %v1412_v51 = vpack.c.bf16 %v1000_v50, %v998_v49 }
 0x673   :  { %v1449_v58 = vpop.eup %1448 }
 0x674   :  { %v860_v59 = vmul.f32 %v1449_v58, %v1974_v54  ;;  %v861_v60 = vmul.f32 %v1449_v58, %v1976_v55  ;;  %v981_v55 = vld [vmem:[#allocation14 + $0x38] sm:$0xff]  ;;  %v1004_v58 = vld [vmem:[#allocation14 + $0xf0] sm:$0xff] }
 0x675   :  { %v1390_v19 = vpack.c.bf16 %v981_v55, %v979_v10 }
 0x676   :  { %v874_v63 = vmul.f32 %v870_v57, %v861_v60  ;;  %v873_v0 = vmul.f32 %v866_v56, %v860_v59  ;;  %v1414_v56 = vpack.c.bf16 %v1005_v53, %v1003_v52  ;;  %v1002_v57 = vld [vmem:[#allocation14 + $0xe0] sm:$0xff] }
 0x677   :  { %v1416_v59 = vpack.c.bf16 %v1004_v58, %v1002_v57 }
 0x678   :  { %v887_v1 = vadd.f32 %v883_v62, %v874_v63  ;;  %v886_v2 = vadd.f32 %v879_v61, %v873_v0  ;;  %v1117_v61 = vld [vmem:[%s2033_s18] ss:$0 sm:$0xff]  ;;  %s1630_s18 = scalar_lea.vmem %s1098_s23, 256 }
 0x679   :  { %p1631_p8 = scmp.ne.s32.totalorder %s1098_s23, %s1630_s18  ;;  %p1636_p10 = scmp.lt.s32.totalorder %s1630_s18, %s1630_s18 }
 0x67a   :  { %v891_v3 = vmul.f32 0.70710677, %v887_v1  ;;  %v890_v4 = vmul.f32 0.70710677, %v886_v2  ;;  %v889_v9 = vmul.f32 0.5, %v887_v1  ;;  %v888_v11 = vmul.f32 0.5, %v886_v2 }
 0x67b   :  { %v1006_v1 = vld [vmem:[%s2035_s20] sm:$0x3]  ;;  %p1637_p11 = por %p1636_p10, %p1635_p9 }
 0x67c   :  { %1450 = verf.f32 %v891_v3  ;;  %v1011_v2 = vrot.slane %v1006_v1, %v1940_v27  ;;  %v1015_v3 = vrot.slane %v1006_v1, %v1945_v29 }
 0x67d   :  { %1452 = verf.f32 %v890_v4  ;;  %p1638_p12 = pnand %p1637_p11, %p1631_p8 }
 0x686   :  { %v1451_v5 = vpop.eup %1450 }
 0x687   :  { %v1453_v8 = vpop.eup %1452  ;;  %v895_v54 = vadd.f32 1.0, %v1451_v5 }
 0x688   :  { %v894_v13 = vadd.f32 1.0, %v1453_v8 }
 0x689   :  { %v897_v14 = vmul.f32 %v895_v54, %v889_v9 }
 0x68a   :  { %v896_v18 = vmul.f32 %v894_v13, %v888_v11 }
 0x68b   :  { %968 = vmatprep.mubr.f32.mxu0 %v897_v14 }
 0x68c   :  { %969 = vmatmul.mubr.f32.vlgmr.msra.gmra.mrb[2].mxu0 %v896_v18 }
 0x68d   :  { %1389 = vmatpush1.bf16.msra.mxu0 %v1388_v17  ;;  %1082 = vmatprep.mubr.f32.mxu0 %v1679_v12  ;;  %v992_v12 = vld [vmem:[#allocation14 + $0x90] sm:$0xff] }
 0x68e   :  { %1391 = vmatprep.subr.bf16.mxu0 %v1390_v19  ;;  %v1404_v15 = vpack.c.bf16 %v992_v12, %v990_v40 }
 0x691   :  { %1393 = vmatpush1.bf16.msra.mxu0 %v1392_v24 }
 0x692   :  { %1395 = vmatprep.subr.bf16.mxu0 %v1394_v25 }
 0x695   :  { %1397 = vmatpush1.bf16.msra.mxu0 %v1396_v32 }
 0x696   :  { %1399 = vmatprep.subr.bf16.mxu0 %v1398_v33 }
 0x699   :  { %1401 = vmatpush1.bf16.msra.mxu0 %v1400_v38 }
 0x69a   :  { %1403 = vmatprep.subr.bf16.mxu0 %v1402_v39 }
 0x69d   :  { %1405 = vmatpush1.bf16.msra.mxu0 %v1404_v15 }
 0x69e   :  { %1407 = vmatprep.subr.bf16.mxu0 %v1406_v43 }
 0x6a1   :  { %1409 = vmatpush1.bf16.msra.mxu0 %v1408_v47 }
 0x6a2   :  { %1411 = vmatprep.subr.bf16.mxu0 %v1410_v48 }
 0x6a5   :  { %1413 = vmatpush1.bf16.msra.mxu0 %v1412_v51 }
 0x6a6   :  { %1415 = vmatprep.subr.bf16.mxu0 %v1414_v56 }
 0x6a9   :  { %1417 = vmatpush1.bf16.msra.mxu0 %v1416_v59 }
 0x75f   :  { %v1190_v60 = vpop.f32.mrb[2].mxu0 }
 0x760   :  { %v1191_v62 = vpop.f32.mrb[3].mxu0 }
 0x761   :  { %v1192_v63 = vadd.f32 %v1191_v62, %v1190_v60 }
 0x763   :  { %v971_v0 = vadd.f32 %v1192_v63, %v1117_v61 }
 0x765   :  { %1083 = vmatmul.mubr.f32.vlgmr.msra.gmra.mrb[4].mxu0 %v971_v0 }
 0x838   :  { %v1084_v4 = vpop.f32.mrb[4].mxu0 }
 0x839   :  { %v1085_v5 = vadd.f32 %v1084_v4, %v1011_v2  ;;  %v1086_v6 = vpop.f32.mrb[5].mxu0 }
 0x83a   :  { %v1087_v7 = vadd.f32 %v1086_v6, %v1015_v3 }
 0x83b   :  { %1089 = vst [vmem:[#allocation16] sm:$0xff] %v1085_v5 }
 0x83c   :  { %1090 = vst [vmem:[#allocation16 + $0x8] sm:$0xff] %v1087_v7 }
 0x83d   :  { %1641 = shalt.err (!%p1638_p12)
}
 0x83e   :  { %s2059_s25 = sld [smem:[#allocation29_spill]] }
 0x844   :  { %s1642_s3 = scalar_lea.hbm %s2059_s25, 256 }
 0x845   :  { %p1643_p13 = scmp.ne.s32.totalorder %s2059_s25, %s1642_s3  ;;  %p1646_p0 = scmp.lt.u32.totalorder %s1642_s3, %s2059_s25 }
 0x847   :  { %p1648_p1 = pnand %p1646_p0, %p1643_p13 }
 0x849   :  { %1651 = shalt.err (!%p1648_p1)
}
 0x84a   :  { %1100 = dma.vmem_to_hbm [thread:$0]  %s1098_s23, 256, %s2059_s25, [#allocation4]  }
 0x84b   :  { %1662 = dma.done.wait [#allocation4], 256  }
 0x84c   :  { %1663 = vsyncadd [#allocation4], 4294967040 }
 0x84d   :  { %1104 = vsyncpa [#allocation3], 1 }
 0x84e   :  { %1105 = vsyncpa [#allocation6], 1 }
 0x84f   :  { %1106 = vsyncpa [#allocation9], 1 }
 0x850   :  { %1107 = vsyncpa [#allocation12], 1 }
 0x851   :  { %1108 = vsyncpa [#allocation15], 1 }
 0x852   :  { %1109 = vsyncpa [#allocation4], 1 }

</bundles_post_ra>
